<compile_context>
chip_gen: v7x
topology: tpu7x:2x2x1
jax: 0.10.0
libtpu: 0.0.40
codegen_flags: <defaults>
</compile_context>

<pallas_src>
import jax
import jax.numpy as jnp
from jax import lax
from jax.experimental import pallas as pl
from jax.experimental.pallas import tpu as pltpu


def _conv3x3(src, rows, w_ref, cout):
    """3x3 'same' conv of a row-padded band via a single MXU matmul.

    src  : (rows+2, W, cin) bf16 -- output row r uses src rows r..r+2 (row halo
           already present).  Columns are UNpadded; the kx=0/kx=2 taps are
           recovered by shifting the f32 partial sums (XLU roll) + edge mask.
    w_ref: (3*cin, 3*cout) bf16  -- RHS[ky*cin+ci, kx*cout+co] = W[co, ci, ky, kx]
    returns (rows, W, cout) float32.
    """
    W = src.shape[1]
    cin = src.shape[2]
    # ky taps folded into the contraction dim (lane concat).
    # TODO(synk): this concat is only "free" when cin is a multiple of 128; for
    # C=64 stages, zero-padding channels to 128 in the wrapper would remove the
    # cross-lane repack entirely.
    lhs = jnp.concatenate([src[0:rows], src[1:rows + 1], src[2:rows + 2]],
                          axis=-1).reshape(rows * W, 3 * cin)
    # kx taps folded into the matmul N dim -> one MXU push per conv, N = 3*cout.
    y = jnp.dot(lhs, w_ref[...], preferred_element_type=jnp.float32)  # (rows*W, 3*cout)

    # Recombine kx taps: out[., w] = Y0[., w-1] + Y1[., w] + Y2[., w+1].
    # We roll the flattened (rows*W) sublane axis by +/-1; entries that wrapped
    # across a row boundary land exactly on the masked edge columns, so the
    # result is exact.
    y0 = pltpu.roll(y[:, 0:cout], shift=1, axis=0).reshape(rows, W, cout)
    y1 = y[:, cout:2 * cout].reshape(rows, W, cout)
    y2 = pltpu.roll(y[:, 2 * cout:3 * cout], shift=rows * W - 1,  # == shift -1
                    axis=0).reshape(rows, W, cout)
    col = lax.broadcasted_iota(jnp.int32, (rows, W, 1), 1)
    y0 = jnp.where(col > 0, y0, 0.0)
    y2 = jnp.where(col < W - 1, y2, 0.0)
    return y0 + y1 + y2


def residual_block_kernel(x_ref, w1_ref, w2_ref, s1_ref, b1_ref, s2_ref, b2_ref,
                          o_ref):
    """One (batch, row-tile) band per grid step.

    x_ref : (1, H+4, W, Cin)   bf16, input with a 2-row zero halo top/bottom
            (no column padding); resident in VMEM across the row tiles of one image.
    w1_ref: (3*Cin,  3*Cout)   bf16      w2_ref: (3*Cout, 3*Cout) bf16
    s*/b* : (1, Cout)          f32 folded BN scale / shift
    o_ref : (1, TILE_H, W, Cout) bf16 output band
    """
    TH = o_ref.shape[1]
    W = o_ref.shape[2]
    Cout = o_ref.shape[3]
    RM = TH + 2                      # conv1 rows needed (1-row halo each side)

    i = pl.program_id(1)
    r0 = pl.multiple_of(i * TH, TH)

    # Band of the resident row-padded image: padded rows [r0, r0 + TH + 4).
    xb = x_ref[0, pl.ds(r0, TH + 4), :, :]                  # (TH+4, W, Cin) bf16

    # ---------------- conv1 -> bn1 -> relu ----------------
    h1 = _conv3x3(xb, RM, w1_ref, Cout)                     # (RM, W, Cout) f32
    mid = jnp.maximum(h1 * s1_ref[...] + b1_ref[...], 0.0).astype(jnp.bfloat16)

    # Zero the out-of-image conv1 halo rows.  Only the first band's top row and
    # the last band's bottom row can ever be invalid, so touch just those rows
    # instead of a full-band compare+select.
    keep_top = jnp.where(i == 0, 0.0, 1.0).astype(jnp.bfloat16)
    keep_bot = jnp.where(i == pl.num_programs(1) - 1, 0.0, 1.0).astype(jnp.bfloat16)
    mid = jnp.concatenate(
        [mid[0:1] * keep_top, mid[1:RM - 1], mid[RM - 1:RM] * keep_bot], axis=0)

    # ---------------- conv2 -> bn2 -> + identity residual -> relu ----------------
    h2 = _conv3x3(mid, TH, w2_ref, Cout)                    # (TH, W, Cout) f32
    res = xb[2:TH + 2].astype(jnp.float32)                  # aligned identity read
    out = jnp.maximum(h2 * s2_ref[...] + b2_ref[...] + res, 0.0)
    o_ref[0] = out.astype(o_ref.dtype)


def _pick_tile_h(H, W, C, budget_bytes=8 * 1024 * 1024):
    """Largest divisor of H whose per-band in-kernel working set fits the budget.

    ~32 bytes per output pixel per channel of intermediates (bf16 K=3C LHS slab,
    f32 3*Cout matmul result, f32 epilogue).  An 8 MiB band keeps the working
    set comfortably inside VMEM on every generation (64 MiB v7x, 128 MiB
    v5e/v6e, minus double-buffered image/weights) while making the matmul M dim
    ((TILE_H+2)*W) large enough to fill the MXU and amortize the ~0.35us
    per-grid-step overhead.
    """
    per_row = 32 * W * max(C, 1)
    for t in range(H, 0, -1):
        if H % t == 0 and (t + 2) * per_row <= budget_bytes:
            return t
    return 1


def _vmem_limit_bytes(H, W, Cin, Cout, tile_h):
    """Scoped-VMEM limit derived from the actual footprint (with 2x margin)."""
    img = (H + 4) * W * Cin * 2                  # resident padded image (bf16)
    wts = (3 * Cin + 3 * Cout) * 3 * Cout * 2    # w1f + w2f (bf16)
    bn = 4 * Cout * 4
    out_band = tile_h * W * Cout * 2
    interm = (tile_h + 2) * W * max(Cin, Cout) * 40
    est = 2 * (img + wts + bn + out_band) + interm   # x2 covers pipeline buffers
    return int(min(60 * 1024 * 1024, max(32 * 1024 * 1024, 2 * est)))


def residual_block(x_nchw, w1, w2, bn1, bn2, eps=1e-5, tile_h=None):
    """Functional equivalent of ResidualBlock(C, C, stride=1, downsample=None).

    x_nchw: (N, C, H, W) f32      w1, w2: (C, C, 3, 3) (PyTorch OIHW)
    bn1/bn2: (gamma, beta, running_mean, running_var), each (C,).
    Returns (N, C, H, W) float32.
    """
    N, Cin, H, W = x_nchw.shape
    Cout = w1.shape[0]
    assert Cin == Cout, "identity residual requires in_channels == out_channels"
    assert w1.shape == (Cout, Cin, 3, 3) and w2.shape == (Cout, Cout, 3, 3)

    if tile_h is None:
        tile_h = _pick_tile_h(H, W, Cout)
    assert H % tile_h == 0
    n_tiles = H // tile_h

    # NCHW -> NHWC; activations to bf16 (native MXU input dtype, halves HBM
    # traffic).  Pad 2 zero rows top/bottom only: the kx column halo is handled
    # in-kernel by shifting the conv partial sums, so no column padding is
    # needed and the residual slice stays aligned.
    x = jnp.transpose(x_nchw, (0, 2, 3, 1)).astype(jnp.bfloat16)
    xp = jnp.pad(x, ((0, 0), (2, 2), (0, 0), (0, 0)))

    # PyTorch OIHW -> (ky*Cin, kx*Cout): ky folded into K, kx folded into N.
    w1f = jnp.transpose(w1, (2, 1, 3, 0)).reshape(3 * Cin, 3 * Cout).astype(jnp.bfloat16)
    w2f = jnp.transpose(w2, (2, 1, 3, 0)).reshape(3 * Cout, 3 * Cout).astype(jnp.bfloat16)

    def fold_bn(p):
        g, b, m, v = (jnp.asarray(t, jnp.float32) for t in p)
        s = g / jnp.sqrt(v + eps)
        return s.reshape(1, Cout), (b - m * s).reshape(1, Cout)

    s1, b1 = fold_bn(bn1)
    s2, b2 = fold_bn(bn2)

    compiler_params = pltpu.CompilerParams(
        # Row tiles are fully independent (no cross-tile accumulator), so both
        # grid axes can be split across TensorCores.
        dimension_semantics=("parallel", "parallel"),
        vmem_limit_bytes=_vmem_limit_bytes(H, W, Cin, Cout, tile_h),
    )

    def call(single_buffer_consts):
        def const_spec(shape):
            if single_buffer_consts:
                # Block index never changes -> double buffering is pure VMEM waste.
                return pl.BlockSpec(shape, lambda b, i: (0,) * len(shape),
                                    pipeline_mode=pl.Buffered(1))
            return pl.BlockSpec(shape, lambda b, i: (0,) * len(shape))

        return pl.pallas_call(
            residual_block_kernel,
            out_shape=jax.ShapeDtypeStruct((N, H, W, Cout), jnp.bfloat16),
            grid_spec=pl.GridSpec(
                grid=(N, n_tiles),
                in_specs=[
                    # Full padded image; index_map ignores the row-tile axis so the
                    # block stays resident in VMEM across the row tiles of an image
                    # (re-DMA'd only when the batch index changes).
                    pl.BlockSpec((1, H + 4, W, Cin), lambda b, i: (b, 0, 0, 0)),
                    const_spec((3 * Cin, 3 * Cout)),
                    const_spec((3 * Cout, 3 * Cout)),
                    const_spec((1, Cout)),
                    const_spec((1, Cout)),
                    const_spec((1, Cout)),
                    const_spec((1, Cout)),
                ],
                out_specs=pl.BlockSpec((1, tile_h, W, Cout),
                                       lambda b, i: (b, i, 0, 0)),
            ),
            compiler_params=compiler_params,
        )(xp, w1f, w2f, s1, b1, s2, b2)

    try:
        out_nhwc = call(True)
    except Exception:
        # pl.Buffered(1) (single buffering) not accepted by this JAX version;
        # fall back to default double buffering of the constant-index inputs.
        out_nhwc = call(False)

    # bf16 kernel output; the cast back to f32 fuses with the layout transpose.
    return jnp.transpose(out_nhwc, (0, 3, 1, 2)).astype(jnp.float32)


def _reference(x, w1, w2, bn1, bn2, eps=1e-5):
    """Pure-JAX reference of the PyTorch forward (eval-mode BN), mirroring the
    kernel's mixed precision: bf16 conv inputs, f32 accumulation, bf16 output."""
    f32 = jnp.float32

    def q(t):
        return t.astype(jnp.bfloat16).astype(f32)

    def conv(y, w):
        return lax.conv_general_dilated(
            q(y), q(w), window_strides=(1, 1), padding=((1, 1), (1, 1)),
            dimension_numbers=("NCHW", "OIHW", "NCHW"))

    def bn(y, p):
        g, b, m, v = (jnp.asarray(t, f32)[None, :, None, None] for t in p)
        return (y - m) / jnp.sqrt(v + eps) * g + b

    xq = q(x)
    out = jax.nn.relu(bn(conv(xq, w1), bn1))
    out = bn(conv(out, w2), bn2)
    return q(jax.nn.relu(out + xq))


if __name__ == "__main__":
    key = jax.random.PRNGKey(0)
    kx_, kw1, kw2, kg1, kb1, km1, kv1, kg2, kb2, km2, kv2 = jax.random.split(key, 11)

    N, C, H, W = 2, 4, 16, 16
    x = jax.random.normal(kx_, (N, C, H, W), jnp.float32)

    w1 = 0.1 * jax.random.normal(kw1, (C, C, 3, 3), jnp.float32)
    w2 = 0.1 * jax.random.normal(kw2, (C, C, 3, 3), jnp.float32)

    bn1 = (1.0 + 0.1 * jax.random.normal(kg1, (C,), jnp.float32),
           0.1 * jax.random.normal(kb1, (C,), jnp.float32),
           0.1 * jax.random.normal(km1, (C,), jnp.float32),
           0.5 + jnp.abs(jax.random.normal(kv1, (C,), jnp.float32)))
    bn2 = (1.0 + 0.1 * jax.random.normal(kg2, (C,), jnp.float32),
           0.1 * jax.random.normal(kb2, (C,), jnp.float32),
           0.1 * jax.random.normal(km2, (C,), jnp.float32),
           0.5 + jnp.abs(jax.random.normal(kv2, (C,), jnp.float32)))

    out = jax.block_until_ready(residual_block(x, w1, w2, bn1, bn2))
    ref = jax.block_until_ready(_reference(x, w1, w2, bn1, bn2))

    assert out.shape == (N, C, H, W)
    assert out.dtype == jnp.float32
    err = jnp.max(jnp.abs(out - ref))
    assert jnp.allclose(out, ref, atol=2e-2, rtol=2e-2), f"max abs err {err}"

    print("KERNEL_OK")
</pallas_src>

<mosaic_0001>
module attributes {stable_mosaic.version = 11 : i64} {
  func.func @residual_block_kernel(%arg0: i32, %arg1: i32, %arg2: memref<1x20x16x4xbf16, #tpu.memory_space<vmem>>, %arg3: memref<12x12xbf16, #tpu.memory_space<vmem>>, %arg4: memref<12x12xbf16, #tpu.memory_space<vmem>>, %arg5: memref<1x4xf32, #tpu.memory_space<vmem>>, %arg6: memref<1x4xf32, #tpu.memory_space<vmem>>, %arg7: memref<1x4xf32, #tpu.memory_space<vmem>>, %arg8: memref<1x4xf32, #tpu.memory_space<vmem>>, %arg9: memref<1x16x16x4xbf16, #tpu.memory_space<vmem>>) attributes {dimension_semantics = [#tpu.dimension_semantics<parallel>, #tpu.dimension_semantics<parallel>], iteration_bounds = array<i64: 2, 1>, scalar_prefetch = 0 : i64, scratch_operands = 0 : i64, tpu.core_type = #tpu.core_type<tc>, window_params = [{transform_indices = @transform_0, window_bounds = array<i64: 1, 20, 16, 4>}, {pipeline_mode = #tpu.pipeline_mode<synchronous>, transform_indices = @transform_1, window_bounds = array<i64: 12, 12>}, {pipeline_mode = #tpu.pipeline_mode<synchronous>, transform_indices = @transform_2, window_bounds = array<i64: 12, 12>}, {pipeline_mode = #tpu.pipeline_mode<synchronous>, transform_indices = @transform_3, window_bounds = array<i64: 1, 4>}, {pipeline_mode = #tpu.pipeline_mode<synchronous>, transform_indices = @transform_4, window_bounds = array<i64: 1, 4>}, {pipeline_mode = #tpu.pipeline_mode<synchronous>, transform_indices = @transform_5, window_bounds = array<i64: 1, 4>}, {pipeline_mode = #tpu.pipeline_mode<synchronous>, transform_indices = @transform_6, window_bounds = array<i64: 1, 4>}, {transform_indices = @transform_7, window_bounds = array<i64: 1, 16, 16, 4>}]} {
    %c16_i32 = arith.constant 16 : i32
    %0 = arith.muli %arg1, %c16_i32 : i32
    %1 = tpu.assume_multiple %0, 16 : i32
    %c0 = arith.constant 0 : index
    %2 = arith.index_cast %1 : i32 to index
    %c0_0 = arith.constant 0 : index
    %c0_1 = arith.constant 0 : index
    %3 = vector.load %arg2[%c0, %2, %c0_0, %c0_1] : memref<1x20x16x4xbf16, #tpu.memory_space<vmem>>, vector<1x20x16x4xbf16>
    %4 = vector.shape_cast %3 : vector<1x20x16x4xbf16> to vector<20x16x4xbf16>
    %5 = vector.extract_strided_slice %4 {offsets = [0, 0, 0], sizes = [18, 16, 4], strides = [1, 1, 1]} : vector<20x16x4xbf16> to vector<18x16x4xbf16>
    %6 = vector.extract_strided_slice %4 {offsets = [1, 0, 0], sizes = [18, 16, 4], strides = [1, 1, 1]} : vector<20x16x4xbf16> to vector<18x16x4xbf16>
    %7 = vector.extract_strided_slice %4 {offsets = [2, 0, 0], sizes = [18, 16, 4], strides = [1, 1, 1]} : vector<20x16x4xbf16> to vector<18x16x4xbf16>
    %8 = tpu.concatenate %5, %6, %7 in 2 : vector<18x16x4xbf16>, vector<18x16x4xbf16>, vector<18x16x4xbf16> -> vector<18x16x12xbf16>
    %9 = vector.shape_cast %8 : vector<18x16x12xbf16> to vector<288x12xbf16>
    %c0_2 = arith.constant 0 : index
    %c0_3 = arith.constant 0 : index
    %10 = vector.load %arg3[%c0_2, %c0_3] : memref<12x12xbf16, #tpu.memory_space<vmem>>, vector<12x12xbf16>
    %cst = arith.constant dense<0.000000e+00> : vector<288x12xf32>
    %11 = tpu.matmul %9, %10, %cst {dimension_numbers = #tpu.dot_dimension_numbers<[1], [0], [0], [1], [0, 0, 1, 1], [], []>} : vector<288x12xbf16>, vector<12x12xbf16>, vector<288x12xf32> -> vector<288x12xf32>
    %12 = vector.extract_strided_slice %11 {offsets = [0, 0], sizes = [288, 4], strides = [1, 1]} : vector<288x12xf32> to vector<288x4xf32>
    %c1_i32 = arith.constant 1 : i32
    %13 = tpu.dynamic_rotate %12 by %c1_i32 dim 0 : vector<288x4xf32>, i32 -> vector<288x4xf32>
    %14 = vector.shape_cast %13 : vector<288x4xf32> to vector<18x16x4xf32>
    %15 = vector.extract_strided_slice %11 {offsets = [0, 4], sizes = [288, 4], strides = [1, 1]} : vector<288x12xf32> to vector<288x4xf32>
    %16 = vector.shape_cast %15 : vector<288x4xf32> to vector<18x16x4xf32>
    %17 = vector.extract_strided_slice %11 {offsets = [0, 8], sizes = [288, 4], strides = [1, 1]} : vector<288x12xf32> to vector<288x4xf32>
    %c287_i32 = arith.constant 287 : i32
    %18 = tpu.dynamic_rotate %17 by %c287_i32 dim 0 : vector<288x4xf32>, i32 -> vector<288x4xf32>
    %19 = vector.shape_cast %18 : vector<288x4xf32> to vector<18x16x4xf32>
    %20 = tpu.iota {dimensions = array<i32: 1>} : vector<18x16x1xi32>
    %c0_i32 = arith.constant 0 : i32
    %21 = vector.broadcast %c0_i32 : i32 to vector<18x16x1xi32>
    %22 = arith.cmpi sgt, %20, %21 : vector<18x16x1xi32>
    %cst_4 = arith.constant 0.000000e+00 : f32
    %23 = vector.shape_cast %22 : vector<18x16x1xi1> to vector<18x16x1xi1>
    %24 = vector.broadcast %23 : vector<18x16x1xi1> to vector<18x16x4xi1>
    %25 = vector.broadcast %cst_4 : f32 to vector<18x16x4xf32>
    %26 = arith.select %24, %14, %25 : vector<18x16x4xi1>, vector<18x16x4xf32>
    %c15_i32 = arith.constant 15 : i32
    %27 = vector.broadcast %c15_i32 : i32 to vector<18x16x1xi32>
    %28 = arith.cmpi slt, %20, %27 : vector<18x16x1xi32>
    %cst_5 = arith.constant 0.000000e+00 : f32
    %29 = vector.shape_cast %28 : vector<18x16x1xi1> to vector<18x16x1xi1>
    %30 = vector.broadcast %29 : vector<18x16x1xi1> to vector<18x16x4xi1>
    %31 = vector.broadcast %cst_5 : f32 to vector<18x16x4xf32>
    %32 = arith.select %30, %19, %31 : vector<18x16x4xi1>, vector<18x16x4xf32>
    %33 = arith.addf %26, %16 : vector<18x16x4xf32>
    %34 = arith.addf %33, %32 : vector<18x16x4xf32>
    %c0_6 = arith.constant 0 : index
    %c0_7 = arith.constant 0 : index
    %35 = vector.load %arg5[%c0_6, %c0_7] : memref<1x4xf32, #tpu.memory_space<vmem>>, vector<1x4xf32>
    %36 = vector.shape_cast %35 : vector<1x4xf32> to vector<1x1x4xf32>
    %37 = vector.broadcast %36 : vector<1x1x4xf32> to vector<18x16x4xf32>
    %38 = arith.mulf %34, %37 : vector<18x16x4xf32>
    %c0_8 = arith.constant 0 : index
    %c0_9 = arith.constant 0 : index
    %39 = vector.load %arg6[%c0_8, %c0_9] : memref<1x4xf32, #tpu.memory_space<vmem>>, vector<1x4xf32>
    %40 = vector.shape_cast %39 : vector<1x4xf32> to vector<1x1x4xf32>
    %41 = vector.broadcast %40 : vector<1x1x4xf32> to vector<18x16x4xf32>
    %42 = arith.addf %38, %41 : vector<18x16x4xf32>
    %cst_10 = arith.constant 0.000000e+00 : f32
    %43 = vector.broadcast %cst_10 : f32 to vector<18x16x4xf32>
    %44 = arith.maximumf %42, %43 : vector<18x16x4xf32>
    %45 = arith.truncf %44 : vector<18x16x4xf32> to vector<18x16x4xbf16>
    %c0_i32_11 = arith.constant 0 : i32
    %46 = arith.cmpi eq, %arg1, %c0_i32_11 : i32
    %cst_12 = arith.constant 0.000000e+00 : f32
    %cst_13 = arith.constant 1.000000e+00 : f32
    %47 = arith.select %46, %cst_12, %cst_13 : f32
    %48 = arith.truncf %47 : f32 to bf16
    %c0_i32_14 = arith.constant 0 : i32
    %49 = arith.cmpi eq, %arg1, %c0_i32_14 : i32
    %cst_15 = arith.constant 0.000000e+00 : f32
    %cst_16 = arith.constant 1.000000e+00 : f32
    %50 = arith.select %49, %cst_15, %cst_16 : f32
    %51 = arith.truncf %50 : f32 to bf16
    %52 = vector.extract_strided_slice %45 {offsets = [0, 0, 0], sizes = [1, 16, 4], strides = [1, 1, 1]} : vector<18x16x4xbf16> to vector<1x16x4xbf16>
    %53 = vector.broadcast %48 : bf16 to vector<1x16x4xbf16>
    %54 = arith.mulf %52, %53 : vector<1x16x4xbf16>
    %55 = vector.extract_strided_slice %45 {offsets = [1, 0, 0], sizes = [16, 16, 4], strides = [1, 1, 1]} : vector<18x16x4xbf16> to vector<16x16x4xbf16>
    %56 = vector.extract_strided_slice %45 {offsets = [17, 0, 0], sizes = [1, 16, 4], strides = [1, 1, 1]} : vector<18x16x4xbf16> to vector<1x16x4xbf16>
    %57 = vector.broadcast %51 : bf16 to vector<1x16x4xbf16>
    %58 = arith.mulf %56, %57 : vector<1x16x4xbf16>
    %59 = tpu.concatenate %54, %55, %58 in 0 : vector<1x16x4xbf16>, vector<16x16x4xbf16>, vector<1x16x4xbf16> -> vector<18x16x4xbf16>
    %60 = vector.extract_strided_slice %59 {offsets = [0, 0, 0], sizes = [16, 16, 4], strides = [1, 1, 1]} : vector<18x16x4xbf16> to vector<16x16x4xbf16>
    %61 = vector.extract_strided_slice %59 {offsets = [1, 0, 0], sizes = [16, 16, 4], strides = [1, 1, 1]} : vector<18x16x4xbf16> to vector<16x16x4xbf16>
    %62 = vector.extract_strided_slice %59 {offsets = [2, 0, 0], sizes = [16, 16, 4], strides = [1, 1, 1]} : vector<18x16x4xbf16> to vector<16x16x4xbf16>
    %63 = tpu.concatenate %60, %61, %62 in 2 : vector<16x16x4xbf16>, vector<16x16x4xbf16>, vector<16x16x4xbf16> -> vector<16x16x12xbf16>
    %64 = vector.shape_cast %63 : vector<16x16x12xbf16> to vector<256x12xbf16>
    %c0_17 = arith.constant 0 : index
    %c0_18 = arith.constant 0 : index
    %65 = vector.load %arg4[%c0_17, %c0_18] : memref<12x12xbf16, #tpu.memory_space<vmem>>, vector<12x12xbf16>
    %cst_19 = arith.constant dense<0.000000e+00> : vector<256x12xf32>
    %66 = tpu.matmul %64, %65, %cst_19 {dimension_numbers = #tpu.dot_dimension_numbers<[1], [0], [0], [1], [0, 0, 1, 1], [], []>} : vector<256x12xbf16>, vector<12x12xbf16>, vector<256x12xf32> -> vector<256x12xf32>
    %67 = vector.extract_strided_slice %66 {offsets = [0, 0], sizes = [256, 4], strides = [1, 1]} : vector<256x12xf32> to vector<256x4xf32>
    %c1_i32_20 = arith.constant 1 : i32
    %68 = tpu.dynamic_rotate %67 by %c1_i32_20 dim 0 : vector<256x4xf32>, i32 -> vector<256x4xf32>
    %69 = vector.shape_cast %68 : vector<256x4xf32> to vector<16x16x4xf32>
    %70 = vector.extract_strided_slice %66 {offsets = [0, 4], sizes = [256, 4], strides = [1, 1]} : vector<256x12xf32> to vector<256x4xf32>
    %71 = vector.shape_cast %70 : vector<256x4xf32> to vector<16x16x4xf32>
    %72 = vector.extract_strided_slice %66 {offsets = [0, 8], sizes = [256, 4], strides = [1, 1]} : vector<256x12xf32> to vector<256x4xf32>
    %c255_i32 = arith.constant 255 : i32
    %73 = tpu.dynamic_rotate %72 by %c255_i32 dim 0 : vector<256x4xf32>, i32 -> vector<256x4xf32>
    %74 = vector.shape_cast %73 : vector<256x4xf32> to vector<16x16x4xf32>
    %75 = tpu.iota {dimensions = array<i32: 1>} : vector<16x16x1xi32>
    %c0_i32_21 = arith.constant 0 : i32
    %76 = vector.broadcast %c0_i32_21 : i32 to vector<16x16x1xi32>
    %77 = arith.cmpi sgt, %75, %76 : vector<16x16x1xi32>
    %cst_22 = arith.constant 0.000000e+00 : f32
    %78 = vector.shape_cast %77 : vector<16x16x1xi1> to vector<16x16x1xi1>
    %79 = vector.broadcast %78 : vector<16x16x1xi1> to vector<16x16x4xi1>
    %80 = vector.broadcast %cst_22 : f32 to vector<16x16x4xf32>
    %81 = arith.select %79, %69, %80 : vector<16x16x4xi1>, vector<16x16x4xf32>
    %c15_i32_23 = arith.constant 15 : i32
    %82 = vector.broadcast %c15_i32_23 : i32 to vector<16x16x1xi32>
    %83 = arith.cmpi slt, %75, %82 : vector<16x16x1xi32>
    %cst_24 = arith.constant 0.000000e+00 : f32
    %84 = vector.shape_cast %83 : vector<16x16x1xi1> to vector<16x16x1xi1>
    %85 = vector.broadcast %84 : vector<16x16x1xi1> to vector<16x16x4xi1>
    %86 = vector.broadcast %cst_24 : f32 to vector<16x16x4xf32>
    %87 = arith.select %85, %74, %86 : vector<16x16x4xi1>, vector<16x16x4xf32>
    %88 = arith.addf %81, %71 : vector<16x16x4xf32>
    %89 = arith.addf %88, %87 : vector<16x16x4xf32>
    %90 = vector.extract_strided_slice %4 {offsets = [2, 0, 0], sizes = [16, 16, 4], strides = [1, 1, 1]} : vector<20x16x4xbf16> to vector<16x16x4xbf16>
    %91 = arith.extf %90 : vector<16x16x4xbf16> to vector<16x16x4xf32>
    %c0_25 = arith.constant 0 : index
    %c0_26 = arith.constant 0 : index
    %92 = vector.load %arg7[%c0_25, %c0_26] : memref<1x4xf32, #tpu.memory_space<vmem>>, vector<1x4xf32>
    %93 = vector.shape_cast %92 : vector<1x4xf32> to vector<1x1x4xf32>
    %94 = vector.broadcast %93 : vector<1x1x4xf32> to vector<16x16x4xf32>
    %95 = arith.mulf %89, %94 : vector<16x16x4xf32>
    %c0_27 = arith.constant 0 : index
    %c0_28 = arith.constant 0 : index
    %96 = vector.load %arg8[%c0_27, %c0_28] : memref<1x4xf32, #tpu.memory_space<vmem>>, vector<1x4xf32>
    %97 = vector.shape_cast %96 : vector<1x4xf32> to vector<1x1x4xf32>
    %98 = vector.broadcast %97 : vector<1x1x4xf32> to vector<16x16x4xf32>
    %99 = arith.addf %95, %98 : vector<16x16x4xf32>
    %100 = arith.addf %99, %91 : vector<16x16x4xf32>
    %cst_29 = arith.constant 0.000000e+00 : f32
    %101 = vector.broadcast %cst_29 : f32 to vector<16x16x4xf32>
    %102 = arith.maximumf %100, %101 : vector<16x16x4xf32>
    %103 = arith.truncf %102 : vector<16x16x4xf32> to vector<16x16x4xbf16>
    %c0_30 = arith.constant 0 : index
    %c0_31 = arith.constant 0 : index
    %c0_32 = arith.constant 0 : index
    %c0_33 = arith.constant 0 : index
    %104 = vector.load %arg9[%c0_30, %c0_31, %c0_32, %c0_33] : memref<1x16x16x4xbf16, #tpu.memory_space<vmem>>, vector<1x16x16x4xbf16>
    %105 = vector.shape_cast %104 : vector<1x16x16x4xbf16> to vector<16x16x4xbf16>
    %106 = vector.shape_cast %103 : vector<16x16x4xbf16> to vector<1x16x16x4xbf16>
    tpu.vector_store %arg9[%c0_30, %c0_31, %c0_32, %c0_33], %106 {strides = array<i32>} : memref<1x16x16x4xbf16, #tpu.memory_space<vmem>>, vector<1x16x16x4xbf16>,
    return
  }
  func.func @transform_0(%arg0: i32, %arg1: i32) -> (i32, i32, i32, i32) {
    %c0_i32 = arith.constant 0 : i32
    %c0_i32_0 = arith.constant 0 : i32
    %c0_i32_1 = arith.constant 0 : i32
    %c0_i32_2 = arith.constant 0 : i32
    return %arg0, %c0_i32, %c0_i32_0, %c0_i32_1 : i32, i32, i32, i32
  }
  func.func @transform_1(%arg0: i32, %arg1: i32) -> (i32, i32) {
    %c0_i32 = arith.constant 0 : i32
    %c0_i32_0 = arith.constant 0 : i32
    %c0_i32_1 = arith.constant 0 : i32
    return %c0_i32, %c0_i32_0 : i32, i32
  }
  func.func @transform_2(%arg0: i32, %arg1: i32) -> (i32, i32) {
    %c0_i32 = arith.constant 0 : i32
    %c0_i32_0 = arith.constant 0 : i32
    %c0_i32_1 = arith.constant 0 : i32
    return %c0_i32, %c0_i32_0 : i32, i32
  }
  func.func @transform_3(%arg0: i32, %arg1: i32) -> (i32, i32) {
    %c0_i32 = arith.constant 0 : i32
    %c0_i32_0 = arith.constant 0 : i32
    %c0_i32_1 = arith.constant 0 : i32
    return %c0_i32, %c0_i32_0 : i32, i32
  }
  func.func @transform_4(%arg0: i32, %arg1: i32) -> (i32, i32) {
    %c0_i32 = arith.constant 0 : i32
    %c0_i32_0 = arith.constant 0 : i32
    %c0_i32_1 = arith.constant 0 : i32
    return %c0_i32, %c0_i32_0 : i32, i32
  }
  func.func @transform_5(%arg0: i32, %arg1: i32) -> (i32, i32) {
    %c0_i32 = arith.constant 0 : i32
    %c0_i32_0 = arith.constant 0 : i32
    %c0_i32_1 = arith.constant 0 : i32
    return %c0_i32, %c0_i32_0 : i32, i32
  }
  func.func @transform_6(%arg0: i32, %arg1: i32) -> (i32, i32) {
    %c0_i32 = arith.constant 0 : i32
    %c0_i32_0 = arith.constant 0 : i32
    %c0_i32_1 = arith.constant 0 : i32
    return %c0_i32, %c0_i32_0 : i32, i32
  }
  func.func @transform_7(%arg0: i32, %arg1: i32) -> (i32, i32, i32, i32) {
    %c0_i32 = arith.constant 0 : i32
    %c0_i32_0 = arith.constant 0 : i32
    %c0_i32_1 = arith.constant 0 : i32
    return %arg0, %arg1, %c0_i32, %c0_i32_0 : i32, i32, i32, i32
  }
}

module attributes {stable_mosaic.version = 11 : i64} {
  func.func @residual_block_kernel(%arg0: i32, %arg1: i32, %arg2: memref<1x20x16x4xbf16, #tpu.memory_space<vmem>>, %arg3: memref<12x12xbf16, #tpu.memory_space<vmem>>, %arg4: memref<12x12xbf16, #tpu.memory_space<vmem>>, %arg5: memref<1x4xf32, #tpu.memory_space<vmem>>, %arg6: memref<1x4xf32, #tpu.memory_space<vmem>>, %arg7: memref<1x4xf32, #tpu.memory_space<vmem>>, %arg8: memref<1x4xf32, #tpu.memory_space<vmem>>, %arg9: memref<1x16x16x4xbf16, #tpu.memory_space<vmem>>) attributes {dimension_semantics = [#tpu.dimension_semantics<parallel>, #tpu.dimension_semantics<parallel>], iteration_bounds = array<i64: 2, 1>, scalar_prefetch = 0 : i64, scratch_operands = 0 : i64, tpu.core_type = #tpu.core_type<tc>, window_params = [{transform_indices = @transform_0, window_bounds = array<i64: 1, 20, 16, 4>}, {pipeline_mode = #tpu.pipeline_mode<synchronous>, transform_indices = @transform_1, window_bounds = array<i64: 12, 12>}, {pipeline_mode = #tpu.pipeline_mode<synchronous>, transform_indices = @transform_2, window_bounds = array<i64: 12, 12>}, {pipeline_mode = #tpu.pipeline_mode<synchronous>, transform_indices = @transform_3, window_bounds = array<i64: 1, 4>}, {pipeline_mode = #tpu.pipeline_mode<synchronous>, transform_indices = @transform_4, window_bounds = array<i64: 1, 4>}, {pipeline_mode = #tpu.pipeline_mode<synchronous>, transform_indices = @transform_5, window_bounds = array<i64: 1, 4>}, {pipeline_mode = #tpu.pipeline_mode<synchronous>, transform_indices = @transform_6, window_bounds = array<i64: 1, 4>}, {transform_indices = @transform_7, window_bounds = array<i64: 1, 16, 16, 4>}]} {
    %c16_i32 = arith.constant 16 : i32
    %0 = arith.muli %arg1, %c16_i32 : i32
    %1 = tpu.assume_multiple %0, 16 : i32
    %c0 = arith.constant 0 : index
    %2 = arith.index_cast %1 : i32 to index
    %c0_0 = arith.constant 0 : index
    %c0_1 = arith.constant 0 : index
    %3 = vector.load %arg2[%c0, %2, %c0_0, %c0_1] : memref<1x20x16x4xbf16, #tpu.memory_space<vmem>>, vector<1x20x16x4xbf16>
    %4 = vector.shape_cast %3 : vector<1x20x16x4xbf16> to vector<20x16x4xbf16>
    %5 = vector.extract_strided_slice %4 {offsets = [0, 0, 0], sizes = [18, 16, 4], strides = [1, 1, 1]} : vector<20x16x4xbf16> to vector<18x16x4xbf16>
    %6 = vector.extract_strided_slice %4 {offsets = [1, 0, 0], sizes = [18, 16, 4], strides = [1, 1, 1]} : vector<20x16x4xbf16> to vector<18x16x4xbf16>
    %7 = vector.extract_strided_slice %4 {offsets = [2, 0, 0], sizes = [18, 16, 4], strides = [1, 1, 1]} : vector<20x16x4xbf16> to vector<18x16x4xbf16>
    %8 = tpu.concatenate %5, %6, %7 in 2 : vector<18x16x4xbf16>, vector<18x16x4xbf16>, vector<18x16x4xbf16> -> vector<18x16x12xbf16>
    %9 = vector.shape_cast %8 : vector<18x16x12xbf16> to vector<288x12xbf16>
    %c0_2 = arith.constant 0 : index
    %c0_3 = arith.constant 0 : index
    %10 = vector.load %arg3[%c0_2, %c0_3] : memref<12x12xbf16, #tpu.memory_space<vmem>>, vector<12x12xbf16>
    %cst = arith.constant dense<0.000000e+00> : vector<288x12xf32>
    %11 = tpu.matmul %9, %10, %cst {dimension_numbers = #tpu.dot_dimension_numbers<[1], [0], [0], [1], [0, 0, 1, 1], [], []>} : vector<288x12xbf16>, vector<12x12xbf16>, vector<288x12xf32> -> vector<288x12xf32>
    %12 = vector.extract_strided_slice %11 {offsets = [0, 0], sizes = [288, 4], strides = [1, 1]} : vector<288x12xf32> to vector<288x4xf32>
    %c1_i32 = arith.constant 1 : i32
    %13 = tpu.dynamic_rotate %12 by %c1_i32 dim 0 : vector<288x4xf32>, i32 -> vector<288x4xf32>
    %14 = vector.shape_cast %13 : vector<288x4xf32> to vector<18x16x4xf32>
    %15 = vector.extract_strided_slice %11 {offsets = [0, 4], sizes = [288, 4], strides = [1, 1]} : vector<288x12xf32> to vector<288x4xf32>
    %16 = vector.shape_cast %15 : vector<288x4xf32> to vector<18x16x4xf32>
    %17 = vector.extract_strided_slice %11 {offsets = [0, 8], sizes = [288, 4], strides = [1, 1]} : vector<288x12xf32> to vector<288x4xf32>
    %c287_i32 = arith.constant 287 : i32
    %18 = tpu.dynamic_rotate %17 by %c287_i32 dim 0 : vector<288x4xf32>, i32 -> vector<288x4xf32>
    %19 = vector.shape_cast %18 : vector<288x4xf32> to vector<18x16x4xf32>
    %20 = tpu.iota {dimensions = array<i32: 1>} : vector<18x16x1xi32>
    %c0_i32 = arith.constant 0 : i32
    %21 = vector.broadcast %c0_i32 : i32 to vector<18x16x1xi32>
    %22 = arith.cmpi sgt, %20, %21 : vector<18x16x1xi32>
    %cst_4 = arith.constant 0.000000e+00 : f32
    %23 = vector.shape_cast %22 : vector<18x16x1xi1> to vector<18x16x1xi1>
    %24 = vector.broadcast %23 : vector<18x16x1xi1> to vector<18x16x4xi1>
    %25 = vector.broadcast %cst_4 : f32 to vector<18x16x4xf32>
    %26 = arith.select %24, %14, %25 : vector<18x16x4xi1>, vector<18x16x4xf32>
    %c15_i32 = arith.constant 15 : i32
    %27 = vector.broadcast %c15_i32 : i32 to vector<18x16x1xi32>
    %28 = arith.cmpi slt, %20, %27 : vector<18x16x1xi32>
    %cst_5 = arith.constant 0.000000e+00 : f32
    %29 = vector.shape_cast %28 : vector<18x16x1xi1> to vector<18x16x1xi1>
    %30 = vector.broadcast %29 : vector<18x16x1xi1> to vector<18x16x4xi1>
    %31 = vector.broadcast %cst_5 : f32 to vector<18x16x4xf32>
    %32 = arith.select %30, %19, %31 : vector<18x16x4xi1>, vector<18x16x4xf32>
    %33 = arith.addf %26, %16 : vector<18x16x4xf32>
    %34 = arith.addf %33, %32 : vector<18x16x4xf32>
    %c0_6 = arith.constant 0 : index
    %c0_7 = arith.constant 0 : index
    %35 = vector.load %arg5[%c0_6, %c0_7] : memref<1x4xf32, #tpu.memory_space<vmem>>, vector<1x4xf32>
    %36 = vector.shape_cast %35 : vector<1x4xf32> to vector<1x1x4xf32>
    %37 = vector.broadcast %36 : vector<1x1x4xf32> to vector<18x16x4xf32>
    %38 = arith.mulf %34, %37 : vector<18x16x4xf32>
    %c0_8 = arith.constant 0 : index
    %c0_9 = arith.constant 0 : index
    %39 = vector.load %arg6[%c0_8, %c0_9] : memref<1x4xf32, #tpu.memory_space<vmem>>, vector<1x4xf32>
    %40 = vector.shape_cast %39 : vector<1x4xf32> to vector<1x1x4xf32>
    %41 = vector.broadcast %40 : vector<1x1x4xf32> to vector<18x16x4xf32>
    %42 = arith.addf %38, %41 : vector<18x16x4xf32>
    %cst_10 = arith.constant 0.000000e+00 : f32
    %43 = vector.broadcast %cst_10 : f32 to vector<18x16x4xf32>
    %44 = arith.maximumf %42, %43 : vector<18x16x4xf32>
    %45 = arith.truncf %44 : vector<18x16x4xf32> to vector<18x16x4xbf16>
    %c0_i32_11 = arith.constant 0 : i32
    %46 = arith.cmpi eq, %arg1, %c0_i32_11 : i32
    %cst_12 = arith.constant 0.000000e+00 : f32
    %cst_13 = arith.constant 1.000000e+00 : f32
    %47 = arith.select %46, %cst_12, %cst_13 : f32
    %48 = arith.truncf %47 : f32 to bf16
    %c0_i32_14 = arith.constant 0 : i32
    %49 = arith.cmpi eq, %arg1, %c0_i32_14 : i32
    %cst_15 = arith.constant 0.000000e+00 : f32
    %cst_16 = arith.constant 1.000000e+00 : f32
    %50 = arith.select %49, %cst_15, %cst_16 : f32
    %51 = arith.truncf %50 : f32 to bf16
    %52 = vector.extract_strided_slice %45 {offsets = [0, 0, 0], sizes = [1, 16, 4], strides = [1, 1, 1]} : vector<18x16x4xbf16> to vector<1x16x4xbf16>
    %53 = vector.broadcast %48 : bf16 to vector<1x16x4xbf16>
    %54 = arith.mulf %52, %53 : vector<1x16x4xbf16>
    %55 = vector.extract_strided_slice %45 {offsets = [1, 0, 0], sizes = [16, 16, 4], strides = [1, 1, 1]} : vector<18x16x4xbf16> to vector<16x16x4xbf16>
    %56 = vector.extract_strided_slice %45 {offsets = [17, 0, 0], sizes = [1, 16, 4], strides = [1, 1, 1]} : vector<18x16x4xbf16> to vector<1x16x4xbf16>
    %57 = vector.broadcast %51 : bf16 to vector<1x16x4xbf16>
    %58 = arith.mulf %56, %57 : vector<1x16x4xbf16>
    %59 = tpu.concatenate %54, %55, %58 in 0 : vector<1x16x4xbf16>, vector<16x16x4xbf16>, vector<1x16x4xbf16> -> vector<18x16x4xbf16>
    %60 = vector.extract_strided_slice %59 {offsets = [0, 0, 0], sizes = [16, 16, 4], strides = [1, 1, 1]} : vector<18x16x4xbf16> to vector<16x16x4xbf16>
    %61 = vector.extract_strided_slice %59 {offsets = [1, 0, 0], sizes = [16, 16, 4], strides = [1, 1, 1]} : vector<18x16x4xbf16> to vector<16x16x4xbf16>
    %62 = vector.extract_strided_slice %59 {offsets = [2, 0, 0], sizes = [16, 16, 4], strides = [1, 1, 1]} : vector<18x16x4xbf16> to vector<16x16x4xbf16>
    %63 = tpu.concatenate %60, %61, %62 in 2 : vector<16x16x4xbf16>, vector<16x16x4xbf16>, vector<16x16x4xbf16> -> vector<16x16x12xbf16>
    %64 = vector.shape_cast %63 : vector<16x16x12xbf16> to vector<256x12xbf16>
    %c0_17 = arith.constant 0 : index
    %c0_18 = arith.constant 0 : index
    %65 = vector.load %arg4[%c0_17, %c0_18] : memref<12x12xbf16, #tpu.memory_space<vmem>>, vector<12x12xbf16>
    %cst_19 = arith.constant dense<0.000000e+00> : vector<256x12xf32>
    %66 = tpu.matmul %64, %65, %cst_19 {dimension_numbers = #tpu.dot_dimension_numbers<[1], [0], [0], [1], [0, 0, 1, 1], [], []>} : vector<256x12xbf16>, vector<12x12xbf16>, vector<256x12xf32> -> vector<256x12xf32>
    %67 = vector.extract_strided_slice %66 {offsets = [0, 0], sizes = [256, 4], strides = [1, 1]} : vector<256x12xf32> to vector<256x4xf32>
    %c1_i32_20 = arith.constant 1 : i32
    %68 = tpu.dynamic_rotate %67 by %c1_i32_20 dim 0 : vector<256x4xf32>, i32 -> vector<256x4xf32>
    %69 = vector.shape_cast %68 : vector<256x4xf32> to vector<16x16x4xf32>
    %70 = vector.extract_strided_slice %66 {offsets = [0, 4], sizes = [256, 4], strides = [1, 1]} : vector<256x12xf32> to vector<256x4xf32>
    %71 = vector.shape_cast %70 : vector<256x4xf32> to vector<16x16x4xf32>
    %72 = vector.extract_strided_slice %66 {offsets = [0, 8], sizes = [256, 4], strides = [1, 1]} : vector<256x12xf32> to vector<256x4xf32>
    %c255_i32 = arith.constant 255 : i32
    %73 = tpu.dynamic_rotate %72 by %c255_i32 dim 0 : vector<256x4xf32>, i32 -> vector<256x4xf32>
    %74 = vector.shape_cast %73 : vector<256x4xf32> to vector<16x16x4xf32>
    %75 = tpu.iota {dimensions = array<i32: 1>} : vector<16x16x1xi32>
    %c0_i32_21 = arith.constant 0 : i32
    %76 = vector.broadcast %c0_i32_21 : i32 to vector<16x16x1xi32>
    %77 = arith.cmpi sgt, %75, %76 : vector<16x16x1xi32>
    %cst_22 = arith.constant 0.000000e+00 : f32
    %78 = vector.shape_cast %77 : vector<16x16x1xi1> to vector<16x16x1xi1>
    %79 = vector.broadcast %78 : vector<16x16x1xi1> to vector<16x16x4xi1>
    %80 = vector.broadcast %cst_22 : f32 to vector<16x16x4xf32>
    %81 = arith.select %79, %69, %80 : vector<16x16x4xi1>, vector<16x16x4xf32>
    %c15_i32_23 = arith.constant 15 : i32
    %82 = vector.broadcast %c15_i32_23 : i32 to vector<16x16x1xi32>
    %83 = arith.cmpi slt, %75, %82 : vector<16x16x1xi32>
    %cst_24 = arith.constant 0.000000e+00 : f32
    %84 = vector.shape_cast %83 : vector<16x16x1xi1> to vector<16x16x1xi1>
    %85 = vector.broadcast %84 : vector<16x16x1xi1> to vector<16x16x4xi1>
    %86 = vector.broadcast %cst_24 : f32 to vector<16x16x4xf32>
    %87 = arith.select %85, %74, %86 : vector<16x16x4xi1>, vector<16x16x4xf32>
    %88 = arith.addf %81, %71 : vector<16x16x4xf32>
    %89 = arith.addf %88, %87 : vector<16x16x4xf32>
    %90 = vector.extract_strided_slice %4 {offsets = [2, 0, 0], sizes = [16, 16, 4], strides = [1, 1, 1]} : vector<20x16x4xbf16> to vector<16x16x4xbf16>
    %91 = arith.extf %90 : vector<16x16x4xbf16> to vector<16x16x4xf32>
    %c0_25 = arith.constant 0 : index
    %c0_26 = arith.constant 0 : index
    %92 = vector.load %arg7[%c0_25, %c0_26] : memref<1x4xf32, #tpu.memory_space<vmem>>, vector<1x4xf32>
    %93 = vector.shape_cast %92 : vector<1x4xf32> to vector<1x1x4xf32>
    %94 = vector.broadcast %93 : vector<1x1x4xf32> to vector<16x16x4xf32>
    %95 = arith.mulf %89, %94 : vector<16x16x4xf32>
    %c0_27 = arith.constant 0 : index
    %c0_28 = arith.constant 0 : index
    %96 = vector.load %arg8[%c0_27, %c0_28] : memref<1x4xf32, #tpu.memory_space<vmem>>, vector<1x4xf32>
    %97 = vector.shape_cast %96 : vector<1x4xf32> to vector<1x1x4xf32>
    %98 = vector.broadcast %97 : vector<1x1x4xf32> to vector<16x16x4xf32>
    %99 = arith.addf %95, %98 : vector<16x16x4xf32>
    %100 = arith.addf %99, %91 : vector<16x16x4xf32>
    %cst_29 = arith.constant 0.000000e+00 : f32
    %101 = vector.broadcast %cst_29 : f32 to vector<16x16x4xf32>
    %102 = arith.maximumf %100, %101 : vector<16x16x4xf32>
    %103 = arith.truncf %102 : vector<16x16x4xf32> to vector<16x16x4xbf16>
    %c0_30 = arith.constant 0 : index
    %c0_31 = arith.constant 0 : index
    %c0_32 = arith.constant 0 : index
    %c0_33 = arith.constant 0 : index
    %104 = vector.load %arg9[%c0_30, %c0_31, %c0_32, %c0_33] : memref<1x16x16x4xbf16, #tpu.memory_space<vmem>>, vector<1x16x16x4xbf16>
    %105 = vector.shape_cast %104 : vector<1x16x16x4xbf16> to vector<16x16x4xbf16>
    %106 = vector.shape_cast %103 : vector<16x16x4xbf16> to vector<1x16x16x4xbf16>
    tpu.vector_store %arg9[%c0_30, %c0_31, %c0_32, %c0_33], %106 {strides = array<i32>} : memref<1x16x16x4xbf16, #tpu.memory_space<vmem>>, vector<1x16x16x4xbf16>,
    return
  }
  func.func @transform_0(%arg0: i32, %arg1: i32) -> (i32, i32, i32, i32) {
    %c0_i32 = arith.constant 0 : i32
    %c0_i32_0 = arith.constant 0 : i32
    %c0_i32_1 = arith.constant 0 : i32
    %c0_i32_2 = arith.constant 0 : i32
    return %arg0, %c0_i32, %c0_i32_0, %c0_i32_1 : i32, i32, i32, i32
  }
  func.func @transform_1(%arg0: i32, %arg1: i32) -> (i32, i32) {
    %c0_i32 = arith.constant 0 : i32
    %c0_i32_0 = arith.constant 0 : i32
    %c0_i32_1 = arith.constant 0 : i32
    return %c0_i32, %c0_i32_0 : i32, i32
  }
  func.func @transform_2(%arg0: i32, %arg1: i32) -> (i32, i32) {
    %c0_i32 = arith.constant 0 : i32
    %c0_i32_0 = arith.constant 0 : i32
    %c0_i32_1 = arith.constant 0 : i32
    return %c0_i32, %c0_i32_0 : i32, i32
  }
  func.func @transform_3(%arg0: i32, %arg1: i32) -> (i32, i32) {
    %c0_i32 = arith.constant 0 : i32
    %c0_i32_0 = arith.constant 0 : i32
    %c0_i32_1 = arith.constant 0 : i32
    return %c0_i32, %c0_i32_0 : i32, i32
  }
  func.func @transform_4(%arg0: i32, %arg1: i32) -> (i32, i32) {
    %c0_i32 = arith.constant 0 : i32
    %c0_i32_0 = arith.constant 0 : i32
    %c0_i32_1 = arith.constant 0 : i32
    return %c0_i32, %c0_i32_0 : i32, i32
  }
  func.func @transform_5(%arg0: i32, %arg1: i32) -> (i32, i32) {
    %c0_i32 = arith.constant 0 : i32
    %c0_i32_0 = arith.constant 0 : i32
    %c0_i32_1 = arith.constant 0 : i32
    return %c0_i32, %c0_i32_0 : i32, i32
  }
  func.func @transform_6(%arg0: i32, %arg1: i32) -> (i32, i32) {
    %c0_i32 = arith.constant 0 : i32
    %c0_i32_0 = arith.constant 0 : i32
    %c0_i32_1 = arith.constant 0 : i32
    return %c0_i32, %c0_i32_0 : i32, i32
  }
  func.func @transform_7(%arg0: i32, %arg1: i32) -> (i32, i32, i32, i32) {
    %c0_i32 = arith.constant 0 : i32
    %c0_i32_0 = arith.constant 0 : i32
    %c0_i32_1 = arith.constant 0 : i32
    return %arg0, %arg1, %c0_i32, %c0_i32_0 : i32, i32, i32, i32
  }
}

</mosaic_0001>

<bundles_post_ra>
// kernel: tpu_custom_call.1
= control target key start
LH: loop header
LB: loop body
LE: loop exit
PB: predicated region body
PF: predicated region fallthrough
CT: control target
= control target key end

     0   :  { %s3217_s24 = smov 0   ;;  %s3219_s25 = smov 0   ;;  %s4798_s0 = inlined_call_operand.vmem [shape: bf16[2,20,16,4], index: 0, kind: input, shape index: {}]   ;;  %s4799_s1 = inlined_call_operand.vmem [shape: bf16[12,12], index: 1, kind: input, shape index: {}]   ;;  %s4800_s2 = inlined_call_operand.vmem [shape: bf16[12,12], index: 2, kind: input, shape index: {}]   ;;  %s4801_s3 = inlined_call_operand.vmem [shape: f32[1,4], index: 3, kind: input, shape index: {}]   ;;  %s4802_s4 = inlined_call_operand.vmem [shape: f32[1,4], index: 4, kind: input, shape index: {}]   ;;  %s4803_s5 = inlined_call_operand.vmem [shape: f32[1,4], index: 5, kind: input, shape index: {}]   ;;  %s4804_s6 = inlined_call_operand.vmem [shape: f32[1,4], index: 6, kind: input, shape index: {}]   ;;  %s4805_s7 = inlined_call_operand.vmem [shape: bf16[2,16,16,4], index: 7, kind: output, shape index: {}]  }
   0x1   :  { %s3221_s26 = smov 0  }
   0x2 LB: > { %s29_s27 = sadd.s32 1, %s3167_s25  ;;  %p2825_p0 = scmp.ge.s32.totalorder %s3171_s26, 1  ;;  %s3171_s26 = sphi %s3221_s26, %s17_s26   ;;  %s3167_s25 = sphi %s3219_s25, %s4807_s25   ;;  %s3163_s24 = sphi %s3217_s24, %s4806_s24  }
   0x3   : > { %p31_p1 = scmp.ge.s32.totalorder %s29_s27, 2  ;;  %p251_p2 = scmp.lt.s32.totalorder %s3171_s26, 3 }
   0x5   : > { %s4809_s27 = smov (%p31_p1, %s29_s27), 0  ;;  %p252_p3 = pnand %p2825_p0, %p251_p2 }
   0x6   : > { %p288_p4 = scmp.lt.s32.totalorder (!%p252_p3), %s3163_s24, 1  ;;  %vm657_vm0 = vcmask (!%p252_p3), 1045504   ;;  %v3115_v0 = vld [vmem:[%s4799_s1] sm:$0x3f] (!%p252_p3)   ;;  %s3173_s11 = smov (!%p252_p3), 4   ;;  %vm521_vm1 = vcmask (!%p252_p3), 31744  }
   0x7   : > { %255 = sbr.rel (%p252_p3) target bundleno = 1102 (0x44e), region = 48  ;;  %3064 = vmatprep.subr.msk.bf16.mxu0 (!%p252_p3), %vm657_vm0, %v3115_v0  ;;  %v659_v1 = vsel (!%p252_p3), %vm657_vm0, %v3115_v0, 0  ;;  %s3174_s12 = smov (!%p252_p3), 8   ;;  %vm576_vm2 = vcmask (!%p252_p3), 64512   ;;  %vm620_vm3 = vcmask (!%p252_p3), 97280   ;;  %vm2699_vm8 = vcmask (!%p252_p3), 27648  }
   0x8   : > { %2993 = vmatpush3.bf16.msra.mxu0 (!%p252_p3), %v659_v1  ;;  %s3175_s13 = smov (!%p252_p3), 124   ;;  %s3176_s14 = smov (!%p252_p3), 120  }
   0xe   : > { %s4811_s24 = smov (!%p288_p4, %s3163_s24), 1 }
   0xf   : > { %s3066_s30 = smul.u32 160, %s4811_s24  ;;  %s2923_s29 = sshll.u32 %s4811_s24, 7 }
  0x10   : > { %s4413_s9 = scalar_lea.vmem %s4805_s7, %s2923_s29 }
  0x11   : > { %s3246_s10 = scalar_lea.vmem %s4798_s0, %s3066_s30 }
  0x12   : > { %v3249_v2 = vld [vmem:[%s3246_s10 + $0x8] sm:$0xff]   ;;  %v3252_v3 = vld [vmem:[%s3246_s10 + $0x10] sm:$0xff]   ;;  %v3255_v4 = vld [vmem:[%s3246_s10 + $0x18] sm:$0xff]  }
  0x13   : > { %444 = vrot.lane.b32.xlu0 %v3249_v2, %s3173_s11  ;;  %485 = vrot.lane.b32.xlu1 %v3252_v3, %s3174_s12  ;;  %v3262_v5 = vld [vmem:[%s3246_s10 + $0x20] sm:$0xff]   ;;  %v3269_v6 = vld [vmem:[%s3246_s10 + $0x28] sm:$0xff]  }
  0x14   : > { %v3276_v7 = vld [vmem:[%s3246_s10 + $0x30] sm:$0xff]   ;;  %v3283_v8 = vld [vmem:[%s3246_s10 + $0x38] sm:$0xff]   ;;  %v3290_v9 = vld [vmem:[%s3246_s10 + $0x40] sm:$0xff]  }
  0x15   : > { %v3297_v10 = vld [vmem:[%s3246_s10 + $0x48] sm:$0xff]   ;;  %v3304_v11 = vld [vmem:[%s3246_s10 + $0x50] sm:$0xff]   ;;  %v3311_v12 = vld [vmem:[%s3246_s10 + $0x58] sm:$0xff]  }
  0x16   : > { %v3318_v13 = vld [vmem:[%s3246_s10 + $0x60] sm:$0xff]   ;;  %v3325_v14 = vld [vmem:[%s3246_s10 + $0x68] sm:$0xff]   ;;  %v3332_v15 = vld [vmem:[%s3246_s10 + $0x70] sm:$0xff]  }
  0x17   : > { %446 = vrot.lane.b32.xlu0 %v3252_v3, %s3173_s11  ;;  %487 = vrot.lane.b32.xlu1 %v3255_v4, %s3174_s12  ;;  %v3339_v16 = vld [vmem:[%s3246_s10 + $0x78] sm:$0xff]   ;;  %v3346_v17 = vld [vmem:[%s3246_s10 + $0x80] sm:$0xff]  }
  0x18   : > { %v3353_v18 = vld [vmem:[%s3246_s10 + $0x88] sm:$0xff]   ;;  %v3112_v19 = vld [vmem:[%s3246_s10 + $0x90] sm:$0xff]   ;;  %v3113_v20 = vld [vmem:[%s3246_s10 + $0x98] sm:$0xff]  }
  0x19   : > { %v3114_v21 = vld [vmem:[%s3246_s10] sm:$0xff]  }
  0x1b   : > { %448 = vrot.lane.b32.xlu0 %v3255_v4, %s3173_s11  ;;  %450 = vrot.lane.b32.xlu1 %v3262_v5, %s3173_s11 }
  0x1f   : > { %489 = vrot.lane.b32.xlu0 %v3262_v5, %s3174_s12  ;;  %491 = vrot.lane.b32.xlu1 %v3269_v6, %s3174_s12 }
  0x23   : > { %452 = vrot.lane.b32.xlu0 %v3269_v6, %s3173_s11  ;;  %454 = vrot.lane.b32.xlu1 %v3276_v7, %s3173_s11 }
  0x27   : > { %493 = vrot.lane.b32.xlu0 %v3276_v7, %s3174_s12  ;;  %495 = vrot.lane.b32.xlu1 %v3283_v8, %s3174_s12 }
  0x2b   : > { %456 = vrot.lane.b32.xlu0 %v3283_v8, %s3173_s11  ;;  %458 = vrot.lane.b32.xlu1 %v3290_v9, %s3173_s11 }
  0x2f   : > { %497 = vrot.lane.b32.xlu0 %v3290_v9, %s3174_s12  ;;  %499 = vrot.lane.b32.xlu1 %v3297_v10, %s3174_s12 }
  0x33   : > { %460 = vrot.lane.b32.xlu0 %v3297_v10, %s3173_s11  ;;  %462 = vrot.lane.b32.xlu1 %v3304_v11, %s3173_s11 }
  0x37   : > { %501 = vrot.lane.b32.xlu0 %v3304_v11, %s3174_s12  ;;  %503 = vrot.lane.b32.xlu1 %v3311_v12, %s3174_s12 }
  0x3b   : > { %464 = vrot.lane.b32.xlu0 %v3311_v12, %s3173_s11  ;;  %466 = vrot.lane.b32.xlu1 %v3318_v13, %s3173_s11 }
  0x3f   : > { %505 = vrot.lane.b32.xlu0 %v3318_v13, %s3174_s12  ;;  %507 = vrot.lane.b32.xlu1 %v3325_v14, %s3174_s12 }
  0x43   : > { %468 = vrot.lane.b32.xlu0 %v3325_v14, %s3173_s11  ;;  %470 = vrot.lane.b32.xlu1 %v3332_v15, %s3173_s11 }
  0x47   : > { %509 = vrot.lane.b32.xlu0 %v3332_v15, %s3174_s12  ;;  %511 = vrot.lane.b32.xlu1 %v3339_v16, %s3174_s12 }
  0x4b   : > { %472 = vrot.lane.b32.xlu0 %v3339_v16, %s3173_s11  ;;  %474 = vrot.lane.b32.xlu1 %v3346_v17, %s3173_s11 }
  0x4f   : > { %513 = vrot.lane.b32.xlu0 %v3346_v17, %s3174_s12  ;;  %515 = vrot.lane.b32.xlu1 %v3353_v18, %s3174_s12 }
  0x53   : > { %476 = vrot.lane.b32.xlu0 %v3353_v18, %s3173_s11  ;;  %478 = vrot.lane.b32.xlu1 %v3112_v19, %s3173_s11 }
  0x57   : > { %517 = vrot.lane.b32.xlu0 %v3112_v19, %s3174_s12  ;;  %519 = vrot.lane.b32.xlu1 %v3113_v20, %s3174_s12 }
  0x85   : > { %v445_v22 = vpop.permute.xlu0 %444  ;;  %v486_v24 = vpop.permute.xlu1 %485 }
  0x86   : > { %v524_v23 = vsel %vm521_vm1, %v3114_v21, %v445_v22 }
  0x87   : > { %v578_v25 = vsel %vm576_vm2, %v524_v23, %v486_v24 }
  0x88   : > { %2994 = vmatprep.mubr.msk.bf16.mxu0 %vm620_vm3, %v578_v25 }
  0x89   : > { %v447_v26 = vpop.permute.xlu0 %446  ;;  %v488_v28 = vpop.permute.xlu1 %487 }
  0x8a   : > { %v527_v27 = vsel %vm521_vm1, %v3249_v2, %v447_v26 }
  0x8b   : > { %v580_v29 = vsel %vm576_vm2, %v527_v27, %v488_v28 }
  0x8c   : > { %2995 = vmatmul.mubr.msk.bf16.vlgmr.msra.gmra.mrb[0].mxu0 %vm620_vm3, %v580_v29 }
  0x8d   : > { %v449_v30 = vpop.permute.xlu0 %448  ;;  %v451_v32 = vpop.permute.xlu1 %450 }
  0x8e   : > { %v530_v31 = vsel %vm521_vm1, %v3252_v3, %v449_v30  ;;  %v533_v33 = vsel %vm521_vm1, %v3255_v4, %v451_v32  ;;  %v874_v32 = vlaneseq }
  0x91   : > { %v490_v34 = vpop.permute.xlu0 %489  ;;  %v492_v36 = vpop.permute.xlu1 %491 }
  0x92   : > { %v582_v35 = vsel %vm576_vm2, %v530_v31, %v490_v34  ;;  %v584_v37 = vsel %vm576_vm2, %v533_v33, %v492_v36  ;;  %v3442_v33 = vshrl.u32 %v874_v32, 7 }
  0x93   : > { %2998 = vmatprep.mubr.msk.bf16.mxu0 %vm620_vm3, %v582_v35 }
  0x94   : > { %2999 = vmatmul.mubr.msk.bf16.gmra.mrb[4].mxu0 %vm620_vm3, %v584_v37  ;;  %vm876_vm4 = vcmp.lt.s32.totalorder %v3442_v33, 1  ;;  %vm1131_vm5 = vcmp.gt.s32.totalorder %v3442_v33, 0  ;;  %vm1093_vm6 = vcmp.lt.s32.totalorder %v3442_v33, 7 }
  0x95   : > { %v453_v38 = vpop.permute.xlu0 %452  ;;  %v455_v40 = vpop.permute.xlu1 %454 }
  0x96   : > { %v536_v39 = vsel %vm521_vm1, %v3262_v5, %v453_v38  ;;  %v539_v41 = vsel %vm521_vm1, %v3269_v6, %v455_v40 }
  0x99   : > { %v494_v42 = vpop.permute.xlu0 %493  ;;  %v496_v44 = vpop.permute.xlu1 %495 }
  0x9a   : > { %v586_v43 = vsel %vm576_vm2, %v536_v39, %v494_v42  ;;  %v588_v45 = vsel %vm576_vm2, %v539_v41, %v496_v44 }
  0x9b   : > { %3002 = vmatprep.mubr.msk.bf16.mxu0 %vm620_vm3, %v586_v43 }
  0x9c   : > { %3003 = vmatmul.mubr.msk.bf16.gmra.mrb[8].mxu0 %vm620_vm3, %v588_v45 }
  0x9d   : > { %v457_v46 = vpop.permute.xlu0 %456  ;;  %v459_v48 = vpop.permute.xlu1 %458 }
  0x9e   : > { %v542_v47 = vsel %vm521_vm1, %v3276_v7, %v457_v46  ;;  %v545_v49 = vsel %vm521_vm1, %v3283_v8, %v459_v48 }
  0xa1   : > { %v498_v50 = vpop.permute.xlu0 %497  ;;  %v500_v52 = vpop.permute.xlu1 %499 }
  0xa2   : > { %v590_v51 = vsel %vm576_vm2, %v542_v47, %v498_v50  ;;  %v592_v53 = vsel %vm576_vm2, %v545_v49, %v500_v52 }
  0xa3   : > { %3006 = vmatprep.mubr.msk.bf16.mxu0 %vm620_vm3, %v590_v51 }
  0xa4   : > { %3007 = vmatmul.mubr.msk.bf16.gmra.mrb[12].mxu0 %vm620_vm3, %v592_v53 }
  0xa5   : > { %v461_v54 = vpop.permute.xlu0 %460  ;;  %v463_v56 = vpop.permute.xlu1 %462 }
  0xa6   : > { %v548_v55 = vsel %vm521_vm1, %v3290_v9, %v461_v54  ;;  %v551_v57 = vsel %vm521_vm1, %v3297_v10, %v463_v56 }
  0xa9   : > { %v502_v58 = vpop.permute.xlu0 %501  ;;  %v504_v60 = vpop.permute.xlu1 %503 }
  0xaa   : > { %v594_v59 = vsel %vm576_vm2, %v548_v55, %v502_v58  ;;  %v596_v61 = vsel %vm576_vm2, %v551_v57, %v504_v60 }
  0xab   : > { %3010 = vmatprep.mubr.msk.bf16.mxu0 %vm620_vm3, %v594_v59 }
  0xac   : > { %3011 = vmatmul.mubr.msk.bf16.gmra.mrb[16].mxu0 %vm620_vm3, %v596_v61 }
  0xad   : > { %v465_v62 = vpop.permute.xlu0 %464  ;;  %v467_v0 = vpop.permute.xlu1 %466 }
  0xae   : > { %v554_v63 = vsel %vm521_vm1, %v3304_v11, %v465_v62  ;;  %v557_v1 = vsel %vm521_vm1, %v3311_v12, %v467_v0 }
  0xb1   : > { %v506_v2 = vpop.permute.xlu0 %505  ;;  %v508_v4 = vpop.permute.xlu1 %507 }
  0xb2   : > { %v598_v3 = vsel %vm576_vm2, %v554_v63, %v506_v2  ;;  %v600_v5 = vsel %vm576_vm2, %v557_v1, %v508_v4 }
  0xb3   : > { %3014 = vmatprep.mubr.msk.bf16.mxu0 %vm620_vm3, %v598_v3 }
  0xb4   : > { %3015 = vmatmul.mubr.msk.bf16.gmra.mrb[20].mxu0 %vm620_vm3, %v600_v5 }
  0xb5   : > { %v469_v6 = vpop.permute.xlu0 %468  ;;  %v471_v8 = vpop.permute.xlu1 %470 }
  0xb6   : > { %v560_v7 = vsel %vm521_vm1, %v3318_v13, %v469_v6  ;;  %v563_v9 = vsel %vm521_vm1, %v3325_v14, %v471_v8 }
  0xb9   : > { %v510_v10 = vpop.permute.xlu0 %509  ;;  %v512_v12 = vpop.permute.xlu1 %511 }
  0xba   : > { %v602_v11 = vsel %vm576_vm2, %v560_v7, %v510_v10  ;;  %v604_v19 = vsel %vm576_vm2, %v563_v9, %v512_v12 }
  0xbb   : > { %3018 = vmatprep.mubr.msk.bf16.mxu0 %vm620_vm3, %v602_v11 }
  0xbc   : > { %3019 = vmatmul.mubr.msk.bf16.gmra.mrb[24].mxu0 %vm620_vm3, %v604_v19 }
  0xbd   : > { %v473_v20 = vpop.permute.xlu0 %472  ;;  %v475_v22 = vpop.permute.xlu1 %474 }
  0xbe   : > { %v566_v21 = vsel %vm521_vm1, %v3332_v15, %v473_v20  ;;  %v569_v13 = vsel %vm521_vm1, %v3339_v16, %v475_v22 }
  0xc1   : > { %v514_v23 = vpop.permute.xlu0 %513  ;;  %v516_v24 = vpop.permute.xlu1 %515 }
  0xc2   : > { %v606_v14 = vsel %vm576_vm2, %v566_v21, %v514_v23  ;;  %v608_v25 = vsel %vm576_vm2, %v569_v13, %v516_v24 }
  0xc3   : > { %3022 = vmatprep.mubr.msk.bf16.mxu0 %vm620_vm3, %v606_v14 }
  0xc4   : > { %3023 = vmatmul.mubr.msk.bf16.gmra.mrb[28].mxu0 %vm620_vm3, %v608_v25 }
  0xc5   : > { %v477_v26 = vpop.permute.xlu0 %476  ;;  %v479_v28 = vpop.permute.xlu1 %478 }
  0xc6   : > { %v572_v27 = vsel %vm521_vm1, %v3346_v17, %v477_v26  ;;  %v575_v15 = vsel %vm521_vm1, %v3353_v18, %v479_v28 }
  0xc9   : > { %v518_v29 = vpop.permute.xlu0 %517  ;;  %v520_v30 = vpop.permute.xlu1 %519 }
  0xca   : > { %v610_v16 = vsel %vm576_vm2, %v572_v27, %v518_v29  ;;  %v612_v31 = vsel %vm576_vm2, %v575_v15, %v520_v30 }
  0xcb   : > { %3026 = vmatprep.mubr.msk.bf16.mxu0 %vm620_vm3, %v610_v16 }
  0xcc   : > { %3027 = vmatmul.mubr.msk.bf16.gmra.mrb[32].mxu0 %vm620_vm3, %v612_v31 }
 0x15f   : > { %v2996_v34 = vpop.f32.mrb[0].mxu0 }
 0x160   : > { %1219 = vrot.lane.b32.xlu1 %v2996_v34, %s3175_s13  ;;  %953 = vrot.lane.b32.xlu0 %v2996_v34, %s3176_s14  ;;  %v3446_v17 = vpop.f32.mrb[1].mxu0  ;;  %v840_v35 = vrot.slane %v2996_v34, 7 }
 0x161   : > { %v2997_v18 = vpop.f32.mrb[2].mxu0  ;;  %v838_v38 = vrot.slane %v3446_v17, 7 }
 0x162   : > { %v841_v36 = vrot.slane %v2997_v18, 7  ;;  %v698_v37 = vpop.f32.mrb[3].mxu0 }
 0x163   : > { %v839_v39 = vrot.slane %v698_v37, 7 }
 0x164   : > { %1215 = vrot.lane.b32.xlu0 %v3446_v17, %s3175_s13  ;;  %949 = vrot.lane.b32.xlu1 %v3446_v17, %s3176_s14  ;;  %v3456_v40 = vsel %vm876_vm4, %v840_v35, %v841_v36 }
 0x165   : > { %v3460_v41 = vsel %vm876_vm4, %v839_v39, %v840_v35  ;;  %v3466_v42 = vsel %vm876_vm4, %v838_v38, %v839_v39 }
 0x167   : > { %v3000_v43 = vpop.f32.mrb[4].mxu0 }
 0x168   : > { %v844_v44 = vrot.slane %v3000_v43, 7  ;;  %955 = vrot.lane.b32.xlu0 %v2997_v18, %s3176_s14  ;;  %1217 = vrot.lane.b32.xlu1 %v698_v37, %s3175_s13  ;;  %v711_v45 = vpop.f32.mrb[5].mxu0 }
 0x169   : > { %v842_v46 = vrot.slane %v711_v45, 7  ;;  %v3001_v47 = vpop.f32.mrb[6].mxu0 }
 0x16a   : > { %v845_v48 = vrot.slane %v3001_v47, 7  ;;  %v714_v49 = vpop.f32.mrb[7].mxu0 }
 0x16b   : > { %v843_v50 = vrot.slane %v714_v49, 7  ;;  %v3472_v51 = vsel %vm876_vm4, %v841_v36, %v842_v46 }
 0x16c   : > { %1221 = vrot.lane.b32.xlu0 %v2997_v18, %s3175_s13  ;;  %1227 = vrot.lane.b32.xlu1 %v3000_v43, %s3175_s13  ;;  %v3478_v52 = vsel %vm876_vm4, %v844_v44, %v845_v48 }
 0x16d   : > { %v3482_v53 = vsel %vm876_vm4, %v843_v50, %v844_v44  ;;  %v3486_v54 = vsel %vm876_vm4, %v842_v46, %v843_v50 }
 0x16f   : > { %v3004_v55 = vpop.f32.mrb[8].mxu0 }
 0x170   : > { %v848_v56 = vrot.slane %v3004_v55, 7  ;;  %951 = vrot.lane.b32.xlu0 %v698_v37, %s3176_s14  ;;  %957 = vrot.lane.b32.xlu1 %v711_v45, %s3176_s14  ;;  %v727_v57 = vpop.f32.mrb[9].mxu0 }
 0x171   : > { %v846_v58 = vrot.slane %v727_v57, 7  ;;  %v3005_v59 = vpop.f32.mrb[10].mxu0 }
 0x172   : > { %v849_v60 = vrot.slane %v3005_v59, 7  ;;  %v730_v61 = vpop.f32.mrb[11].mxu0 }
 0x173   : > { %v847_v62 = vrot.slane %v730_v61, 7  ;;  %v3492_v63 = vsel %vm876_vm4, %v845_v48, %v846_v58 }
 0x174   : > { %961 = vrot.lane.b32.xlu0 %v3000_v43, %s3176_s14  ;;  %1223 = vrot.lane.b32.xlu1 %v711_v45, %s3175_s13  ;;  %v3498_v0 = vsel %vm876_vm4, %v848_v56, %v849_v60 }
 0x175   : > { %v3502_v1 = vsel %vm876_vm4, %v847_v62, %v848_v56  ;;  %v3506_v2 = vsel %vm876_vm4, %v846_v58, %v847_v62 }
 0x177   : > { %v3008_v3 = vpop.f32.mrb[12].mxu0 }
 0x178   : > { %1229 = vrot.lane.b32.xlu0 %v3001_v47, %s3175_s13  ;;  %963 = vrot.lane.b32.xlu1 %v3001_v47, %s3176_s14  ;;  %v852_v4 = vrot.slane %v3008_v3, 7  ;;  %v743_v5 = vpop.f32.mrb[13].mxu0 }
 0x179   : > { %v850_v6 = vrot.slane %v743_v5, 7  ;;  %v3009_v7 = vpop.f32.mrb[14].mxu0 }
 0x17a   : > { %v853_v8 = vrot.slane %v3009_v7, 7  ;;  %v3510_v9 = vpop.f32.mrb[15].mxu0 }
 0x17b   : > { %v851_v10 = vrot.slane %v3510_v9, 7  ;;  %v3515_v11 = vsel %vm876_vm4, %v849_v60, %v850_v6 }
 0x17c   : > { %1225 = vrot.lane.b32.xlu0 %v714_v49, %s3175_s13  ;;  %959 = vrot.lane.b32.xlu1 %v714_v49, %s3176_s14  ;;  %v3521_v12 = vsel %vm876_vm4, %v852_v4, %v853_v8 }
 0x17d   : > { %v3525_v19 = vsel %vm876_vm4, %v851_v10, %v852_v4  ;;  %v3529_v20 = vsel %vm876_vm4, %v850_v6, %v851_v10 }
 0x17f   : > { %v3531_v21 = vpop.f32.mrb[16].mxu0 }
 0x180   : > { %1235 = vrot.lane.b32.xlu1 %v3004_v55, %s3175_s13  ;;  %969 = vrot.lane.b32.xlu0 %v3004_v55, %s3176_s14  ;;  %v856_v22 = vrot.slane %v3531_v21, 7  ;;  %v3536_v13 = vpop.f32.mrb[17].mxu0 }
 0x181   : > { %v854_v23 = vrot.slane %v3536_v13, 7  ;;  %v3539_v14 = vpop.f32.mrb[18].mxu0 }
 0x182   : > { %v857_v24 = vrot.slane %v3539_v14, 7  ;;  %v3542_v25 = vpop.f32.mrb[19].mxu0 }
 0x183   : > { %v855_v26 = vrot.slane %v3542_v25, 7  ;;  %v3547_v27 = vsel %vm876_vm4, %v853_v8, %v854_v23 }
 0x184   : > { %1231 = vrot.lane.b32.xlu1 %v727_v57, %s3175_s13  ;;  %965 = vrot.lane.b32.xlu0 %v727_v57, %s3176_s14  ;;  %v3553_v28 = vsel %vm876_vm4, %v856_v22, %v857_v24 }
 0x185   : > { %v3557_v15 = vsel %vm876_vm4, %v855_v26, %v856_v22  ;;  %v3561_v29 = vsel %vm876_vm4, %v854_v23, %v855_v26 }
 0x187   : > { %v3563_v16 = vpop.f32.mrb[20].mxu0 }
 0x188   : > { %1237 = vrot.lane.b32.xlu0 %v3005_v59, %s3175_s13  ;;  %971 = vrot.lane.b32.xlu1 %v3005_v59, %s3176_s14  ;;  %v860_v30 = vrot.slane %v3563_v16, 7  ;;  %v3568_v31 = vpop.f32.mrb[21].mxu0 }
 0x189   : > { %v858_v32 = vrot.slane %v3568_v31, 7  ;;  %v3571_v34 = vpop.f32.mrb[22].mxu0 }
 0x18a   : > { %v861_v18 = vrot.slane %v3571_v34, 7  ;;  %v3574_v35 = vpop.f32.mrb[23].mxu0 }
 0x18b   : > { %v859_v36 = vrot.slane %v3574_v35, 7  ;;  %v3579_v37 = vsel %vm876_vm4, %v857_v24, %v858_v32 }
 0x18c   : > { %1233 = vrot.lane.b32.xlu0 %v730_v61, %s3175_s13  ;;  %967 = vrot.lane.b32.xlu1 %v730_v61, %s3176_s14  ;;  %v3585_v39 = vsel %vm876_vm4, %v860_v30, %v861_v18 }
 0x18d   : > { %v3589_v43 = vsel %vm876_vm4, %v859_v36, %v860_v30  ;;  %v3593_v44 = vsel %vm876_vm4, %v858_v32, %v859_v36 }
 0x18f   : > { %v3020_v45 = vpop.f32.mrb[24].mxu0 }
 0x190   : > { %1243 = vrot.lane.b32.xlu1 %v3008_v3, %s3175_s13  ;;  %977 = vrot.lane.b32.xlu0 %v3008_v3, %s3176_s14  ;;  %v864_v46 = vrot.slane %v3020_v45, 7  ;;  %v791_v47 = vpop.f32.mrb[25].mxu0 }
 0x191   : > { %v862_v48 = vrot.slane %v791_v47, 7  ;;  %v3021_v49 = vpop.f32.mrb[26].mxu0 }
 0x192   : > { %v865_v50 = vrot.slane %v3021_v49, 7  ;;  %v794_v55 = vpop.f32.mrb[27].mxu0 }
 0x193   : > { %v863_v56 = vrot.slane %v794_v55, 7  ;;  %v3599_v57 = vsel %vm876_vm4, %v861_v18, %v862_v48 }
 0x194   : > { %1239 = vrot.lane.b32.xlu1 %v743_v5, %s3175_s13  ;;  %973 = vrot.lane.b32.xlu0 %v743_v5, %s3176_s14  ;;  %v3605_v58 = vsel %vm876_vm4, %v864_v46, %v865_v50 }
 0x195   : > { %v3609_v59 = vsel %vm876_vm4, %v863_v56, %v864_v46  ;;  %v3613_v60 = vsel %vm876_vm4, %v862_v48, %v863_v56 }
 0x197   : > { %v3024_v61 = vpop.f32.mrb[28].mxu0 }
 0x198   : > { %1245 = vrot.lane.b32.xlu0 %v3009_v7, %s3175_s13  ;;  %979 = vrot.lane.b32.xlu1 %v3009_v7, %s3176_s14  ;;  %v868_v62 = vrot.slane %v3024_v61, 7  ;;  %v807_v3 = vpop.f32.mrb[29].mxu0 }
 0x199   : > { %v866_v4 = vrot.slane %v807_v3, 7  ;;  %v3025_v5 = vpop.f32.mrb[30].mxu0 }
 0x19a   : > { %v869_v6 = vrot.slane %v3025_v5, 7  ;;  %v810_v8 = vpop.f32.mrb[31].mxu0 }
 0x19b   : > { %v867_v10 = vrot.slane %v810_v8, 7  ;;  %v3619_v22 = vsel %vm876_vm4, %v865_v50, %v866_v4 }
 0x19c   : > { %1241 = vrot.lane.b32.xlu0 %v3510_v9, %s3175_s13  ;;  %975 = vrot.lane.b32.xlu1 %v3510_v9, %s3176_s14  ;;  %v3627_v7 = vsel %vm876_vm4, %v868_v62, %v869_v6 }
 0x19d   : > { %v3631_v23 = vsel %vm876_vm4, %v867_v10, %v868_v62  ;;  %v3635_v24 = vsel %vm876_vm4, %v866_v4, %v867_v10 }
 0x19f   : > { %v3637_v26 = vpop.f32.mrb[32].mxu0 }
 0x1a0   : > { %v872_v30 = vrot.slane %v3637_v26, 7  ;;  %1251 = vrot.lane.b32.xlu1 %v3531_v21, %s3175_s13  ;;  %985 = vrot.lane.b32.xlu0 %v3531_v21, %s3176_s14  ;;  %v3644_v9 = vpop.f32.mrb[33].mxu0 }
 0x1a1   : > { %v870_v32 = vrot.slane %v3644_v9, 7  ;;  %v3647_v18 = vpop.f32.mrb[34].mxu0 }
 0x1a2   : > { %v873_v36 = vrot.slane %v3647_v18, 7  ;;  %v3650_v46 = vpop.f32.mrb[35].mxu0 }
 0x1a3   : > { %v871_v48 = vrot.slane %v3650_v46, 7  ;;  %v3655_v50 = vsel %vm876_vm4, %v869_v6, %v870_v32 }
 0x1a4   : > { %1247 = vrot.lane.b32.xlu1 %v3536_v13, %s3175_s13  ;;  %981 = vrot.lane.b32.xlu0 %v3536_v13, %s3176_s14  ;;  %v912_v21 = vsel %vm876_vm4, %v873_v36, %v838_v38  ;;  %v3667_v56 = vsel %vm876_vm4, %v872_v30, %v873_v36 }
 0x1a5   : > { %v3671_v62 = vsel %vm876_vm4, %v871_v48, %v872_v30  ;;  %v3675_v4 = vsel %vm876_vm4, %v870_v32, %v871_v48 }
 0x1a8   : > { %1253 = vrot.lane.b32.xlu0 %v3539_v14, %s3175_s13  ;;  %987 = vrot.lane.b32.xlu1 %v3539_v14, %s3176_s14 }
 0x1ac   : > { %1249 = vrot.lane.b32.xlu0 %v3542_v25, %s3175_s13  ;;  %983 = vrot.lane.b32.xlu1 %v3542_v25, %s3176_s14 }
 0x1b0   : > { %1259 = vrot.lane.b32.xlu1 %v3563_v16, %s3175_s13  ;;  %993 = vrot.lane.b32.xlu0 %v3563_v16, %s3176_s14 }
 0x1b4   : > { %1255 = vrot.lane.b32.xlu1 %v3568_v31, %s3175_s13  ;;  %989 = vrot.lane.b32.xlu0 %v3568_v31, %s3176_s14 }
 0x1b8   : > { %1261 = vrot.lane.b32.xlu0 %v3571_v34, %s3175_s13  ;;  %995 = vrot.lane.b32.xlu1 %v3571_v34, %s3176_s14 }
 0x1bc   : > { %1257 = vrot.lane.b32.xlu0 %v3574_v35, %s3175_s13  ;;  %991 = vrot.lane.b32.xlu1 %v3574_v35, %s3176_s14  ;;  %v1139_v35 = vsel %vm1131_vm5, %v3460_v41, 0.0  ;;  %v3738_v41 = vld [vmem:[%s4801_s3] ss:$0 sm:$0xff] }
 0x1c0   : > { %1267 = vrot.lane.b32.xlu1 %v3020_v45, %s3175_s13  ;;  %1001 = vrot.lane.b32.xlu0 %v3020_v45, %s3176_s14 }
 0x1c4   : > { %1263 = vrot.lane.b32.xlu1 %v791_v47, %s3175_s13  ;;  %997 = vrot.lane.b32.xlu0 %v791_v47, %s3176_s14 }
 0x1c8   : > { %1269 = vrot.lane.b32.xlu0 %v3021_v49, %s3175_s13  ;;  %1003 = vrot.lane.b32.xlu1 %v3021_v49, %s3176_s14 }
 0x1cc   : > { %1265 = vrot.lane.b32.xlu0 %v794_v55, %s3175_s13  ;;  %999 = vrot.lane.b32.xlu1 %v794_v55, %s3176_s14  ;;  %v3729_v55 = vadd.s32 8, %v3442_v33 }
 0x1ce   : > { %vm1174_vm7 = vcmp.lt.s32.totalorder %v3729_v55, 15 }
 0x1d0   : > { %1275 = vrot.lane.b32.xlu1 %v3024_v61, %s3175_s13  ;;  %1009 = vrot.lane.b32.xlu0 %v3024_v61, %s3176_s14 }
 0x1d2   : > { %v1220_v17 = vpop.permute.xlu1 %1219  ;;  %v954_v38 = vpop.permute.xlu0 %953 }
 0x1d3   : > { %v1059_v34 = vrot.slane %v954_v38, 1  ;;  %v1325_v61 = vadd.f32 %v1220_v17, %v1139_v35 }
 0x1d4   : > { %1271 = vrot.lane.b32.xlu1 %v807_v3, %s3175_s13  ;;  %1005 = vrot.lane.b32.xlu0 %v807_v3, %s3176_s14 }
 0x1d6   : > { %v1216_v13 = vpop.permute.xlu0 %1215  ;;  %v3713_v14 = vpop.permute.xlu1 %949 }
 0x1d7   : > { %v1057_v10 = vrot.slane %v3713_v14, 1 }
 0x1d8   : > { %1277 = vrot.lane.b32.xlu0 %v3025_v5, %s3175_s13  ;;  %1011 = vrot.lane.b32.xlu1 %v3025_v5, %s3176_s14 }
 0x1da   : > { %v956_v25 = vpop.permute.xlu0 %955  ;;  %v1218_v16 = vpop.permute.xlu1 %1217 }
 0x1db   : > { %v1060_v31 = vrot.slane %v956_v25, 1  ;;  %v1324_v48 = vadd.f32 %v1218_v16, %v3466_v42 }
 0x1dc   : > { %1273 = vrot.lane.b32.xlu0 %v810_v8, %s3175_s13  ;;  %1007 = vrot.lane.b32.xlu1 %v810_v8, %s3176_s14  ;;  %v1137_v8 = vsel %vm1131_vm5, %v912_v21, 0.0 }
 0x1dd   : > { %v1126_v45 = vsel %vm1093_vm6, %v1059_v34, %v1060_v31  ;;  %v1323_v36 = vadd.f32 %v1216_v13, %v1137_v8 }
 0x1de   : > { %v1222_v47 = vpop.permute.xlu0 %1221  ;;  %v3726_v49 = vpop.permute.xlu1 %1227  ;;  %v1361_v3 = vadd.f32 %v1325_v61, %v1126_v45 }
 0x1df   : > { %v1326_v17 = vadd.f32 %v1222_v47, %v3456_v40 }
 0x1e0   : > { %1017 = vrot.lane.b32.xlu1 %v3637_v26, %s3176_s14  ;;  %1013 = vrot.lane.b32.xlu0 %v3644_v9, %s3176_s14  ;;  %v1404_v38 = vmul.f32 %v3738_v41, %v1361_v3 }
 0x1e2   : > { %v952_v5 = vpop.permute.xlu0 %951  ;;  %v958_v6 = vpop.permute.xlu1 %957 }
 0x1e3   : > { %v1058_v30 = vrot.slane %v952_v5, 1  ;;  %v1061_v32 = vrot.slane %v958_v6, 1 }
 0x1e4   : > { %1283 = vrot.lane.b32.xlu0 %v3637_v26, %s3175_s13  ;;  %1019 = vrot.lane.b32.xlu1 %v3647_v18, %s3176_s14 }
 0x1e5   : > { %v1127_v21 = vsel %vm1093_vm6, %v1058_v30, %v1059_v34  ;;  %v1128_v13 = vsel %vm1093_vm6, %v1057_v10, %v1058_v30  ;;  %v1125_v42 = vsel %vm1093_vm6, %v1060_v31, %v1061_v32  ;;  %v3766_v34 = vld [vmem:[%s4802_s4] ss:$0 sm:$0xff] }
 0x1e6   : > { %v1180_v40 = vsel %vm1174_vm7, %v1127_v21, 0.0  ;;  %v1359_v26 = vadd.f32 %v1323_v36, %v1128_v13  ;;  %v1182_v25 = vsel %vm1174_vm7, %v1125_v42, 0.0  ;;  %v962_v16 = vpop.permute.xlu0 %961  ;;  %v1224_v35 = vpop.permute.xlu1 %1223  ;;  %v1447_v5 = vadd.f32 %v3766_v34, %v1404_v38 }
 0x1e7   : > { %v1360_v45 = vadd.f32 %v1324_v48, %v1180_v40  ;;  %v1362_v47 = vadd.f32 %v1326_v17, %v1182_v25  ;;  %v1141_v38 = vsel %vm1131_vm5, %v3472_v51, 0.0  ;;  %v1063_v25 = vrot.slane %v962_v16, 1 }
 0x1e8   : > { %v1402_v61 = vmul.f32 %v3738_v41, %v1359_v26  ;;  %1285 = vrot.lane.b32.xlu1 %v3647_v18, %s3175_s13  ;;  %1015 = vrot.lane.b32.xlu0 %v3650_v46, %s3176_s14  ;;  %v1483_v21 = vmax.f32 %v1447_v5, 0.0  ;;  %v3116_v5 = vld [vmem:[%s4800_s2] sm:$0x3f]  }
 0x1e9   : > { %v1403_v31 = vmul.f32 %v3738_v41, %v1360_v45  ;;  %v1405_v3 = vmul.f32 %v3738_v41, %v1362_v47  ;;  %3065 = vmatprep.subr.msk.bf16.mxu1 %vm657_vm0, %v3116_v5 }
 0x1ea   : > { %v1230_v6 = vpop.permute.xlu0 %1229  ;;  %v964_v8 = vpop.permute.xlu1 %963  ;;  %v1445_v30 = vadd.f32 %v3766_v34, %v1402_v61 }
 0x1eb   : > { %v1448_v36 = vadd.f32 %v3766_v34, %v1405_v3  ;;  %v1446_v48 = vadd.f32 %v3766_v34, %v1403_v31  ;;  %v1064_v17 = vrot.slane %v964_v8, 1 }
 0x1ec   : > { %1281 = vrot.lane.b32.xlu1 %v3650_v46, %s3175_s13  ;;  %1279 = vrot.lane.b32.xlu0 %v3644_v9, %s3175_s13  ;;  %v1481_v18 = vmax.f32 %v1445_v30, 0.0  ;;  %v1143_v9 = vsel %vm1131_vm5, %v3482_v53, 0.0  ;;  %v1327_v46 = vadd.f32 %v1224_v35, %v1141_v38 }
 0x1ed   : > { %v1484_v13 = vmax.f32 %v1448_v36, 0.0  ;;  %v1482_v42 = vmax.f32 %v1446_v48, 0.0  ;;  %v1122_v31 = vsel %vm1093_vm6, %v1063_v25, %v1064_v17  ;;  %v1329_v53 = vadd.f32 %v3726_v49, %v1143_v9 }
 0x1ee   : > { %v1226_v40 = vpop.permute.xlu0 %1225  ;;  %v960_v26 = vpop.permute.xlu1 %959 }
 0x1ef   : > { %v1062_v45 = vrot.slane %v960_v26, 1  ;;  %v3786_v47 = vpack.c.bf16 %v1484_v13, %v1483_v21  ;;  %v3788_v61 = vpack.c.bf16 %v1482_v42, %v1481_v18  ;;  %v1328_v3 = vadd.f32 %v1226_v40, %v3486_v54 }
 0x1f0   : > { %v1365_v48 = vadd.f32 %v1329_v53, %v1122_v31 }
 0x1f1   : > { %v1123_v51 = vsel %vm1093_vm6, %v1062_v45, %v1063_v25  ;;  %v1124_v16 = vsel %vm1093_vm6, %v1061_v32, %v1062_v45  ;;  %1569 = vrot.lane.b32.xlu0 %v3786_v47, %s3173_s11  ;;  %v1754_v32 = vsel %vm657_vm0, %v3116_v5, 0  ;;  %v1330_v45 = vadd.f32 %v1230_v6, %v3478_v52 }
 0x1f2   : > { %v1184_v35 = vsel %vm1174_vm7, %v1123_v51, 0.0  ;;  %v1363_v8 = vadd.f32 %v1327_v46, %v1124_v16  ;;  %v1236_v54 = vpop.permute.xlu1 %1235  ;;  %v970_v30 = vpop.permute.xlu0 %969  ;;  %3031 = vmatpush3.bf16.msra.mxu1 %v1754_v32  ;;  %v1408_v26 = vmul.f32 %v3738_v41, %v1365_v48 }
 0x1f3   : > { %v1364_v36 = vadd.f32 %v1328_v3, %v1184_v35  ;;  %v1067_v52 = vrot.slane %v970_v30, 1 }
 0x1f4   : > { %v1406_v18 = vmul.f32 %v3738_v41, %v1363_v8  ;;  %v1451_v35 = vadd.f32 %v3766_v34, %v1408_v26 }
 0x1f5   : > { %v1407_v21 = vmul.f32 %v3738_v41, %v1364_v36  ;;  %v1145_v36 = vsel %vm1131_vm5, %v3492_v63, 0.0 }
 0x1f6   : > { %v1232_v13 = vpop.permute.xlu1 %1231  ;;  %v966_v42 = vpop.permute.xlu0 %965  ;;  %v1449_v49 = vadd.f32 %v3766_v34, %v1406_v18  ;;  %v1147_v18 = vsel %vm1131_vm5, %v3502_v1, 0.0 }
 0x1f7   : > { %v1065_v38 = vrot.slane %v966_v42, 1  ;;  %v1450_v40 = vadd.f32 %v3766_v34, %v1407_v21  ;;  %v1331_v21 = vadd.f32 %v1232_v13, %v1145_v36 }
 0x1f8   : > { %v1485_v25 = vmax.f32 %v1449_v49, 0.0  ;;  %v1487_v49 = vmax.f32 %v1451_v35, 0.0 }
 0x1f9   : > { %v1121_v9 = vsel %vm1093_vm6, %v1064_v17, %v1065_v38  ;;  %v1486_v46 = vmax.f32 %v1450_v40, 0.0 }
 0x1fa   : > { %v1186_v31 = vsel %vm1174_vm7, %v1121_v9, 0.0  ;;  %v1238_v3 = vpop.permute.xlu0 %1237  ;;  %v972_v51 = vpop.permute.xlu1 %971 }
 0x1fb   : > { %v1366_v16 = vadd.f32 %v1330_v45, %v1186_v31  ;;  %v3820_v5 = vpack.c.bf16 %v1486_v46, %v1485_v25  ;;  %v1068_v53 = vrot.slane %v972_v51, 1  ;;  %v1333_v25 = vadd.f32 %v1236_v54, %v1147_v18 }
 0x1fc   : > { %v1334_v36 = vadd.f32 %v1238_v3, %v3498_v0 }
 0x1fd   : > { %v1409_v8 = vmul.f32 %v3738_v41, %v1366_v16  ;;  %1571 = vrot.lane.b32.xlu1 %v3820_v5, %s3173_s11  ;;  %1602 = vrot.lane.b32.xlu0 %v3820_v5, %s3174_s12  ;;  %v1118_v42 = vsel %vm1093_vm6, %v1067_v52, %v1068_v53 }
 0x1fe   : > { %v1234_v6 = vpop.permute.xlu0 %1233  ;;  %v968_v17 = vpop.permute.xlu1 %967  ;;  %v1369_v51 = vadd.f32 %v1333_v25, %v1118_v42  ;;  %v1149_v25 = vsel %vm1131_vm5, %v3515_v11, 0.0 }
 0x1ff   : > { %v1066_v32 = vrot.slane %v968_v17, 1  ;;  %v1452_v48 = vadd.f32 %v3766_v34, %v1409_v8  ;;  %v1332_v30 = vadd.f32 %v1234_v6, %v3506_v2 }
 0x200   : > { %v1412_v6 = vmul.f32 %v3738_v41, %v1369_v51 }
 0x201   : > { %v1119_v40 = vsel %vm1093_vm6, %v1066_v32, %v1067_v52  ;;  %v1120_v63 = vsel %vm1093_vm6, %v1065_v38, %v1066_v32  ;;  %v1488_v26 = vmax.f32 %v1452_v48, 0.0 }
 0x202   : > { %v1188_v45 = vsel %vm1174_vm7, %v1119_v40, 0.0  ;;  %v1367_v9 = vadd.f32 %v1331_v21, %v1120_v63  ;;  %v1244_v1 = vpop.permute.xlu1 %1243  ;;  %v978_v13 = vpop.permute.xlu0 %977  ;;  %v1455_v63 = vadd.f32 %v3766_v34, %v1412_v6 }
 0x203   : > { %v1368_v46 = vadd.f32 %v1332_v30, %v1188_v45  ;;  %v3844_v31 = vpack.c.bf16 %v1488_v26, %v1487_v49  ;;  %v1071_v0 = vrot.slane %v978_v13, 1 }
 0x204   : > { %v1410_v2 = vmul.f32 %v3738_v41, %v1367_v9 }
 0x205   : > { %v1411_v16 = vmul.f32 %v3738_v41, %v1368_v46  ;;  %1604 = vrot.lane.b32.xlu1 %v3844_v31, %s3174_s12  ;;  %1573 = vrot.lane.b32.xlu0 %v3844_v31, %s3173_s11  ;;  %v1151_v46 = vsel %vm1131_vm5, %v3525_v19, 0.0 }
 0x206   : > { %v1240_v54 = vpop.permute.xlu1 %1239  ;;  %v974_v38 = vpop.permute.xlu0 %973  ;;  %v1453_v35 = vadd.f32 %v3766_v34, %v1410_v2 }
 0x207   : > { %v1069_v8 = vrot.slane %v974_v38, 1  ;;  %v1454_v52 = vadd.f32 %v3766_v34, %v1411_v16  ;;  %v1335_v51 = vadd.f32 %v1240_v54, %v1149_v25  ;;  %v1491_v16 = vmax.f32 %v1455_v63, 0.0 }
 0x208   : > { %v1489_v17 = vmax.f32 %v1453_v35, 0.0 }
 0x209   : > { %v1117_v32 = vsel %vm1093_vm6, %v1068_v53, %v1069_v8  ;;  %v1490_v48 = vmax.f32 %v1454_v52, 0.0  ;;  %v1337_v52 = vadd.f32 %v1244_v1, %v1151_v46 }
 0x20a   : > { %v1190_v18 = vsel %vm1174_vm7, %v1117_v32, 0.0  ;;  %v1246_v21 = vpop.permute.xlu0 %1245  ;;  %v980_v42 = vpop.permute.xlu1 %979 }
 0x20b   : > { %v1370_v49 = vadd.f32 %v1334_v36, %v1190_v18  ;;  %v3860_v30 = vpack.c.bf16 %v1490_v48, %v1489_v17  ;;  %v1072_v40 = vrot.slane %v980_v42, 1 }
 0x20d   : > { %v1413_v26 = vmul.f32 %v3738_v41, %v1370_v49  ;;  %1575 = vrot.lane.b32.xlu1 %v3860_v30, %s3173_s11  ;;  %1606 = vrot.lane.b32.xlu0 %v3860_v30, %s3174_s12  ;;  %v1114_v2 = vsel %vm1093_vm6, %v1071_v0, %v1072_v40 }
 0x20e   : > { %v1242_v3 = vpop.permute.xlu0 %1241  ;;  %v976_v53 = vpop.permute.xlu1 %975  ;;  %v1373_v48 = vadd.f32 %v1337_v52, %v1114_v2 }
 0x20f   : > { %v1070_v45 = vrot.slane %v976_v53, 1  ;;  %v1456_v9 = vadd.f32 %v3766_v34, %v1413_v26  ;;  %v1336_v13 = vadd.f32 %v1242_v3, %v3529_v20  ;;  %v1338_v3 = vadd.f32 %v1246_v21, %v3521_v12 }
 0x210   : > { %v1416_v26 = vmul.f32 %v3738_v41, %v1373_v48 }
 0x211   : > { %v1115_v38 = vsel %vm1093_vm6, %v1070_v45, %v1071_v0  ;;  %v1116_v11 = vsel %vm1093_vm6, %v1069_v8, %v1070_v45  ;;  %v1492_v35 = vmax.f32 %v1456_v9, 0.0 }
 0x212   : > { %v1192_v6 = vsel %vm1174_vm7, %v1115_v38, 0.0  ;;  %v1371_v17 = vadd.f32 %v1335_v51, %v1116_v11  ;;  %v1252_v19 = vpop.permute.xlu1 %1251  ;;  %v986_v54 = vpop.permute.xlu0 %985  ;;  %v1153_v11 = vsel %vm1131_vm5, %v3547_v27, 0.0 }
 0x213   : > { %v1372_v36 = vadd.f32 %v1336_v13, %v1192_v6  ;;  %v3884_v32 = vpack.c.bf16 %v1492_v35, %v1491_v16  ;;  %v1459_v13 = vadd.f32 %v3766_v34, %v1416_v26  ;;  %v1075_v12 = vrot.slane %v986_v54, 1 }
 0x214   : > { %v1414_v20 = vmul.f32 %v3738_v41, %v1371_v17  ;;  %v1155_v6 = vsel %vm1131_vm5, %v3557_v15, 0.0 }
 0x215   : > { %v1415_v18 = vmul.f32 %v3738_v41, %v1372_v36  ;;  %1608 = vrot.lane.b32.xlu1 %v3884_v32, %s3174_s12  ;;  %1577 = vrot.lane.b32.xlu0 %v3884_v32, %s3173_s11  ;;  %v1495_v48 = vmax.f32 %v1459_v13, 0.0 }
 0x216   : > { %v1248_v1 = vpop.permute.xlu1 %1247  ;;  %v982_v8 = vpop.permute.xlu0 %981  ;;  %v1457_v42 = vadd.f32 %v3766_v34, %v1414_v20 }
 0x217   : > { %v1073_v49 = vrot.slane %v982_v8, 1  ;;  %v1458_v63 = vadd.f32 %v3766_v34, %v1415_v18  ;;  %v1339_v17 = vadd.f32 %v1248_v1, %v1153_v11  ;;  %v1341_v8 = vadd.f32 %v1252_v19, %v1155_v6 }
 0x218   : > { %v1493_v0 = vmax.f32 %v1457_v42, 0.0 }
 0x219   : > { %v1113_v53 = vsel %vm1093_vm6, %v1072_v40, %v1073_v49  ;;  %v1494_v25 = vmax.f32 %v1458_v63, 0.0 }
 0x21a   : > { %v1194_v45 = vsel %vm1174_vm7, %v1113_v53, 0.0  ;;  %v1254_v9 = vpop.permute.xlu0 %1253  ;;  %v988_v46 = vpop.permute.xlu1 %987 }
 0x21b   : > { %v1374_v51 = vadd.f32 %v1338_v3, %v1194_v45  ;;  %v3900_v2 = vpack.c.bf16 %v1494_v25, %v1493_v0  ;;  %v1076_v16 = vrot.slane %v988_v46, 1 }
 0x21d   : > { %v1417_v38 = vmul.f32 %v3738_v41, %v1374_v51  ;;  %1579 = vrot.lane.b32.xlu1 %v3900_v2, %s3173_s11  ;;  %1610 = vrot.lane.b32.xlu0 %v3900_v2, %s3174_s12  ;;  %v1110_v36 = vsel %vm1093_vm6, %v1075_v12, %v1076_v16 }
 0x21e   : > { %v1250_v21 = vpop.permute.xlu0 %1249  ;;  %v984_v40 = vpop.permute.xlu1 %983  ;;  %v1377_v3 = vadd.f32 %v1341_v8, %v1110_v36 }
 0x21f   : > { %v1074_v35 = vrot.slane %v984_v40, 1  ;;  %v1460_v52 = vadd.f32 %v3766_v34, %v1417_v38  ;;  %v1340_v54 = vadd.f32 %v1250_v21, %v3561_v29  ;;  %v1342_v38 = vadd.f32 %v1254_v9, %v3553_v28 }
 0x220   : > { %v1420_v51 = vmul.f32 %v3738_v41, %v1377_v3 }
 0x221   : > { %v1111_v20 = vsel %vm1093_vm6, %v1074_v35, %v1075_v12  ;;  %v1112_v27 = vsel %vm1093_vm6, %v1073_v49, %v1074_v35  ;;  %v1496_v18 = vmax.f32 %v1460_v52, 0.0 }
 0x222   : > { %v1196_v42 = vsel %vm1174_vm7, %v1111_v20, 0.0  ;;  %v1375_v63 = vadd.f32 %v1339_v17, %v1112_v27  ;;  %v1260_v15 = vpop.permute.xlu1 %1259  ;;  %v994_v1 = vpop.permute.xlu0 %993  ;;  %v1463_v36 = vadd.f32 %v3766_v34, %v1420_v51 }
 0x223   : > { %v1376_v26 = vadd.f32 %v1340_v54, %v1196_v42  ;;  %v3924_v0 = vpack.c.bf16 %v1496_v18, %v1495_v48  ;;  %v1079_v28 = vrot.slane %v994_v1, 1  ;;  %v1157_v54 = vsel %vm1131_vm5, %v3579_v37, 0.0 }
 0x224   : > { %v1418_v29 = vmul.f32 %v3738_v41, %v1375_v63  ;;  %v1159_v18 = vsel %vm1131_vm5, %v3589_v43, 0.0  ;;  %v1499_v63 = vmax.f32 %v1463_v36, 0.0 }
 0x225   : > { %v1419_v53 = vmul.f32 %v3738_v41, %v1376_v26  ;;  %1612 = vrot.lane.b32.xlu1 %v3924_v0, %s3174_s12  ;;  %1581 = vrot.lane.b32.xlu0 %v3924_v0, %s3173_s11 }
 0x226   : > { %v1256_v19 = vpop.permute.xlu1 %1255  ;;  %v990_v49 = vpop.permute.xlu0 %989  ;;  %v1461_v25 = vadd.f32 %v3766_v34, %v1418_v29  ;;  %v1345_v29 = vadd.f32 %v1260_v15, %v1159_v18 }
 0x227   : > { %v1077_v45 = vrot.slane %v990_v49, 1  ;;  %v1462_v46 = vadd.f32 %v3766_v34, %v1419_v53  ;;  %v1343_v8 = vadd.f32 %v1256_v19, %v1157_v54 }
 0x228   : > { %v1497_v13 = vmax.f32 %v1461_v25, 0.0 }
 0x229   : > { %v1109_v12 = vsel %vm1093_vm6, %v1076_v16, %v1077_v45  ;;  %v1498_v21 = vmax.f32 %v1462_v46, 0.0 }
 0x22a   : > { %v1198_v40 = vsel %vm1174_vm7, %v1109_v12, 0.0  ;;  %v1262_v11 = vpop.permute.xlu0 %1261  ;;  %v996_v35 = vpop.permute.xlu1 %995 }
 0x22b   : > { %v1378_v52 = vadd.f32 %v1342_v38, %v1198_v40  ;;  %v3940_v6 = vpack.c.bf16 %v1498_v21, %v1497_v13  ;;  %v1080_v17 = vrot.slane %v996_v35, 1 }
 0x22d   : > { %v1421_v48 = vmul.f32 %v3738_v41, %v1378_v52  ;;  %1583 = vrot.lane.b32.xlu1 %v3940_v6, %s3173_s11  ;;  %1614 = vrot.lane.b32.xlu0 %v3940_v6, %s3174_s12  ;;  %v1106_v42 = vsel %vm1093_vm6, %v1079_v28, %v1080_v17  ;;  %v1346_v52 = vadd.f32 %v1262_v11, %v3585_v39 }
 0x22e   : > { %v1258_v9 = vpop.permute.xlu0 %1257  ;;  %v992_v16 = vpop.permute.xlu1 %991  ;;  %v1381_v51 = vadd.f32 %v1345_v29, %v1106_v42  ;;  %v1161_v42 = vsel %vm1131_vm5, %v3599_v57, 0.0 }
 0x22f   : > { %v1078_v20 = vrot.slane %v992_v16, 1  ;;  %v1464_v27 = vadd.f32 %v3766_v34, %v1421_v48  ;;  %v1344_v1 = vadd.f32 %v1258_v9, %v3593_v44 }
 0x230   : > { %v1424_v40 = vmul.f32 %v3738_v41, %v1381_v51 }
 0x231   : > { %v1107_v26 = vsel %vm1093_vm6, %v1078_v20, %v1079_v28  ;;  %v1108_v37 = vsel %vm1093_vm6, %v1077_v45, %v1078_v20  ;;  %v1500_v3 = vmax.f32 %v1464_v27, 0.0 }
 0x232   : > { %v1200_v53 = vsel %vm1174_vm7, %v1107_v26, 0.0  ;;  %v1379_v49 = vadd.f32 %v1343_v8, %v1108_v37  ;;  %v1268_v43 = vpop.permute.xlu1 %1267  ;;  %v1002_v19 = vpop.permute.xlu0 %1001  ;;  %v1467_v18 = vadd.f32 %v3766_v34, %v1424_v40  ;;  %v1163_v26 = vsel %vm1131_vm5, %v3609_v59, 0.0 }
 0x233   : > { %v1380_v25 = vadd.f32 %v1344_v1, %v1200_v53  ;;  %v3964_v46 = vpack.c.bf16 %v1500_v3, %v1499_v63  ;;  %v1083_v39 = vrot.slane %v1002_v19, 1 }
 0x234   : > { %v1422_v44 = vmul.f32 %v3738_v41, %v1379_v49  ;;  %v1503_v29 = vmax.f32 %v1467_v18, 0.0 }
 0x235   : > { %v1423_v13 = vmul.f32 %v3738_v41, %v1380_v25  ;;  %1616 = vrot.lane.b32.xlu1 %v3964_v46, %s3174_s12  ;;  %1585 = vrot.lane.b32.xlu0 %v3964_v46, %s3173_s11  ;;  %v1349_v25 = vadd.f32 %v1268_v43, %v1163_v26 }
 0x236   : > { %v1264_v15 = vpop.permute.xlu1 %1263  ;;  %v998_v45 = vpop.permute.xlu0 %997  ;;  %v1465_v38 = vadd.f32 %v3766_v34, %v1422_v44 }
 0x237   : > { %v1081_v12 = vrot.slane %v998_v45, 1  ;;  %v1466_v21 = vadd.f32 %v3766_v34, %v1423_v13  ;;  %v1347_v37 = vadd.f32 %v1264_v15, %v1161_v42 }
 0x238   : > { %v1501_v35 = vmax.f32 %v1465_v38, 0.0 }
 0x239   : > { %v1105_v36 = vsel %vm1093_vm6, %v1080_v17, %v1081_v12  ;;  %v1502_v48 = vmax.f32 %v1466_v21, 0.0 }
 0x23a   : > { %v1202_v28 = vsel %vm1174_vm7, %v1105_v36, 0.0  ;;  %v1270_v9 = vpop.permute.xlu0 %1269  ;;  %v1004_v16 = vpop.permute.xlu1 %1003 }
 0x23b   : > { %v1382_v54 = vadd.f32 %v1346_v52, %v1202_v28  ;;  %v3980_v20 = vpack.c.bf16 %v1502_v48, %v1501_v35  ;;  %v1084_v27 = vrot.slane %v1004_v16, 1  ;;  %v1350_v28 = vadd.f32 %v1270_v9, %v3605_v58 }
 0x23c   : > { %v1167_v58 = vsel %vm1131_vm5, %v3631_v23, 0.0 }
 0x23d   : > { %v1425_v8 = vmul.f32 %v3738_v41, %v1382_v54  ;;  %1587 = vrot.lane.b32.xlu1 %v3980_v20, %s3173_s11  ;;  %1618 = vrot.lane.b32.xlu0 %v3980_v20, %s3174_s12  ;;  %v1102_v3 = vsel %vm1093_vm6, %v1083_v39, %v1084_v27 }
 0x23e   : > { %v1266_v11 = vpop.permute.xlu0 %1265  ;;  %v1000_v17 = vpop.permute.xlu1 %999  ;;  %v1385_v38 = vadd.f32 %v1349_v25, %v1102_v3 }
 0x23f   : > { %v1082_v63 = vrot.slane %v1000_v17, 1  ;;  %v1468_v1 = vadd.f32 %v3766_v34, %v1425_v8  ;;  %v1348_v53 = vadd.f32 %v1266_v11, %v3613_v60 }
 0x240   : > { %v1428_v36 = vmul.f32 %v3738_v41, %v1385_v38 }
 0x241   : > { %v1103_v49 = vsel %vm1093_vm6, %v1082_v63, %v1083_v39  ;;  %v1104_v57 = vsel %vm1093_vm6, %v1081_v12, %v1082_v63  ;;  %v1504_v19 = vmax.f32 %v1468_v1, 0.0 }
 0x242   : > { %v1204_v51 = vsel %vm1174_vm7, %v1103_v49, 0.0  ;;  %v1383_v44 = vadd.f32 %v1347_v37, %v1104_v57  ;;  %v1276_v59 = vpop.permute.xlu1 %1275  ;;  %v1010_v13 = vpop.permute.xlu0 %1009  ;;  %v1471_v1 = vadd.f32 %v3766_v34, %v1428_v36 }
 0x243   : > { %v1384_v15 = vadd.f32 %v1348_v53, %v1204_v51  ;;  %v4004_v45 = vpack.c.bf16 %v1504_v19, %v1503_v29  ;;  %v1087_v11 = vrot.slane %v1010_v13, 1  ;;  %v1353_v26 = vadd.f32 %v1276_v59, %v1167_v58 }
 0x244   : > { %v1426_v60 = vmul.f32 %v3738_v41, %v1383_v44  ;;  %v1165_v29 = vsel %vm1131_vm5, %v3619_v22, 0.0  ;;  %v1507_v19 = vmax.f32 %v1471_v1, 0.0 }
 0x245   : > { %v1427_v21 = vmul.f32 %v3738_v41, %v1384_v15  ;;  %1620 = vrot.lane.b32.xlu1 %v4004_v45, %s3174_s12  ;;  %1589 = vrot.lane.b32.xlu0 %v4004_v45, %s3173_s11 }
 0x246   : > { %v1272_v43 = vpop.permute.xlu1 %1271  ;;  %v1006_v12 = vpop.permute.xlu0 %1005  ;;  %v1469_v40 = vadd.f32 %v3766_v34, %v1426_v60 }
 0x247   : > { %v1085_v35 = vrot.slane %v1006_v12, 1  ;;  %v1470_v52 = vadd.f32 %v3766_v34, %v1427_v21  ;;  %v1351_v49 = vadd.f32 %v1272_v43, %v1165_v29 }
 0x248   : > { %v1505_v48 = vmax.f32 %v1469_v40, 0.0 }
 0x249   : > { %v1101_v16 = vsel %vm1093_vm6, %v1084_v27, %v1085_v35  ;;  %v1506_v54 = vmax.f32 %v1470_v52, 0.0 }
 0x24a   : > { %v1206_v18 = vsel %vm1174_vm7, %v1101_v16, 0.0  ;;  %v1278_v8 = vpop.permute.xlu0 %1277  ;;  %v1012_v39 = vpop.permute.xlu1 %1011 }
 0x24b   : > { %v1386_v17 = vadd.f32 %v1350_v28, %v1206_v18  ;;  %v1088_v42 = vrot.slane %v1012_v39, 1  ;;  %v4020_v63 = vpack.c.bf16 %v1506_v54, %v1505_v48  ;;  %v1354_v40 = vadd.f32 %v1278_v8, %v3627_v7 }
 0x24c   : > { %v1171_v7 = vsel %vm1131_vm5, %v3671_v62, 0.0 }
 0x24d   : > { %v1429_v9 = vmul.f32 %v3738_v41, %v1386_v17  ;;  %v1098_v27 = vsel %vm1093_vm6, %v1087_v11, %v1088_v42  ;;  %1591 = vrot.lane.b32.xlu1 %v4020_v63, %s3173_s11  ;;  %1622 = vrot.lane.b32.xlu0 %v4020_v63, %s3174_s12 }
 0x24e   : > { %v1274_v37 = vpop.permute.xlu0 %1273  ;;  %v1008_v3 = vpop.permute.xlu1 %1007  ;;  %v1389_v57 = vadd.f32 %v1353_v26, %v1098_v27 }
 0x24f   : > { %v1086_v53 = vrot.slane %v1008_v3, 1  ;;  %v1472_v23 = vadd.f32 %v3766_v34, %v1429_v9  ;;  %v1352_v25 = vadd.f32 %v1274_v37, %v3635_v24 }
 0x250   : > { %v1432_v12 = vmul.f32 %v3738_v41, %v1389_v57 }
 0x251   : > { %v1099_v51 = vsel %vm1093_vm6, %v1086_v53, %v1087_v11  ;;  %v1100_v44 = vsel %vm1093_vm6, %v1085_v35, %v1086_v53  ;;  %v1508_v59 = vmax.f32 %v1472_v23, 0.0 }
 0x252   : > { %v1208_v13 = vsel %vm1174_vm7, %v1099_v51, 0.0  ;;  %v1387_v15 = vadd.f32 %v1351_v49, %v1100_v44  ;;  %v1018_v22 = vpop.permute.xlu1 %1017  ;;  %v1014_v38 = vpop.permute.xlu0 %1013  ;;  %v1169_v51 = vsel %vm1131_vm5, %v3655_v50, 0.0 }
 0x253   : > { %v1388_v60 = vadd.f32 %v1352_v25, %v1208_v13  ;;  %v1089_v21 = vrot.slane %v1014_v38, 1  ;;  %v4044_v43 = vpack.c.bf16 %v1508_v59, %v1507_v19  ;;  %v1091_v36 = vrot.slane %v1018_v22, 1 }
 0x254   : > { %v1430_v24 = vmul.f32 %v3738_v41, %v1387_v15 }
 0x255   : > { %v1431_v52 = vmul.f32 %v3738_v41, %v1388_v60  ;;  %v1097_v35 = vsel %vm1093_vm6, %v1088_v42, %v1089_v21  ;;  %1624 = vrot.lane.b32.xlu1 %v4044_v43, %s3174_s12  ;;  %1593 = vrot.lane.b32.xlu0 %v4044_v43, %s3173_s11  ;;  %v1475_v42 = vadd.f32 %v3766_v34, %v1432_v12 }
 0x256   : > { %v1210_v48 = vsel %vm1174_vm7, %v1097_v35, 0.0  ;;  %v1284_v28 = vpop.permute.xlu0 %1283  ;;  %v1020_v16 = vpop.permute.xlu1 %1019  ;;  %v1473_v54 = vadd.f32 %v3766_v34, %v1430_v24 }
 0x257   : > { %v1390_v18 = vadd.f32 %v1354_v40, %v1210_v48  ;;  %v1357_v8 = vadd.f32 %v1284_v28, %v1171_v7  ;;  %v1092_v39 = vrot.slane %v1020_v16, 1  ;;  %v1474_v11 = vadd.f32 %v3766_v34, %v1431_v52 }
 0x258   : > { %v1509_v17 = vmax.f32 %v1473_v54, 0.0 }
 0x259   : > { %v1433_v1 = vmul.f32 %v3738_v41, %v1390_v18  ;;  %v1094_v58 = vsel %vm1093_vm6, %v1091_v36, %v1092_v39  ;;  %v1129_v62 = vsel %vm1093_vm6, %v1092_v39, %v1057_v10  ;;  %v1510_v9 = vmax.f32 %v1474_v11, 0.0 }
 0x25a   : > { %v1393_v27 = vadd.f32 %v1357_v8, %v1094_v58  ;;  %v1286_v26 = vpop.permute.xlu1 %1285  ;;  %v1016_v37 = vpop.permute.xlu0 %1015  ;;  %v1214_v57 = vsel %vm1174_vm7, %v1129_v62, 0.0  ;;  %v1511_v10 = vmax.f32 %v1475_v42, 0.0  ;;  %v1551_v8 = vmul.bf16 0.0, %v3788_v61 }
 0x25b   : > { %v1358_v3 = vadd.f32 %v1286_v26, %v3667_v56  ;;  %v1090_v29 = vrot.slane %v1016_v37, 1  ;;  %v4072_v53 = vpack.c.bf16 %v1510_v9, %v1509_v17  ;;  %v1476_v23 = vadd.f32 %v3766_v34, %v1433_v1 }
 0x25c   : > { %v1436_v49 = vmul.f32 %v3738_v41, %v1393_v27 }
 0x25d   : > { %v1394_v14 = vadd.f32 %v1358_v3, %v1214_v57  ;;  %1595 = vrot.lane.b32.xlu1 %v4072_v53, %s3173_s11  ;;  %1626 = vrot.lane.b32.xlu0 %v4072_v53, %s3174_s12  ;;  %v1095_v56 = vsel %vm1093_vm6, %v1090_v29, %v1091_v36  ;;  %v1512_v19 = vmax.f32 %v1476_v23, 0.0  ;;  %v1096_v12 = vsel %vm1093_vm6, %v1089_v21, %v1090_v29 }
 0x25e   : > { %v1282_v25 = vpop.permute.xlu1 %1281  ;;  %v1280_v44 = vpop.permute.xlu0 %1279  ;;  %v1479_v59 = vadd.f32 %v3766_v34, %v1436_v49  ;;  %v1212_v60 = vsel %vm1174_vm7, %v1095_v56, 0.0 }
 0x25f   : > { %v1437_v13 = vmul.f32 %v3738_v41, %v1394_v14  ;;  %v1356_v15 = vadd.f32 %v1282_v25, %v3675_v4  ;;  %v1355_v22 = vadd.f32 %v1280_v44, %v1169_v51  ;;  %v4090_v38 = vpack.c.bf16 %v1512_v19, %v1511_v10 }
 0x260   : > { %v1515_v36 = vmax.f32 %v1479_v59, 0.0 }
 0x261   : > { %v1480_v24 = vadd.f32 %v3766_v34, %v1437_v13  ;;  %v1392_v40 = vadd.f32 %v1356_v15, %v1212_v60  ;;  %v1391_v50 = vadd.f32 %v1355_v22, %v1096_v12  ;;  %1628 = vrot.lane.b32.xlu1 %v4090_v38, %s3174_s12  ;;  %1597 = vrot.lane.b32.xlu0 %v4090_v38, %s3173_s11 }
 0x263   : > { %v1516_v4 = vmax.f32 %v1480_v24, 0.0  ;;  %v1435_v52 = vmul.f32 %v3738_v41, %v1392_v40  ;;  %v1434_v35 = vmul.f32 %v3738_v41, %v1391_v50  ;;  %v1570_v18 = vpop.permute.xlu0 %1569 }
 0x264   : > { %v1636_v11 = vsel %vm521_vm1, %v1551_v8, %v1570_v18 }
 0x265   : > { %v1478_v48 = vadd.f32 %v3766_v34, %v1435_v52  ;;  %v1477_v21 = vadd.f32 %v3766_v34, %v1434_v35  ;;  %v1534_v28 = vpack.c.bf16 %v1516_v4, %v1515_v36 }
 0x267   : > { %v1514_v7 = vmax.f32 %v1478_v48, 0.0  ;;  %v1513_v16 = vmax.f32 %v1477_v21, 0.0  ;;  %v1552_v39 = vmul.bf16 0.0, %v1534_v28 }
 0x269   : > { %v1533_v54 = vpack.c.bf16 %v1514_v7, %v1513_v16 }
 0x26b   : > { %1630 = vrot.lane.b32.xlu0 %v1533_v54, %s3174_s12  ;;  %1599 = vrot.lane.b32.xlu1 %v1533_v54, %s3173_s11 }
 0x26f   : > { %v1603_v41 = vpop.permute.xlu0 %1602  ;;  %1632 = vrot.lane.b32.xlu1 %v1552_v39, %s3174_s12  ;;  %v1572_v34 = vpop.permute.xlu1 %1571 }
 0x270   : > { %v1683_v17 = vsel %vm576_vm2, %v1636_v11, %v1603_v41  ;;  %v1639_v42 = vsel %vm521_vm1, %v3786_v47, %v1572_v34 }
 0x271   : > { %3032 = vmatprep.mubr.msk.bf16.mxu1 %vm620_vm3, %v1683_v17 }
 0x277   : > { %v1605_v1 = vpop.permute.xlu1 %1604  ;;  %v1574_v61 = vpop.permute.xlu0 %1573 }
 0x278   : > { %v1685_v58 = vsel %vm576_vm2, %v1639_v42, %v1605_v1  ;;  %v1642_v62 = vsel %vm521_vm1, %v3820_v5, %v1574_v61 }
 0x279   : > { %3033 = vmatmul.mubr.msk.bf16.vlgmr.msra.gmra.mrb[0].mxu1 %vm620_vm3, %v1685_v58 }
 0x27f   : > { %v1607_v9 = vpop.permute.xlu0 %1606  ;;  %v1576_v26 = vpop.permute.xlu1 %1575 }
 0x280   : > { %v1687_v27 = vsel %vm576_vm2, %v1642_v62, %v1607_v9  ;;  %v1645_v37 = vsel %vm521_vm1, %v3844_v31, %v1576_v26 }
 0x281   : > { %3036 = vmatprep.mubr.msk.bf16.mxu1 %vm620_vm3, %v1687_v27 }
 0x287   : > { %v1609_v3 = vpop.permute.xlu1 %1608  ;;  %v1578_v29 = vpop.permute.xlu0 %1577 }
 0x288   : > { %v1689_v47 = vsel %vm576_vm2, %v1645_v37, %v1609_v3  ;;  %v1648_v23 = vsel %vm521_vm1, %v3860_v30, %v1578_v29 }
 0x289   : > { %3037 = vmatmul.mubr.msk.bf16.gmra.mrb[4].mxu1 %vm620_vm3, %v1689_v47 }
 0x28f   : > { %v1611_v49 = vpop.permute.xlu0 %1610  ;;  %v1580_v57 = vpop.permute.xlu1 %1579 }
 0x290   : > { %v1691_v5 = vsel %vm576_vm2, %v1648_v23, %v1611_v49  ;;  %v1651_v14 = vsel %vm521_vm1, %v3884_v32, %v1580_v57 }
 0x291   : > { %3040 = vmatprep.mubr.msk.bf16.mxu1 %vm620_vm3, %v1691_v5 }
 0x297   : > { %v1613_v56 = vpop.permute.xlu1 %1612  ;;  %v1582_v10 = vpop.permute.xlu0 %1581 }
 0x298   : > { %v1693_v31 = vsel %vm576_vm2, %v1651_v14, %v1613_v56  ;;  %v1654_v19 = vsel %vm521_vm1, %v3900_v2, %v1582_v10 }
 0x299   : > { %3041 = vmatmul.mubr.msk.bf16.gmra.mrb[8].mxu1 %vm620_vm3, %v1693_v31 }
 0x29f   : > { %v1615_v25 = vpop.permute.xlu0 %1614  ;;  %v1584_v51 = vpop.permute.xlu1 %1583 }
 0x2a0   : > { %v1695_v30 = vsel %vm576_vm2, %v1654_v19, %v1615_v25  ;;  %v1657_v44 = vsel %vm521_vm1, %v3924_v0, %v1584_v51 }
 0x2a1   : > { %3044 = vmatprep.mubr.msk.bf16.mxu1 %vm620_vm3, %v1695_v30 }
 0x2a7   : > { %v1617_v59 = vpop.permute.xlu1 %1616  ;;  %v1586_v13 = vpop.permute.xlu0 %1585 }
 0x2a8   : > { %v1697_v32 = vsel %vm576_vm2, %v1657_v44, %v1617_v59  ;;  %v1660_v15 = vsel %vm521_vm1, %v3940_v6, %v1586_v13 }
 0x2a9   : > { %3045 = vmatmul.mubr.msk.bf16.gmra.mrb[12].mxu1 %vm620_vm3, %v1697_v32 }
 0x2af   : > { %v1619_v22 = vpop.permute.xlu0 %1618  ;;  %v1588_v60 = vpop.permute.xlu1 %1587 }
 0x2b0   : > { %v1699_v2 = vsel %vm576_vm2, %v1660_v15, %v1619_v22  ;;  %v1663_v12 = vsel %vm521_vm1, %v3964_v46, %v1588_v60 }
 0x2b1   : > { %3048 = vmatprep.mubr.msk.bf16.mxu1 %vm620_vm3, %v1699_v2 }
 0x2b7   : > { %v1621_v24 = vpop.permute.xlu1 %1620  ;;  %v1590_v40 = vpop.permute.xlu0 %1589 }
 0x2b8   : > { %v1701_v0 = vsel %vm576_vm2, %v1663_v12, %v1621_v24  ;;  %v1666_v50 = vsel %vm521_vm1, %v3980_v20, %v1590_v40 }
 0x2b9   : > { %3049 = vmatmul.mubr.msk.bf16.gmra.mrb[16].mxu1 %vm620_vm3, %v1701_v0 }
 0x2bf   : > { %v1623_v4 = vpop.permute.xlu0 %1622  ;;  %v1592_v52 = vpop.permute.xlu1 %1591 }
 0x2c0   : > { %v1703_v6 = vsel %vm576_vm2, %v1666_v50, %v1623_v4  ;;  %v1669_v35 = vsel %vm521_vm1, %v4004_v45, %v1592_v52 }
 0x2c1   : > { %3052 = vmatprep.mubr.msk.bf16.mxu1 %vm620_vm3, %v1703_v6 }
 0x2c7   : > { %v1625_v36 = vpop.permute.xlu1 %1624  ;;  %v1594_v48 = vpop.permute.xlu0 %1593 }
 0x2c8   : > { %v1705_v46 = vsel %vm576_vm2, %v1669_v35, %v1625_v36  ;;  %v1672_v21 = vsel %vm521_vm1, %v4020_v63, %v1594_v48 }
 0x2c9   : > { %3053 = vmatmul.mubr.msk.bf16.gmra.mrb[20].mxu1 %vm620_vm3, %v1705_v46 }
 0x2cf   : > { %v1596_v28 = vpop.permute.xlu1 %1595  ;;  %v1627_v20 = vpop.permute.xlu0 %1626 }
 0x2d0   : > { %v1707_v7 = vsel %vm576_vm2, %v1672_v21, %v1627_v20  ;;  %v1675_v16 = vsel %vm521_vm1, %v4044_v43, %v1596_v28 }
 0x2d1   : > { %3056 = vmatprep.mubr.msk.bf16.mxu1 %vm620_vm3, %v1707_v7 }
 0x2d3   : > { %v1629_v54 = vpop.permute.xlu1 %1628  ;;  %v1598_v18 = vpop.permute.xlu0 %1597 }
 0x2d4   : > { %v1709_v45 = vsel %vm576_vm2, %v1675_v16, %v1629_v54  ;;  %v1678_v8 = vsel %vm521_vm1, %v4072_v53, %v1598_v18 }
 0x2d5   : > { %3057 = vmatmul.mubr.msk.bf16.gmra.mrb[24].mxu1 %vm620_vm3, %v1709_v45 }
 0x2dd   : > { %v1631_v39 = vpop.permute.xlu0 %1630  ;;  %v1600_v63 = vpop.permute.xlu1 %1599 }
 0x2de   : > { %v1711_v11 = vsel %vm576_vm2, %v1678_v8, %v1631_v39  ;;  %v1681_v41 = vsel %vm521_vm1, %v4090_v38, %v1600_v63 }
 0x2df   : > { %3060 = vmatprep.mubr.msk.bf16.mxu1 %vm620_vm3, %v1711_v11 }
 0x2e1   : > { %v1633_v17 = vpop.permute.xlu1 %1632 }
 0x2e2   : > { %v1713_v43 = vsel %vm576_vm2, %v1681_v41, %v1633_v17 }
 0x2e3   : > { %3061 = vmatmul.mubr.msk.bf16.gmra.mrb[28].mxu1 %vm620_vm3, %v1713_v43 }
 0x34c   : > { %v3034_v34 = vpop.f32.mrb[0].mxu1 }
 0x34d   : > { %v4172_v42 = vpop.f32.mrb[1].mxu1  ;;  %2017 = vrot.lane.b32.xlu0 %v3034_v34, %s3176_s14  ;;  %v1919_v1 = vrot.slane %v3034_v34, 7 }
 0x34e   : > { %v3035_v53 = vpop.f32.mrb[2].mxu1  ;;  %v1917_v62 = vrot.slane %v4172_v42, 7 }
 0x34f   : > { %v1920_v58 = vrot.slane %v3035_v53, 7  ;;  %v1793_v61 = vpop.f32.mrb[3].mxu1  ;;  %2019 = vrot.lane.b32.xlu1 %v3035_v53, %s3176_s14 }
 0x350   : > { %v1918_v9 = vrot.slane %v1793_v61, 7 }
 0x351   : > { %2241 = vrot.lane.b32.xlu0 %v3034_v34, %s3175_s13  ;;  %v4180_v38 = vsel %vm876_vm4, %v1919_v1, %v1920_v58 }
 0x352   : > { %v4184_v27 = vsel %vm876_vm4, %v1918_v9, %v1919_v1  ;;  %v4190_v26 = vsel %vm876_vm4, %v1917_v62, %v1918_v9 }
 0x353   : > { %2243 = vrot.lane.b32.xlu1 %v3035_v53, %s3175_s13 }
 0x355   : > { %2013 = vrot.lane.b32.xlu0 %v4172_v42, %s3176_s14 }
 0x357   : > { %2015 = vrot.lane.b32.xlu1 %v1793_v61, %s3176_s14 }
 0x359   : > { %2237 = vrot.lane.b32.xlu0 %v4172_v42, %s3175_s13 }
 0x35b   : > { %2239 = vrot.lane.b32.xlu1 %v1793_v61, %s3175_s13 }
 0x35c   : > { %v3038_v37 = vpop.f32.mrb[4].mxu1 }
 0x35d   : > { %v1806_v3 = vpop.f32.mrb[5].mxu1  ;;  %2025 = vrot.lane.b32.xlu0 %v3038_v37, %s3176_s14  ;;  %v1923_v23 = vrot.slane %v3038_v37, 7 }
 0x35e   : > { %v1921_v47 = vrot.slane %v1806_v3, 7  ;;  %v3039_v29 = vpop.f32.mrb[6].mxu1 }
 0x35f   : > { %v1924_v49 = vrot.slane %v3039_v29, 7  ;;  %v1809_v5 = vpop.f32.mrb[7].mxu1  ;;  %2027 = vrot.lane.b32.xlu1 %v3039_v29, %s3176_s14 }
 0x360   : > { %v1922_v57 = vrot.slane %v1809_v5, 7  ;;  %v4203_v14 = vsel %vm876_vm4, %v1920_v58, %v1921_v47 }
 0x361   : > { %2249 = vrot.lane.b32.xlu0 %v3038_v37, %s3175_s13  ;;  %v4208_v56 = vsel %vm876_vm4, %v1923_v23, %v1924_v49 }
 0x362   : > { %v4212_v31 = vsel %vm876_vm4, %v1922_v57, %v1923_v23  ;;  %v4216_v10 = vsel %vm876_vm4, %v1921_v47, %v1922_v57 }
 0x363   : > { %2251 = vrot.lane.b32.xlu1 %v3039_v29, %s3175_s13 }
 0x365   : > { %2021 = vrot.lane.b32.xlu0 %v1806_v3, %s3176_s14 }
 0x367   : > { %2023 = vrot.lane.b32.xlu1 %v1809_v5, %s3176_s14 }
 0x369   : > { %2245 = vrot.lane.b32.xlu0 %v1806_v3, %s3175_s13 }
 0x36b   : > { %2247 = vrot.lane.b32.xlu1 %v1809_v5, %s3175_s13 }
 0x36c   : > { %v3042_v19 = vpop.f32.mrb[8].mxu1 }
 0x36d   : > { %v1822_v25 = vpop.f32.mrb[9].mxu1  ;;  %2033 = vrot.lane.b32.xlu0 %v3042_v19, %s3176_s14  ;;  %v1927_v44 = vrot.slane %v3042_v19, 7 }
 0x36e   : > { %v1925_v30 = vrot.slane %v1822_v25, 7  ;;  %v3043_v51 = vpop.f32.mrb[10].mxu1 }
 0x36f   : > { %v1928_v59 = vrot.slane %v3043_v51, 7  ;;  %v1825_v32 = vpop.f32.mrb[11].mxu1  ;;  %2035 = vrot.lane.b32.xlu1 %v3043_v51, %s3176_s14 }
 0x370   : > { %v1926_v13 = vrot.slane %v1825_v32, 7  ;;  %v4227_v15 = vsel %vm876_vm4, %v1924_v49, %v1925_v30 }
 0x371   : > { %2257 = vrot.lane.b32.xlu0 %v3042_v19, %s3175_s13  ;;  %v4232_v22 = vsel %vm876_vm4, %v1927_v44, %v1928_v59 }
 0x372   : > { %v4236_v2 = vsel %vm876_vm4, %v1926_v13, %v1927_v44  ;;  %v4240_v60 = vsel %vm876_vm4, %v1925_v30, %v1926_v13 }
 0x373   : > { %2259 = vrot.lane.b32.xlu1 %v3043_v51, %s3175_s13 }
 0x375   : > { %2029 = vrot.lane.b32.xlu0 %v1822_v25, %s3176_s14 }
 0x377   : > { %2031 = vrot.lane.b32.xlu1 %v1825_v32, %s3176_s14 }
 0x379   : > { %2253 = vrot.lane.b32.xlu0 %v1822_v25, %s3175_s13 }
 0x37b   : > { %2255 = vrot.lane.b32.xlu1 %v1825_v32, %s3175_s13 }
 0x37c   : > { %v3046_v12 = vpop.f32.mrb[12].mxu1 }
 0x37d   : > { %v1838_v24 = vpop.f32.mrb[13].mxu1  ;;  %2041 = vrot.lane.b32.xlu0 %v3046_v12, %s3176_s14  ;;  %v1931_v50 = vrot.slane %v3046_v12, 7 }
 0x37e   : > { %v1929_v0 = vrot.slane %v1838_v24, 7  ;;  %v3047_v40 = vpop.f32.mrb[14].mxu1 }
 0x37f   : > { %v1932_v4 = vrot.slane %v3047_v40, 7  ;;  %v1841_v6 = vpop.f32.mrb[15].mxu1  ;;  %2043 = vrot.lane.b32.xlu1 %v3047_v40, %s3176_s14 }
 0x380   : > { %v1930_v52 = vrot.slane %v1841_v6, 7  ;;  %v4251_v35 = vsel %vm876_vm4, %v1928_v59, %v1929_v0 }
 0x381   : > { %2265 = vrot.lane.b32.xlu0 %v3046_v12, %s3175_s13  ;;  %v4256_v36 = vsel %vm876_vm4, %v1931_v50, %v1932_v4 }
 0x382   : > { %v4260_v46 = vsel %vm876_vm4, %v1930_v52, %v1931_v50  ;;  %v4264_v48 = vsel %vm876_vm4, %v1929_v0, %v1930_v52 }
 0x383   : > { %2267 = vrot.lane.b32.xlu1 %v3047_v40, %s3175_s13 }
 0x385   : > { %2037 = vrot.lane.b32.xlu0 %v1838_v24, %s3176_s14 }
 0x387   : > { %2039 = vrot.lane.b32.xlu1 %v1841_v6, %s3176_s14 }
 0x389   : > { %2261 = vrot.lane.b32.xlu0 %v1838_v24, %s3175_s13 }
 0x38b   : > { %2263 = vrot.lane.b32.xlu1 %v1841_v6, %s3175_s13 }
 0x38c   : > { %v3050_v21 = vpop.f32.mrb[16].mxu1 }
 0x38d   : > { %v1854_v28 = vpop.f32.mrb[17].mxu1  ;;  %2049 = vrot.lane.b32.xlu0 %v3050_v21, %s3176_s14  ;;  %v1935_v16 = vrot.slane %v3050_v21, 7 }
 0x38e   : > { %v1933_v20 = vrot.slane %v1854_v28, 7  ;;  %v3051_v7 = vpop.f32.mrb[18].mxu1 }
 0x38f   : > { %v1936_v54 = vrot.slane %v3051_v7, 7  ;;  %v1857_v45 = vpop.f32.mrb[19].mxu1  ;;  %2051 = vrot.lane.b32.xlu1 %v3051_v7, %s3176_s14 }
 0x390   : > { %v1934_v18 = vrot.slane %v1857_v45, 7  ;;  %v4275_v8 = vsel %vm876_vm4, %v1932_v4, %v1933_v20 }
 0x391   : > { %2273 = vrot.lane.b32.xlu0 %v3050_v21, %s3175_s13  ;;  %v4280_v39 = vsel %vm876_vm4, %v1935_v16, %v1936_v54 }
 0x392   : > { %v4284_v63 = vsel %vm876_vm4, %v1934_v18, %v1935_v16  ;;  %v4288_v11 = vsel %vm876_vm4, %v1933_v20, %v1934_v18 }
 0x393   : > { %2275 = vrot.lane.b32.xlu1 %v3051_v7, %s3175_s13 }
 0x395   : > { %2045 = vrot.lane.b32.xlu0 %v1854_v28, %s3176_s14 }
 0x397   : > { %2047 = vrot.lane.b32.xlu1 %v1857_v45, %s3176_s14 }
 0x399   : > { %2269 = vrot.lane.b32.xlu0 %v1854_v28, %s3175_s13 }
 0x39b   : > { %2271 = vrot.lane.b32.xlu1 %v1857_v45, %s3175_s13  ;;  %v2175_v45 = vsel %vm1131_vm5, %v4184_v27, 0.0  ;;  %v4386_v27 = vld [vmem:[%s4804_s6] ss:$0 sm:$0xff] }
 0x39c   : > { %v3054_v41 = vpop.f32.mrb[20].mxu1 }
 0x39d   : > { %v1870_v17 = vpop.f32.mrb[21].mxu1  ;;  %2057 = vrot.lane.b32.xlu0 %v3054_v41, %s3176_s14  ;;  %v1939_v53 = vrot.slane %v3054_v41, 7 }
 0x39e   : > { %v1937_v43 = vrot.slane %v1870_v17, 7  ;;  %v3055_v34 = vpop.f32.mrb[22].mxu1 }
 0x39f   : > { %v1940_v1 = vrot.slane %v3055_v34, 7  ;;  %v1873_v58 = vpop.f32.mrb[23].mxu1  ;;  %2059 = vrot.lane.b32.xlu1 %v3055_v34, %s3176_s14 }
 0x3a0   : > { %v1938_v61 = vrot.slane %v1873_v58, 7  ;;  %v4299_v9 = vsel %vm876_vm4, %v1936_v54, %v1937_v43 }
 0x3a1   : > { %2281 = vrot.lane.b32.xlu0 %v3054_v41, %s3175_s13  ;;  %v4304_v37 = vsel %vm876_vm4, %v1939_v53, %v1940_v1 }
 0x3a2   : > { %v4308_v3 = vsel %vm876_vm4, %v1938_v61, %v1939_v53  ;;  %v4312_v47 = vsel %vm876_vm4, %v1937_v43, %v1938_v61  ;;  %v4380_v43 = vld [vmem:[%s4803_s5] ss:$0 sm:$0xff] }
 0x3a3   : > { %2283 = vrot.lane.b32.xlu1 %v3055_v34, %s3175_s13 }
 0x3a5   : > { %2053 = vrot.lane.b32.xlu0 %v1870_v17, %s3176_s14 }
 0x3a7   : > { %2055 = vrot.lane.b32.xlu1 %v1873_v58, %s3176_s14 }
 0x3a8   : > { %v3058_v29 = vpop.f32.mrb[24].mxu1 }
 0x3a9   : > { %v1886_v23 = vpop.f32.mrb[25].mxu1  ;;  %2277 = vrot.lane.b32.xlu0 %v1870_v17, %s3175_s13  ;;  %v1943_v57 = vrot.slane %v3058_v29, 7 }
 0x3aa   : > { %v1941_v49 = vrot.slane %v1886_v23, 7  ;;  %v3059_v5 = vpop.f32.mrb[26].mxu1 }
 0x3ab   : > { %v1944_v19 = vrot.slane %v3059_v5, 7  ;;  %v1889_v25 = vpop.f32.mrb[27].mxu1  ;;  %2279 = vrot.lane.b32.xlu1 %v1873_v58, %s3175_s13  ;;  %v4392_v58 = vld [vmem:[%s3246_s10 + $0x18] sm:$0xff]  }
 0x3ac   : > { %v1942_v30 = vrot.slane %v1889_v25, 7  ;;  %v4321_v51 = vsel %vm876_vm4, %v1940_v1, %v1941_v49  ;;  %v2399_v61 = vunpack.c.l.bf16 %v4392_v58 }
 0x3ad   : > { %2065 = vrot.lane.b32.xlu0 %v3058_v29, %s3176_s14  ;;  %v4326_v44 = vsel %vm876_vm4, %v1943_v57, %v1944_v19 }
 0x3ae   : > { %v4330_v59 = vsel %vm876_vm4, %v1942_v30, %v1943_v57  ;;  %v4334_v32 = vsel %vm876_vm4, %v1941_v49, %v1942_v30 }
 0x3af   : > { %2067 = vrot.lane.b32.xlu1 %v3059_v5, %s3176_s14 }
 0x3b1   : > { %2289 = vrot.lane.b32.xlu0 %v3058_v29, %s3175_s13 }
 0x3b3   : > { %2291 = vrot.lane.b32.xlu1 %v3059_v5, %s3175_s13 }
 0x3b5   : > { %2061 = vrot.lane.b32.xlu0 %v1886_v23, %s3176_s14 }
 0x3b6   : > { %v3062_v13 = vpop.f32.mrb[28].mxu1 }
 0x3b7   : > { %2063 = vrot.lane.b32.xlu1 %v1889_v25, %s3176_s14  ;;  %v1902_v12 = vpop.f32.mrb[29].mxu1  ;;  %v1947_v40 = vrot.slane %v3062_v13, 7 }
 0x3b8   : > { %v1945_v24 = vrot.slane %v1902_v12, 7  ;;  %v3063_v0 = vpop.f32.mrb[30].mxu1 }
 0x3b9   : > { %v1948_v50 = vrot.slane %v3063_v0, 7  ;;  %2285 = vrot.lane.b32.xlu0 %v1886_v23, %s3175_s13  ;;  %v1905_v4 = vpop.f32.mrb[31].mxu1 }
 0x3ba   : > { %v1946_v6 = vrot.slane %v1905_v4, 7  ;;  %v4344_v52 = vsel %vm876_vm4, %v1944_v19, %v1945_v24 }
 0x3bb   : > { %2287 = vrot.lane.b32.xlu1 %v1889_v25, %s3175_s13  ;;  %v1980_v21 = vsel %vm876_vm4, %v1948_v50, %v1917_v62  ;;  %v4353_v28 = vsel %vm876_vm4, %v1947_v40, %v1948_v50 }
 0x3bc   : > { %v4357_v20 = vsel %vm876_vm4, %v1945_v24, %v1946_v6  ;;  %v4361_v7 = vsel %vm876_vm4, %v1946_v6, %v1947_v40  ;;  %v2173_v25 = vsel %vm1131_vm5, %v1980_v21, 0.0 }
 0x3bd   : > { %2073 = vrot.lane.b32.xlu0 %v3062_v13, %s3176_s14 }
 0x3bf   : > { %v2018_v16 = vpop.permute.xlu0 %2017  ;;  %2075 = vrot.lane.b32.xlu1 %v3063_v0, %s3176_s14 }
 0x3c0   : > { %v2111_v62 = vrot.slane %v2018_v16, 1  ;;  %v3134_v16 = vld [vmem:[%s3246_s10 + $0x10] sm:$0xff]  }
 0x3c1   : > { %2069 = vrot.lane.b32.xlu0 %v1902_v12, %s3176_s14  ;;  %v4366_v42 = vpop.permute.xlu1 %2019 }
 0x3c2   : > { %v2112_v54 = vrot.slane %v4366_v42, 1 }
 0x3c3   : > { %v2242_v18 = vpop.permute.xlu0 %2241  ;;  %2071 = vrot.lane.b32.xlu1 %v1905_v4, %s3176_s14 }
 0x3c4   : > { %v2169_v41 = vsel %vm1093_vm6, %v2111_v62, %v2112_v54  ;;  %v2335_v17 = vadd.f32 %v2242_v18, %v2175_v45  ;;  %v2397_v45 = vunpack.c.l.bf16 %v3134_v16 }
 0x3c5   : > { %2293 = vrot.lane.b32.xlu0 %v1902_v12, %s3175_s13  ;;  %v2244_v34 = vpop.permute.xlu1 %2243 }
 0x3c6   : > { %v2367_v53 = vadd.f32 %v2335_v17, %v2169_v41  ;;  %v2398_v17 = vunpack.c.h.bf16 %v3134_v16 }
 0x3c7   : > { %v4388_v1 = vpop.permute.xlu0 %2013  ;;  %2295 = vrot.lane.b32.xlu1 %v1905_v4, %s3175_s13 }
 0x3c8   : > { %v2438_v29 = vmul.f32 %v4380_v43, %v2367_v53  ;;  %v2109_v5 = vrot.slane %v4388_v1, 1 }
 0x3c9   : > { %2297 = vrot.lane.b32.xlu0 %v3062_v13, %s3175_s13  ;;  %v2016_v23 = vpop.permute.xlu1 %2015 }
 0x3ca   : > { %v2477_v49 = vadd.f32 %v4386_v27, %v2438_v29  ;;  %v2110_v57 = vrot.slane %v2016_v23, 1 }
 0x3cb   : > { %v2238_v19 = vpop.permute.xlu0 %2237  ;;  %2299 = vrot.lane.b32.xlu1 %v3063_v0, %s3175_s13 }
 0x3cc   : > { %v2509_v30 = vadd.f32 %v2477_v49, %v2399_v61  ;;  %v2171_v13 = vsel %vm1093_vm6, %v2109_v5, %v2110_v57  ;;  %v2333_v12 = vadd.f32 %v2238_v19, %v2173_v25  ;;  %v2170_v24 = vsel %vm1093_vm6, %v2110_v57, %v2111_v62 }
 0x3cd   : > { %v2240_v40 = vpop.permute.xlu1 %2239  ;;  %v2206_v0 = vsel %vm1174_vm7, %v2170_v24, 0.0  ;;  %v2179_v49 = vsel %vm1131_vm5, %v4212_v31, 0.0 }
 0x3ce   : > { %v2541_v50 = vmax.f32 %v2509_v30, 0.0  ;;  %v2365_v4 = vadd.f32 %v2333_v12, %v2171_v13  ;;  %v2334_v6 = vadd.f32 %v2240_v40, %v4190_v26 }
 0x3cf   : > { %v2026_v21 = vpop.permute.xlu0 %2025 }
 0x3d0   : > { %v2926_v18 = vpack.c.bf16 %v2541_v50, %v2541_v50  ;;  %v2436_v62 = vmul.f32 %v4380_v43, %v2365_v4  ;;  %v2366_v41 = vadd.f32 %v2334_v6, %v2206_v0  ;;  %v2115_v29 = vrot.slane %v2026_v21, 1  ;;  %v4437_v4 = vld [vmem:[%s3246_s10 + $0x28] sm:$0xff]  }
 0x3d1   : > { %v4419_v53 = vpop.permute.xlu1 %2027  ;;  %v2403_v31 = vunpack.c.l.bf16 %v4437_v4 }
 0x3d2   : > { %2702 = vst.msk [vmem:[%s4413_s9 + $0x8] sm:$0xf] %vm2699_vm8, %v2926_v18  ;;  %v2475_v26 = vadd.f32 %v4386_v27, %v2436_v62  ;;  %v2437_v61 = vmul.f32 %v4380_v43, %v2366_v41  ;;  %v2116_v23 = vrot.slane %v4419_v53, 1  ;;  %v2336_v18 = vadd.f32 %v2244_v34, %v4180_v38 }
 0x3d3   : > { %v2250_v57 = vpop.permute.xlu0 %2249  ;;  %v2177_v38 = vsel %vm1131_vm5, %v4203_v14, 0.0 }
 0x3d4   : > { %v2507_v19 = vadd.f32 %v2475_v26, %v2397_v45  ;;  %v2476_v25 = vadd.f32 %v4386_v27, %v2437_v61  ;;  %v2165_v30 = vsel %vm1093_vm6, %v2115_v29, %v2116_v23  ;;  %v2339_v13 = vadd.f32 %v2250_v57, %v2179_v49 }
 0x3d5   : > { %v4434_v12 = vpop.permute.xlu1 %2251 }
 0x3d6   : > { %v2539_v24 = vmax.f32 %v2507_v19, 0.0  ;;  %v2508_v40 = vadd.f32 %v2476_v25, %v2398_v17  ;;  %v2371_v50 = vadd.f32 %v2339_v13, %v2165_v30  ;;  %v2400_v13 = vunpack.c.h.bf16 %v4392_v58 }
 0x3d7   : > { %v2022_v6 = vpop.permute.xlu0 %2021 }
 0x3d8   : > { %v2924_v0 = vpack.c.bf16 %v2539_v24, %v2539_v24  ;;  %v2540_v21 = vmax.f32 %v2508_v40, 0.0  ;;  %v2442_v16 = vmul.f32 %v4380_v43, %v2371_v50  ;;  %v2113_v45 = vrot.slane %v2022_v6, 1  ;;  %v3136_v50 = vld [vmem:[%s3246_s10 + $0x20] sm:$0xff]  }
 0x3d9   : > { %v2024_v62 = vpop.permute.xlu1 %2023  ;;  %v2401_v6 = vunpack.c.l.bf16 %v3136_v50 }
 0x3da   : > { %2700 = vst.msk [vmem:[%s4413_s9] sm:$0xf] %vm2699_vm8, %v2924_v0  ;;  %v2925_v41 = vpack.c.bf16 %v2540_v21, %v2540_v21  ;;  %v2481_v17 = vadd.f32 %v4386_v27, %v2442_v16  ;;  %v2168_v26 = vsel %vm1093_vm6, %v2112_v54, %v2113_v45  ;;  %v2114_v61 = vrot.slane %v2024_v62, 1 }
 0x3db   : > { %v2208_v49 = vsel %vm1174_vm7, %v2168_v26, 0.0  ;;  %v2246_v34 = vpop.permute.xlu0 %2245  ;;  %v2402_v26 = vunpack.c.h.bf16 %v3136_v50 }
 0x3dc   : > { %2701 = vst.msk [vmem:[%s4413_s9 + $0x4] sm:$0xf] %vm2699_vm8, %v2925_v41  ;;  %v2513_v57 = vadd.f32 %v2481_v17, %v2403_v31  ;;  %v2368_v19 = vadd.f32 %v2336_v18, %v2208_v49  ;;  %v2167_v42 = vsel %vm1093_vm6, %v2113_v45, %v2114_v61  ;;  %v2337_v25 = vadd.f32 %v2246_v34, %v2177_v38 }
 0x3dd   : > { %v2166_v54 = vsel %vm1093_vm6, %v2114_v61, %v2115_v29  ;;  %v2248_v30 = vpop.permute.xlu1 %2247  ;;  %v2183_v49 = vsel %vm1131_vm5, %v4236_v2, 0.0  ;;  %v4486_v2 = vld [vmem:[%s3246_s10 + $0x38] sm:$0xff]  }
 0x3de   : > { %v2545_v24 = vmax.f32 %v2513_v57, 0.0  ;;  %v2439_v40 = vmul.f32 %v4380_v43, %v2368_v19  ;;  %v2369_v14 = vadd.f32 %v2337_v25, %v2167_v42  ;;  %v2338_v31 = vadd.f32 %v2248_v30, %v4216_v10 }
 0x3df   : > { %v2034_v0 = vpop.permute.xlu0 %2033  ;;  %v2210_v29 = vsel %vm1174_vm7, %v2166_v54, 0.0  ;;  %v2407_v50 = vunpack.c.l.bf16 %v4486_v2 }
 0x3e0   : > { %v2930_v21 = vpack.c.bf16 %v2545_v24, %v2545_v24  ;;  %v2478_v16 = vadd.f32 %v4386_v27, %v2439_v40  ;;  %v2440_v45 = vmul.f32 %v4380_v43, %v2369_v14  ;;  %v2370_v18 = vadd.f32 %v2338_v31, %v2210_v29 }
 0x3e1   : > { %v4468_v62 = vpop.permute.xlu1 %2035  ;;  %v2119_v17 = vrot.slane %v2034_v0, 1 }
 0x3e2   : > { %2706 = vst.msk [vmem:[%s4413_s9 + $0x18] sm:$0xf] %vm2699_vm8, %v2930_v21  ;;  %v2510_v58 = vadd.f32 %v2478_v16, %v2400_v13  ;;  %v2479_v41 = vadd.f32 %v4386_v27, %v2440_v45  ;;  %v2120_v10 = vrot.slane %v4468_v62, 1  ;;  %v2441_v61 = vmul.f32 %v4380_v43, %v2370_v18 }
 0x3e3   : > { %v2258_v38 = vpop.permute.xlu0 %2257  ;;  %v2340_v45 = vadd.f32 %v4434_v12, %v4208_v56 }
 0x3e4   : > { %v2542_v34 = vmax.f32 %v2510_v58, 0.0  ;;  %v2511_v57 = vadd.f32 %v2479_v41, %v2401_v6  ;;  %v2161_v19 = vsel %vm1093_vm6, %v2119_v17, %v2120_v10  ;;  %v2343_v42 = vadd.f32 %v2258_v38, %v2183_v49 }
 0x3e5   : > { %v2480_v25 = vadd.f32 %v4386_v27, %v2441_v61  ;;  %v4483_v54 = vpop.permute.xlu1 %2259  ;;  %v2181_v61 = vsel %vm1131_vm5, %v4227_v15, 0.0 }
 0x3e6   : > { %v2927_v30 = vpack.c.bf16 %v2542_v34, %v2542_v34  ;;  %v2543_v13 = vmax.f32 %v2511_v57, 0.0  ;;  %v2375_v24 = vadd.f32 %v2343_v42, %v2161_v19  ;;  %v2404_v57 = vunpack.c.h.bf16 %v4437_v4 }
 0x3e7   : > { %v2512_v40 = vadd.f32 %v2480_v25, %v2402_v26  ;;  %v2030_v14 = vpop.permute.xlu0 %2029  ;;  %v3138_v25 = vld [vmem:[%s3246_s10 + $0x30] sm:$0xff]  }
 0x3e8   : > { %2703 = vst.msk [vmem:[%s4413_s9 + $0xc] sm:$0xf] %vm2699_vm8, %v2927_v30  ;;  %v2928_v6 = vpack.c.bf16 %v2543_v13, %v2543_v13  ;;  %v2446_v31 = vmul.f32 %v4380_v43, %v2375_v24  ;;  %v2117_v0 = vrot.slane %v2030_v14, 1  ;;  %v2405_v30 = vunpack.c.l.bf16 %v3138_v25 }
 0x3e9   : > { %v2544_v21 = vmax.f32 %v2512_v40, 0.0  ;;  %v2032_v16 = vpop.permute.xlu1 %2031 }
 0x3ea   : > { %2704 = vst.msk [vmem:[%s4413_s9 + $0x10] sm:$0xf] %vm2699_vm8, %v2928_v6  ;;  %v2485_v29 = vadd.f32 %v4386_v27, %v2446_v31  ;;  %v2164_v18 = vsel %vm1093_vm6, %v2116_v23, %v2117_v0  ;;  %v2118_v58 = vrot.slane %v2032_v16, 1  ;;  %v2406_v16 = vunpack.c.h.bf16 %v3138_v25 }
 0x3eb   : > { %v2929_v41 = vpack.c.bf16 %v2544_v21, %v2544_v21  ;;  %v2212_v26 = vsel %vm1174_vm7, %v2164_v18, 0.0  ;;  %v2254_v56 = vpop.permute.xlu0 %2253 }
 0x3ec   : > { %v2517_v12 = vadd.f32 %v2485_v29, %v2407_v50  ;;  %v2372_v49 = vadd.f32 %v2340_v45, %v2212_v26  ;;  %v2163_v38 = vsel %vm1093_vm6, %v2117_v0, %v2118_v58  ;;  %v2341_v53 = vadd.f32 %v2254_v56, %v2181_v61 }
 0x3ed   : > { %2705 = vst.msk [vmem:[%s4413_s9 + $0x14] sm:$0xf] %vm2699_vm8, %v2929_v41  ;;  %v2162_v23 = vsel %vm1093_vm6, %v2118_v58, %v2119_v17  ;;  %v2256_v34 = vpop.permute.xlu1 %2255  ;;  %v2187_v29 = vsel %vm1131_vm5, %v4260_v46, 0.0  ;;  %v4538_v46 = vld [vmem:[%s3246_s10 + $0x48] sm:$0xff]  }
 0x3ee   : > { %v2549_v19 = vmax.f32 %v2517_v12, 0.0  ;;  %v2443_v42 = vmul.f32 %v4380_v43, %v2372_v49  ;;  %v2373_v15 = vadd.f32 %v2341_v53, %v2163_v38  ;;  %v2342_v13 = vadd.f32 %v2256_v34, %v4240_v60 }
 0x3ef   : > { %v2042_v24 = vpop.permute.xlu0 %2041  ;;  %v2214_v17 = vsel %vm1174_vm7, %v2162_v23, 0.0 }
 0x3f0   : > { %v2934_v40 = vpack.c.bf16 %v2549_v19, %v2549_v19  ;;  %v2482_v14 = vadd.f32 %v4386_v27, %v2443_v42  ;;  %v2444_v50 = vmul.f32 %v4380_v43, %v2373_v15  ;;  %v2374_v6 = vadd.f32 %v2342_v13, %v2214_v17 }
 0x3f1   : > { %v4520_v31 = vpop.permute.xlu1 %2043  ;;  %v2123_v21 = vrot.slane %v2042_v24, 1  ;;  %v2344_v13 = vadd.f32 %v4483_v54, %v4232_v22 }
 0x3f2   : > { %2710 = vst.msk [vmem:[%s4413_s9 + $0x28] sm:$0xf] %vm2699_vm8, %v2934_v40  ;;  %v2514_v4 = vadd.f32 %v2482_v14, %v2404_v57  ;;  %v2483_v0 = vadd.f32 %v4386_v27, %v2444_v50  ;;  %v2124_v60 = vrot.slane %v4520_v31, 1  ;;  %v2445_v45 = vmul.f32 %v4380_v43, %v2374_v6 }
 0x3f3   : > { %v2266_v18 = vpop.permute.xlu0 %2265  ;;  %v2411_v57 = vunpack.c.l.bf16 %v4538_v46  ;;  %v2185_v6 = vsel %vm1131_vm5, %v4251_v35, 0.0 }
 0x3f4   : > { %v2546_v58 = vmax.f32 %v2514_v4, 0.0  ;;  %v2515_v41 = vadd.f32 %v2483_v0, %v2405_v30  ;;  %v2157_v26 = vsel %vm1093_vm6, %v2123_v21, %v2124_v60  ;;  %v2347_v61 = vadd.f32 %v2266_v18, %v2187_v29 }
 0x3f5   : > { %v2484_v56 = vadd.f32 %v4386_v27, %v2445_v45  ;;  %v4535_v12 = vpop.permute.xlu1 %2267  ;;  %v2408_v45 = vunpack.c.h.bf16 %v4486_v2 }
 0x3f6   : > { %v2931_v49 = vpack.c.bf16 %v2546_v58, %v2546_v58  ;;  %v2547_v38 = vmax.f32 %v2515_v41, 0.0  ;;  %v2379_v53 = vadd.f32 %v2347_v61, %v2157_v26  ;;  %v3140_v58 = vld [vmem:[%s3246_s10 + $0x40] sm:$0xff]  }
 0x3f7   : > { %v2516_v23 = vadd.f32 %v2484_v56, %v2406_v16  ;;  %v2038_v34 = vpop.permute.xlu0 %2037  ;;  %v2409_v41 = vunpack.c.l.bf16 %v3140_v58 }
 0x3f8   : > { %2707 = vst.msk [vmem:[%s4413_s9 + $0x1c] sm:$0xf] %vm2699_vm8, %v2931_v49  ;;  %v2932_v19 = vpack.c.bf16 %v2547_v38, %v2547_v38  ;;  %v2450_v42 = vmul.f32 %v4380_v43, %v2379_v53  ;;  %v2121_v15 = vrot.slane %v2038_v34, 1 }
 0x3f9   : > { %v2548_v25 = vmax.f32 %v2516_v23, 0.0  ;;  %v2040_v30 = vpop.permute.xlu1 %2039 }
 0x3fa   : > { %2708 = vst.msk [vmem:[%s4413_s9 + $0x20] sm:$0xf] %vm2699_vm8, %v2932_v19  ;;  %v2489_v24 = vadd.f32 %v4386_v27, %v2450_v42  ;;  %v2160_v40 = vsel %vm1093_vm6, %v2120_v10, %v2121_v15  ;;  %v2122_v14 = vrot.slane %v2040_v30, 1  ;;  %v2410_v19 = vunpack.c.h.bf16 %v3140_v58 }
 0x3fb   : > { %v2933_v50 = vpack.c.bf16 %v2548_v25, %v2548_v25  ;;  %v2216_v17 = vsel %vm1174_vm7, %v2160_v40, 0.0  ;;  %v2262_v22 = vpop.permute.xlu0 %2261 }
 0x3fc   : > { %v2521_v54 = vadd.f32 %v2489_v24, %v2411_v57  ;;  %v2376_v4 = vadd.f32 %v2344_v13, %v2216_v17  ;;  %v2159_v0 = vsel %vm1093_vm6, %v2121_v15, %v2122_v14  ;;  %v2345_v62 = vadd.f32 %v2262_v22, %v2185_v6 }
 0x3fd   : > { %2709 = vst.msk [vmem:[%s4413_s9 + $0x24] sm:$0xf] %vm2699_vm8, %v2933_v50  ;;  %v2158_v10 = vsel %vm1093_vm6, %v2122_v14, %v2123_v21  ;;  %v2264_v16 = vpop.permute.xlu1 %2263  ;;  %v2191_v15 = vsel %vm1131_vm5, %v4284_v63, 0.0  ;;  %v4590_v63 = vld [vmem:[%s3246_s10 + $0x58] sm:$0xff]  }
 0x3fe   : > { %v2553_v29 = vmax.f32 %v2521_v54, 0.0  ;;  %v2447_v18 = vmul.f32 %v4380_v43, %v2376_v4  ;;  %v2377_v35 = vadd.f32 %v2345_v62, %v2159_v0  ;;  %v2346_v26 = vadd.f32 %v2264_v16, %v4264_v48 }
 0x3ff   : > { %v2050_v61 = vpop.permute.xlu0 %2049  ;;  %v2218_v21 = vsel %vm1174_vm7, %v2158_v10, 0.0  ;;  %v2415_v0 = vunpack.c.l.bf16 %v4590_v63 }
 0x400   : > { %v2938_v56 = vpack.c.bf16 %v2553_v29, %v2553_v29  ;;  %v2486_v49 = vadd.f32 %v4386_v27, %v2447_v18  ;;  %v2448_v38 = vmul.f32 %v4380_v43, %v2377_v35  ;;  %v2378_v53 = vadd.f32 %v2346_v26, %v2218_v21 }
 0x401   : > { %v4572_v23 = vpop.permute.xlu1 %2051  ;;  %v2127_v57 = vrot.slane %v2050_v61, 1  ;;  %v2348_v18 = vadd.f32 %v4535_v12, %v4256_v36 }
 0x402   : > { %2714 = vst.msk [vmem:[%s4413_s9 + $0x38] sm:$0xf] %vm2699_vm8, %v2938_v56  ;;  %v2518_v2 = vadd.f32 %v2486_v49, %v2408_v45  ;;  %v2487_v34 = vadd.f32 %v4386_v27, %v2448_v38  ;;  %v2128_v48 = vrot.slane %v4572_v23, 1  ;;  %v2449_v42 = vmul.f32 %v4380_v43, %v2378_v53 }
 0x403   : > { %v2274_v25 = vpop.permute.xlu0 %2273  ;;  %v2189_v56 = vsel %vm1131_vm5, %v4275_v8, 0.0  ;;  %v2412_v53 = vunpack.c.h.bf16 %v4538_v46 }
 0x404   : > { %v2550_v30 = vmax.f32 %v2518_v2, 0.0  ;;  %v2519_v13 = vadd.f32 %v2487_v34, %v2409_v41  ;;  %v2153_v24 = vsel %vm1093_vm6, %v2127_v57, %v2128_v48  ;;  %v2351_v40 = vadd.f32 %v2274_v25, %v2191_v15 }
 0x405   : > { %v2488_v14 = vadd.f32 %v4386_v27, %v2449_v42  ;;  %v4587_v50 = vpop.permute.xlu1 %2275 }
 0x406   : > { %v2935_v17 = vpack.c.bf16 %v2550_v30, %v2550_v30  ;;  %v2551_v6 = vmax.f32 %v2519_v13, 0.0  ;;  %v2383_v22 = vadd.f32 %v2351_v40, %v2153_v24 }
 0x407   : > { %v2520_v54 = vadd.f32 %v2488_v14, %v2410_v19  ;;  %v2046_v4 = vpop.permute.xlu0 %2045  ;;  %v3142_v19 = vld [vmem:[%s3246_s10 + $0x50] sm:$0xff]  }
 0x408   : > { %2711 = vst.msk [vmem:[%s4413_s9 + $0x2c] sm:$0xf] %vm2699_vm8, %v2935_v17  ;;  %v2936_v62 = vpack.c.bf16 %v2551_v6, %v2551_v6  ;;  %v2454_v10 = vmul.f32 %v4380_v43, %v2383_v22  ;;  %v2125_v16 = vrot.slane %v2046_v4, 1  ;;  %v2413_v42 = vunpack.c.l.bf16 %v3142_v19 }
 0x409   : > { %v2552_v45 = vmax.f32 %v2520_v54, 0.0  ;;  %v2048_v29 = vpop.permute.xlu1 %2047  ;;  %v2414_v22 = vunpack.c.h.bf16 %v3142_v19  ;;  %v2195_v4 = vsel %vm1131_vm5, %v4308_v3, 0.0  ;;  %v4642_v3 = vld [vmem:[%s3246_s10 + $0x68] sm:$0xff]   ;;  %v2193_v19 = vsel %vm1131_vm5, %v4299_v9, 0.0 }
 0x40a   : > { %2712 = vst.msk [vmem:[%s4413_s9 + $0x30] sm:$0xf] %vm2699_vm8, %v2936_v62  ;;  %v2493_v35 = vadd.f32 %v4386_v27, %v2454_v10  ;;  %v2156_v58 = vsel %vm1093_vm6, %v2124_v60, %v2125_v16  ;;  %v2126_v41 = vrot.slane %v2048_v29, 1 }
 0x40b   : > { %v2937_v26 = vpack.c.bf16 %v2552_v45, %v2552_v45  ;;  %v2220_v61 = vsel %vm1174_vm7, %v2156_v58, 0.0  ;;  %v2270_v36 = vpop.permute.xlu0 %2269 }
 0x40c   : > { %v2525_v12 = vadd.f32 %v2493_v35, %v2415_v0  ;;  %v2380_v49 = vadd.f32 %v2348_v18, %v2220_v61  ;;  %v2155_v38 = vsel %vm1093_vm6, %v2125_v16, %v2126_v41  ;;  %v2349_v31 = vadd.f32 %v2270_v36, %v2189_v56 }
 0x40d   : > { %2713 = vst.msk [vmem:[%s4413_s9 + $0x34] sm:$0xf] %vm2699_vm8, %v2937_v26  ;;  %v2154_v60 = vsel %vm1093_vm6, %v2126_v41, %v2127_v57  ;;  %v2272_v21 = vpop.permute.xlu1 %2271  ;;  %v2419_v56 = vunpack.c.l.bf16 %v4642_v3 }
 0x40e   : > { %v2557_v2 = vmax.f32 %v2525_v12, 0.0  ;;  %v2451_v34 = vmul.f32 %v4380_v43, %v2380_v49  ;;  %v2381_v8 = vadd.f32 %v2349_v31, %v2155_v38  ;;  %v2350_v15 = vadd.f32 %v2272_v21, %v4288_v11 }
 0x40f   : > { %v2058_v25 = vpop.permute.xlu0 %2057  ;;  %v2222_v57 = vsel %vm1174_vm7, %v2154_v60, 0.0  ;;  %v2352_v60 = vadd.f32 %v4587_v50, %v4280_v39 }
 0x410   : > { %v2942_v30 = vpack.c.bf16 %v2557_v2, %v2557_v2  ;;  %v2490_v13 = vadd.f32 %v4386_v27, %v2451_v34  ;;  %v2452_v24 = vmul.f32 %v4380_v43, %v2381_v8  ;;  %v2382_v40 = vadd.f32 %v2350_v15, %v2222_v57  ;;  %v3144_v57 = vld [vmem:[%s3246_s10 + $0x60] sm:$0xff]  }
 0x411   : > { %v4624_v14 = vpop.permute.xlu1 %2059  ;;  %v2131_v6 = vrot.slane %v2058_v25, 1 }
 0x412   : > { %2718 = vst.msk [vmem:[%s4413_s9 + $0x48] sm:$0xf] %vm2699_vm8, %v2942_v30  ;;  %v2522_v46 = vadd.f32 %v2490_v13, %v2412_v53  ;;  %v2491_v17 = vadd.f32 %v4386_v27, %v2452_v24  ;;  %v2132_v11 = vrot.slane %v4624_v14, 1  ;;  %v2453_v54 = vmul.f32 %v4380_v43, %v2382_v40 }
 0x413   : > { %v2282_v0 = vpop.permute.xlu0 %2281  ;;  %v2416_v30 = vunpack.c.h.bf16 %v4590_v63  ;;  %v2417_v40 = vunpack.c.l.bf16 %v3144_v57 }
 0x414   : > { %v2554_v62 = vmax.f32 %v2522_v46, 0.0  ;;  %v2523_v10 = vadd.f32 %v2491_v17, %v2413_v42  ;;  %v2149_v16 = vsel %vm1093_vm6, %v2131_v6, %v2132_v11  ;;  %v2355_v45 = vadd.f32 %v2282_v0, %v2195_v4 }
 0x415   : > { %v2492_v29 = vadd.f32 %v4386_v27, %v2453_v54  ;;  %v4639_v18 = vpop.permute.xlu1 %2283 }
 0x416   : > { %v2939_v35 = vpack.c.bf16 %v2554_v62, %v2554_v62  ;;  %v2555_v58 = vmax.f32 %v2523_v10, 0.0  ;;  %v2387_v41 = vadd.f32 %v2355_v45, %v2149_v16  ;;  %v2418_v45 = vunpack.c.h.bf16 %v3144_v57 }
 0x417   : > { %v2524_v26 = vadd.f32 %v2492_v29, %v2414_v22  ;;  %v2054_v61 = vpop.permute.xlu0 %2053  ;;  %v2420_v57 = vunpack.c.h.bf16 %v4642_v3 }
 0x418   : > { %2715 = vst.msk [vmem:[%s4413_s9 + $0x3c] sm:$0xf] %vm2699_vm8, %v2939_v35  ;;  %v2940_v36 = vpack.c.bf16 %v2555_v58, %v2555_v58  ;;  %v2458_v12 = vmul.f32 %v4380_v43, %v2387_v41  ;;  %v2129_v49 = vrot.slane %v2054_v61, 1  ;;  %v2199_v35 = vsel %vm1131_vm5, %v4330_v59, 0.0 }
 0x419   : > { %v2556_v38 = vmax.f32 %v2524_v26, 0.0  ;;  %v2056_v31 = vpop.permute.xlu1 %2055 }
 0x41a   : > { %2716 = vst.msk [vmem:[%s4413_s9 + $0x40] sm:$0xf] %vm2699_vm8, %v2940_v36  ;;  %v2497_v21 = vadd.f32 %v4386_v27, %v2458_v12  ;;  %v2152_v53 = vsel %vm1093_vm6, %v2128_v48, %v2129_v49  ;;  %v2130_v2 = vrot.slane %v2056_v31, 1 }
 0x41b   : > { %v2941_v34 = vpack.c.bf16 %v2556_v38, %v2556_v38  ;;  %v2224_v8 = vsel %vm1174_vm7, %v2152_v53, 0.0  ;;  %v2278_v39 = vpop.permute.xlu0 %2277  ;;  %v4692_v53 = vld [vmem:[%s3246_s10 + $0x78] sm:$0xff]  }
 0x41c   : > { %v2529_v50 = vadd.f32 %v2497_v21, %v2419_v56  ;;  %v2384_v42 = vadd.f32 %v2352_v60, %v2224_v8  ;;  %v2151_v15 = vsel %vm1093_vm6, %v2129_v49, %v2130_v2  ;;  %v2353_v23 = vadd.f32 %v2278_v39, %v2193_v19 }
 0x41d   : > { %2717 = vst.msk [vmem:[%s4413_s9 + $0x44] sm:$0xf] %vm2699_vm8, %v2941_v34  ;;  %v2150_v48 = vsel %vm1093_vm6, %v2130_v2, %v2131_v6  ;;  %v2280_v25 = vpop.permute.xlu1 %2279  ;;  %v2423_v59 = vunpack.c.l.bf16 %v4692_v53 }
 0x41e   : > { %v2561_v13 = vmax.f32 %v2529_v50, 0.0  ;;  %v2455_v24 = vmul.f32 %v4380_v43, %v2384_v42  ;;  %v2385_v9 = vadd.f32 %v2353_v23, %v2151_v15  ;;  %v2354_v46 = vadd.f32 %v2280_v25, %v4312_v47 }
 0x41f   : > { %v2066_v17 = vpop.permute.xlu0 %2065  ;;  %v2226_v6 = vsel %vm1174_vm7, %v2150_v48, 0.0  ;;  %v2356_v50 = vadd.f32 %v4639_v18, %v4304_v37 }
 0x420   : > { %v2946_v22 = vpack.c.bf16 %v2561_v13, %v2561_v13  ;;  %v2494_v54 = vadd.f32 %v4386_v27, %v2455_v24  ;;  %v2456_v4 = vmul.f32 %v4380_v43, %v2385_v9  ;;  %v2386_v0 = vadd.f32 %v2354_v46, %v2226_v6 }
 0x421   : > { %v4676_v62 = vpop.permute.xlu1 %2067  ;;  %v2135_v16 = vrot.slane %v2066_v17, 1  ;;  %v3146_v17 = vld [vmem:[%s3246_s10 + $0x70] sm:$0xff]  }
 0x422   : > { %2722 = vst.msk [vmem:[%s4413_s9 + $0x58] sm:$0xf] %vm2699_vm8, %v2946_v22  ;;  %v2526_v63 = vadd.f32 %v2494_v54, %v2416_v30  ;;  %v2495_v10 = vadd.f32 %v4386_v27, %v2456_v4  ;;  %v2136_v47 = vrot.slane %v4676_v62, 1  ;;  %v2457_v29 = vmul.f32 %v4380_v43, %v2386_v0 }
 0x423   : > { %v2290_v58 = vpop.permute.xlu0 %2289  ;;  %v2197_v30 = vsel %vm1131_vm5, %v4321_v51, 0.0  ;;  %v2421_v22 = vunpack.c.l.bf16 %v3146_v17 }
 0x424   : > { %v2558_v41 = vmax.f32 %v2526_v63, 0.0  ;;  %v2527_v26 = vadd.f32 %v2495_v10, %v2417_v40  ;;  %v2145_v61 = vsel %vm1093_vm6, %v2135_v16, %v2136_v47  ;;  %v2359_v56 = vadd.f32 %v2290_v58, %v2199_v35 }
 0x425   : > { %v2496_v36 = vadd.f32 %v4386_v27, %v2457_v29  ;;  %v2292_v12 = vpop.permute.xlu1 %2291  ;;  %v2422_v35 = vunpack.c.h.bf16 %v3146_v17 }
 0x426   : > { %v2943_v49 = vpack.c.bf16 %v2558_v41, %v2558_v41  ;;  %v2559_v38 = vmax.f32 %v2527_v26, 0.0  ;;  %v2391_v31 = vadd.f32 %v2359_v56, %v2145_v61  ;;  %v2360_v56 = vadd.f32 %v2292_v12, %v4326_v44 }
 0x427   : > { %v2528_v60 = vadd.f32 %v2496_v36, %v2418_v45  ;;  %v2062_v21 = vpop.permute.xlu0 %2061 }
 0x428   : > { %2719 = vst.msk [vmem:[%s4413_s9 + $0x4c] sm:$0xf] %vm2699_vm8, %v2943_v49  ;;  %v2944_v2 = vpack.c.bf16 %v2559_v38, %v2559_v38  ;;  %v2462_v34 = vmul.f32 %v4380_v43, %v2391_v31  ;;  %v2133_v8 = vrot.slane %v2062_v21, 1  ;;  %v2201_v38 = vsel %vm1131_vm5, %v4344_v52, 0.0 }
 0x429   : > { %v2560_v19 = vmax.f32 %v2528_v60, 0.0  ;;  %v2064_v39 = vpop.permute.xlu1 %2063 }
 0x42a   : > { %2720 = vst.msk [vmem:[%s4413_s9 + $0x50] sm:$0xf] %vm2699_vm8, %v2944_v2  ;;  %v2501_v42 = vadd.f32 %v4386_v27, %v2462_v34  ;;  %v2148_v15 = vsel %vm1093_vm6, %v2132_v11, %v2133_v8  ;;  %v2134_v23 = vrot.slane %v2064_v39, 1 }
 0x42b   : > { %v2945_v48 = vpack.c.bf16 %v2560_v19, %v2560_v19  ;;  %v2228_v25 = vsel %vm1174_vm7, %v2148_v15, 0.0  ;;  %v2286_v37 = vpop.permute.xlu0 %2285 }
 0x42c   : > { %v2533_v18 = vadd.f32 %v2501_v42, %v2423_v59  ;;  %v2388_v13 = vadd.f32 %v2356_v50, %v2228_v25  ;;  %v2147_v24 = vsel %vm1093_vm6, %v2133_v8, %v2134_v23  ;;  %v2357_v14 = vadd.f32 %v2286_v37, %v2197_v30 }
 0x42d   : > { %2721 = vst.msk [vmem:[%s4413_s9 + $0x54] sm:$0xf] %vm2699_vm8, %v2945_v48  ;;  %v2146_v11 = vsel %vm1093_vm6, %v2134_v23, %v2135_v16  ;;  %v2288_v9 = vpop.permute.xlu1 %2287  ;;  %v3147_v23 = vld [vmem:[%s3246_s10 + $0x80] sm:$0xff]  }
 0x42e   : > { %v2565_v40 = vmax.f32 %v2533_v18, 0.0  ;;  %v2459_v46 = vmul.f32 %v4380_v43, %v2388_v13  ;;  %v2389_v51 = vadd.f32 %v2357_v14, %v2147_v24  ;;  %v2358_v54 = vadd.f32 %v2288_v9, %v4334_v32 }
 0x42f   : > { %v2074_v4 = vpop.permute.xlu0 %2073  ;;  %v2230_v10 = vsel %vm1174_vm7, %v2146_v11, 0.0  ;;  %v2425_v48 = vunpack.c.l.bf16 %v3147_v23  ;;  %v2203_v24 = vsel %vm1131_vm5, %v4361_v7, 0.0 }
 0x430   : > { %v2950_v6 = vpack.c.bf16 %v2565_v40, %v2565_v40  ;;  %v2498_v0 = vadd.f32 %v4386_v27, %v2459_v46  ;;  %v2460_v63 = vmul.f32 %v4380_v43, %v2389_v51  ;;  %v2390_v16 = vadd.f32 %v2358_v54, %v2230_v10 }
 0x431   : > { %v2076_v45 = vpop.permute.xlu1 %2075  ;;  %v2139_v34 = vrot.slane %v2074_v4, 1  ;;  %v2426_v40 = vunpack.c.h.bf16 %v3147_v23 }
 0x432   : > { %2726 = vst.msk [vmem:[%s4413_s9 + $0x68] sm:$0xf] %vm2699_vm8, %v2950_v6  ;;  %v2530_v3 = vadd.f32 %v2498_v0, %v2420_v57  ;;  %v2499_v29 = vadd.f32 %v4386_v27, %v2460_v63  ;;  %v2461_v58 = vmul.f32 %v4380_v43, %v2390_v16  ;;  %v2140_v44 = vrot.slane %v2076_v45, 1 }
 0x433   : > { %v2070_v32 = vpop.permute.xlu0 %2069 }
 0x434   : > { %v2562_v41 = vmax.f32 %v2530_v3, 0.0  ;;  %v2531_v26 = vadd.f32 %v2499_v29, %v2421_v22  ;;  %v2137_v61 = vrot.slane %v2070_v32, 1  ;;  %v2500_v36 = vadd.f32 %v4386_v27, %v2461_v58 }
 0x435   : > { %v2072_v49 = vpop.permute.xlu1 %2071  ;;  %v2172_v14 = vsel %vm1093_vm6, %v2140_v44, %v2109_v5  ;;  %v2141_v46 = vsel %vm1093_vm6, %v2139_v34, %v2140_v44  ;;  %v3148_v5 = vld [vmem:[%s3246_s10 + $0x88] sm:$0xff]  }
 0x436   : > { %v2947_v31 = vpack.c.bf16 %v2562_v41, %v2562_v41  ;;  %v2563_v60 = vmax.f32 %v2531_v26, 0.0  ;;  %v2144_v21 = vsel %vm1093_vm6, %v2136_v47, %v2137_v61  ;;  %v2138_v59 = vrot.slane %v2072_v49, 1 }
 0x437   : > { %v2532_v2 = vadd.f32 %v2500_v36, %v2422_v35  ;;  %v2232_v12 = vsel %vm1174_vm7, %v2144_v21, 0.0  ;;  %v2294_v8 = vpop.permute.xlu0 %2293  ;;  %v2424_v47 = vunpack.c.h.bf16 %v4692_v53  ;;  %v2427_v54 = vunpack.c.l.bf16 %v3148_v5 }
 0x438   : > { %2723 = vst.msk [vmem:[%s4413_s9 + $0x5c] sm:$0xf] %vm2699_vm8, %v2947_v31  ;;  %v2948_v52 = vpack.c.bf16 %v2563_v60, %v2563_v60  ;;  %v2392_v19 = vadd.f32 %v2360_v56, %v2232_v12  ;;  %v2143_v62 = vsel %vm1093_vm6, %v2137_v61, %v2138_v59  ;;  %v2361_v39 = vadd.f32 %v2294_v8, %v2201_v38 }
 0x439   : > { %v2564_v50 = vmax.f32 %v2532_v2, 0.0  ;;  %v2142_v42 = vsel %vm1093_vm6, %v2138_v59, %v2139_v34  ;;  %v2296_v15 = vpop.permute.xlu1 %2295  ;;  %v2236_v4 = vsel %vm1174_vm7, %v2172_v14, 0.0  ;;  %v2428_v58 = vunpack.c.h.bf16 %v3148_v5 }
 0x43a   : > { %2724 = vst.msk [vmem:[%s4413_s9 + $0x60] sm:$0xf] %vm2699_vm8, %v2948_v52  ;;  %v2463_v25 = vmul.f32 %v4380_v43, %v2392_v19  ;;  %v2393_v30 = vadd.f32 %v2361_v39, %v2143_v62  ;;  %v2362_v37 = vadd.f32 %v2296_v15, %v4357_v20  ;;  %v2234_v13 = vsel %vm1174_vm7, %v2142_v42, 0.0 }
 0x43b   : > { %v2949_v18 = vpack.c.bf16 %v2564_v50, %v2564_v50  ;;  %v2298_v53 = vpop.permute.xlu0 %2297 }
 0x43c   : > { %v2502_v11 = vadd.f32 %v4386_v27, %v2463_v25  ;;  %v2464_v9 = vmul.f32 %v4380_v43, %v2393_v30  ;;  %v2394_v20 = vadd.f32 %v2362_v37, %v2234_v13  ;;  %v2363_v57 = vadd.f32 %v2298_v53, %v2203_v24 }
 0x43d   : > { %2725 = vst.msk [vmem:[%s4413_s9 + $0x64] sm:$0xf] %vm2699_vm8, %v2949_v18  ;;  %v2300_v51 = vpop.permute.xlu1 %2299 }
 0x43e   : > { %v2534_v17 = vadd.f32 %v2502_v11, %v2424_v47  ;;  %v2503_v7 = vadd.f32 %v4386_v27, %v2464_v9  ;;  %v2465_v1 = vmul.f32 %v4380_v43, %v2394_v20  ;;  %v2395_v22 = vadd.f32 %v2363_v57, %v2141_v46 }
 0x43f   : > { %v2364_v6 = vadd.f32 %v2300_v51, %v4353_v28 }
 0x440   : > { %v2566_v0 = vmax.f32 %v2534_v17, 0.0  ;;  %v2535_v63 = vadd.f32 %v2503_v7, %v2425_v48  ;;  %v2504_v33 = vadd.f32 %v4386_v27, %v2465_v1  ;;  %v2466_v10 = vmul.f32 %v4380_v43, %v2395_v22 }
 0x441   : > { %v2396_v16 = vadd.f32 %v2364_v6, %v2236_v4 }
 0x442   : > { %v2951_v45 = vpack.c.bf16 %v2566_v0, %v2566_v0  ;;  %v2567_v3 = vmax.f32 %v2535_v63, 0.0  ;;  %v2536_v29 = vadd.f32 %v2504_v33, %v2426_v40  ;;  %v2505_v35 = vadd.f32 %v4386_v27, %v2466_v10 }
 0x443   : > { %v2467_v55 = vmul.f32 %v4380_v43, %v2396_v16 }
 0x444   : > { %2727 = vst.msk [vmem:[%s4413_s9 + $0x6c] sm:$0xf] %vm2699_vm8, %v2951_v45  ;;  %v2952_v28 = vpack.c.bf16 %v2567_v3, %v2567_v3  ;;  %v2568_v32 = vmax.f32 %v2536_v29, 0.0  ;;  %v2537_v41 = vadd.f32 %v2505_v35, %v2427_v54 }
 0x445   : > { %v2506_v26 = vadd.f32 %v4386_v27, %v2467_v55 }
 0x446   : > { %2728 = vst.msk [vmem:[%s4413_s9 + $0x70] sm:$0xf] %vm2699_vm8, %v2952_v28  ;;  %v2953_v61 = vpack.c.bf16 %v2568_v32, %v2568_v32  ;;  %v2569_v56 = vmax.f32 %v2537_v41, 0.0 }
 0x447   : > { %v2538_v36 = vadd.f32 %v2506_v26, %v2428_v58 }
 0x448   : > { %2729 = vst.msk [vmem:[%s4413_s9 + $0x74] sm:$0xf] %vm2699_vm8, %v2953_v61  ;;  %v2954_v49 = vpack.c.bf16 %v2569_v56, %v2569_v56 }
 0x449   : > { %v2570_v38 = vmax.f32 %v2538_v36, 0.0 }
 0x44a   : > { %2730 = vst.msk [vmem:[%s4413_s9 + $0x78] sm:$0xf] %vm2699_vm8, %v2954_v49 }
 0x44b   : > { %v2955_v31 = vpack.c.bf16 %v2570_v38, %v2570_v38 }
 0x44d   : > { %2731 = vst.msk [vmem:[%s4413_s9 + $0x7c] sm:$0xf] %vm2699_vm8, %v2955_v31 }
 0x44e PF: > { %s17_s26 = sadd.s32 1, %s3171_s26   ;;  %s4806_s24 = smov %s3167_s25 }
 0x44f   : > { %p14_p5 = scmp.ge.s32.totalorder %s17_s26, 4   ;;  %s4807_s25 = smov %s4809_s27 }
 0x451   :  { %16 = sbr.rel (!%p14_p5) target bundleno = 2 (0x2), region = 79 }

// kernel: tpu_custom_call.1
= control target key start
LH: loop header
LB: loop body
LE: loop exit
PB: predicated region body
PF: predicated region fallthrough
CT: control target
= control target key end

     0   :  { %s3217_s24 = smov 0   ;;  %s3219_s25 = smov 0   ;;  %s4798_s0 = inlined_call_operand.vmem [shape: bf16[2,20,16,4], index: 0, kind: input, shape index: {}]   ;;  %s4799_s1 = inlined_call_operand.vmem [shape: bf16[12,12], index: 1, kind: input, shape index: {}]   ;;  %s4800_s2 = inlined_call_operand.vmem [shape: bf16[12,12], index: 2, kind: input, shape index: {}]   ;;  %s4801_s3 = inlined_call_operand.vmem [shape: f32[1,4], index: 3, kind: input, shape index: {}]   ;;  %s4802_s4 = inlined_call_operand.vmem [shape: f32[1,4], index: 4, kind: input, shape index: {}]   ;;  %s4803_s5 = inlined_call_operand.vmem [shape: f32[1,4], index: 5, kind: input, shape index: {}]   ;;  %s4804_s6 = inlined_call_operand.vmem [shape: f32[1,4], index: 6, kind: input, shape index: {}]   ;;  %s4805_s7 = inlined_call_operand.vmem [shape: bf16[2,16,16,4], index: 7, kind: output, shape index: {}]  }
   0x1   :  { %s3221_s26 = smov 0  }
   0x2 LB: > { %s29_s27 = sadd.s32 1, %s3167_s25  ;;  %p2825_p0 = scmp.ge.s32.totalorder %s3171_s26, 1  ;;  %s3171_s26 = sphi %s3221_s26, %s17_s26   ;;  %s3167_s25 = sphi %s3219_s25, %s4807_s25   ;;  %s3163_s24 = sphi %s3217_s24, %s4806_s24  }
   0x3   : > { %p31_p1 = scmp.ge.s32.totalorder %s29_s27, 2  ;;  %p251_p2 = scmp.lt.s32.totalorder %s3171_s26, 3 }
   0x5   : > { %s4809_s27 = smov (%p31_p1, %s29_s27), 0  ;;  %p252_p3 = pnand %p2825_p0, %p251_p2 }
   0x6   : > { %p288_p4 = scmp.lt.s32.totalorder (!%p252_p3), %s3163_s24, 1  ;;  %vm657_vm0 = vcmask (!%p252_p3), 1045504   ;;  %v3115_v0 = vld [vmem:[%s4799_s1] sm:$0x3f] (!%p252_p3)   ;;  %s3173_s11 = smov (!%p252_p3), 4   ;;  %vm521_vm1 = vcmask (!%p252_p3), 31744  }
   0x7   : > { %255 = sbr.rel (%p252_p3) target bundleno = 1102 (0x44e), region = 48  ;;  %3064 = vmatprep.subr.msk.bf16.mxu0 (!%p252_p3), %vm657_vm0, %v3115_v0  ;;  %v659_v1 = vsel (!%p252_p3), %vm657_vm0, %v3115_v0, 0  ;;  %s3174_s12 = smov (!%p252_p3), 8   ;;  %vm576_vm2 = vcmask (!%p252_p3), 64512   ;;  %vm620_vm3 = vcmask (!%p252_p3), 97280   ;;  %vm2699_vm8 = vcmask (!%p252_p3), 27648  }
   0x8   : > { %2993 = vmatpush3.bf16.msra.mxu0 (!%p252_p3), %v659_v1  ;;  %s3175_s13 = smov (!%p252_p3), 124   ;;  %s3176_s14 = smov (!%p252_p3), 120  }
   0xe   : > { %s4811_s24 = smov (!%p288_p4, %s3163_s24), 1 }
   0xf   : > { %s3066_s30 = smul.u32 160, %s4811_s24  ;;  %s2923_s29 = sshll.u32 %s4811_s24, 7 }
  0x10   : > { %s4413_s9 = scalar_lea.vmem %s4805_s7, %s2923_s29 }
  0x11   : > { %s3246_s10 = scalar_lea.vmem %s4798_s0, %s3066_s30 }
  0x12   : > { %v3249_v2 = vld [vmem:[%s3246_s10 + $0x8] sm:$0xff]   ;;  %v3252_v3 = vld [vmem:[%s3246_s10 + $0x10] sm:$0xff]   ;;  %v3255_v4 = vld [vmem:[%s3246_s10 + $0x18] sm:$0xff]  }
  0x13   : > { %444 = vrot.lane.b32.xlu0 %v3249_v2, %s3173_s11  ;;  %485 = vrot.lane.b32.xlu1 %v3252_v3, %s3174_s12  ;;  %v3262_v5 = vld [vmem:[%s3246_s10 + $0x20] sm:$0xff]   ;;  %v3269_v6 = vld [vmem:[%s3246_s10 + $0x28] sm:$0xff]  }
  0x14   : > { %v3276_v7 = vld [vmem:[%s3246_s10 + $0x30] sm:$0xff]   ;;  %v3283_v8 = vld [vmem:[%s3246_s10 + $0x38] sm:$0xff]   ;;  %v3290_v9 = vld [vmem:[%s3246_s10 + $0x40] sm:$0xff]  }
  0x15   : > { %v3297_v10 = vld [vmem:[%s3246_s10 + $0x48] sm:$0xff]   ;;  %v3304_v11 = vld [vmem:[%s3246_s10 + $0x50] sm:$0xff]   ;;  %v3311_v12 = vld [vmem:[%s3246_s10 + $0x58] sm:$0xff]  }
  0x16   : > { %v3318_v13 = vld [vmem:[%s3246_s10 + $0x60] sm:$0xff]   ;;  %v3325_v14 = vld [vmem:[%s3246_s10 + $0x68] sm:$0xff]   ;;  %v3332_v15 = vld [vmem:[%s3246_s10 + $0x70] sm:$0xff]  }
  0x17   : > { %446 = vrot.lane.b32.xlu0 %v3252_v3, %s3173_s11  ;;  %487 = vrot.lane.b32.xlu1 %v3255_v4, %s3174_s12  ;;  %v3339_v16 = vld [vmem:[%s3246_s10 + $0x78] sm:$0xff]   ;;  %v3346_v17 = vld [vmem:[%s3246_s10 + $0x80] sm:$0xff]  }
  0x18   : > { %v3353_v18 = vld [vmem:[%s3246_s10 + $0x88] sm:$0xff]   ;;  %v3112_v19 = vld [vmem:[%s3246_s10 + $0x90] sm:$0xff]   ;;  %v3113_v20 = vld [vmem:[%s3246_s10 + $0x98] sm:$0xff]  }
  0x19   : > { %v3114_v21 = vld [vmem:[%s3246_s10] sm:$0xff]  }
  0x1b   : > { %448 = vrot.lane.b32.xlu0 %v3255_v4, %s3173_s11  ;;  %450 = vrot.lane.b32.xlu1 %v3262_v5, %s3173_s11 }
  0x1f   : > { %489 = vrot.lane.b32.xlu0 %v3262_v5, %s3174_s12  ;;  %491 = vrot.lane.b32.xlu1 %v3269_v6, %s3174_s12 }
  0x23   : > { %452 = vrot.lane.b32.xlu0 %v3269_v6, %s3173_s11  ;;  %454 = vrot.lane.b32.xlu1 %v3276_v7, %s3173_s11 }
  0x27   : > { %493 = vrot.lane.b32.xlu0 %v3276_v7, %s3174_s12  ;;  %495 = vrot.lane.b32.xlu1 %v3283_v8, %s3174_s12 }
  0x2b   : > { %456 = vrot.lane.b32.xlu0 %v3283_v8, %s3173_s11  ;;  %458 = vrot.lane.b32.xlu1 %v3290_v9, %s3173_s11 }
  0x2f   : > { %497 = vrot.lane.b32.xlu0 %v3290_v9, %s3174_s12  ;;  %499 = vrot.lane.b32.xlu1 %v3297_v10, %s3174_s12 }
  0x33   : > { %460 = vrot.lane.b32.xlu0 %v3297_v10, %s3173_s11  ;;  %462 = vrot.lane.b32.xlu1 %v3304_v11, %s3173_s11 }
  0x37   : > { %501 = vrot.lane.b32.xlu0 %v3304_v11, %s3174_s12  ;;  %503 = vrot.lane.b32.xlu1 %v3311_v12, %s3174_s12 }
  0x3b   : > { %464 = vrot.lane.b32.xlu0 %v3311_v12, %s3173_s11  ;;  %466 = vrot.lane.b32.xlu1 %v3318_v13, %s3173_s11 }
  0x3f   : > { %505 = vrot.lane.b32.xlu0 %v3318_v13, %s3174_s12  ;;  %507 = vrot.lane.b32.xlu1 %v3325_v14, %s3174_s12 }
  0x43   : > { %468 = vrot.lane.b32.xlu0 %v3325_v14, %s3173_s11  ;;  %470 = vrot.lane.b32.xlu1 %v3332_v15, %s3173_s11 }
  0x47   : > { %509 = vrot.lane.b32.xlu0 %v3332_v15, %s3174_s12  ;;  %511 = vrot.lane.b32.xlu1 %v3339_v16, %s3174_s12 }
  0x4b   : > { %472 = vrot.lane.b32.xlu0 %v3339_v16, %s3173_s11  ;;  %474 = vrot.lane.b32.xlu1 %v3346_v17, %s3173_s11 }
  0x4f   : > { %513 = vrot.lane.b32.xlu0 %v3346_v17, %s3174_s12  ;;  %515 = vrot.lane.b32.xlu1 %v3353_v18, %s3174_s12 }
  0x53   : > { %476 = vrot.lane.b32.xlu0 %v3353_v18, %s3173_s11  ;;  %478 = vrot.lane.b32.xlu1 %v3112_v19, %s3173_s11 }
  0x57   : > { %517 = vrot.lane.b32.xlu0 %v3112_v19, %s3174_s12  ;;  %519 = vrot.lane.b32.xlu1 %v3113_v20, %s3174_s12 }
  0x85   : > { %v445_v22 = vpop.permute.xlu0 %444  ;;  %v486_v24 = vpop.permute.xlu1 %485 }
  0x86   : > { %v524_v23 = vsel %vm521_vm1, %v3114_v21, %v445_v22 }
  0x87   : > { %v578_v25 = vsel %vm576_vm2, %v524_v23, %v486_v24 }
  0x88   : > { %2994 = vmatprep.mubr.msk.bf16.mxu0 %vm620_vm3, %v578_v25 }
  0x89   : > { %v447_v26 = vpop.permute.xlu0 %446  ;;  %v488_v28 = vpop.permute.xlu1 %487 }
  0x8a   : > { %v527_v27 = vsel %vm521_vm1, %v3249_v2, %v447_v26 }
  0x8b   : > { %v580_v29 = vsel %vm576_vm2, %v527_v27, %v488_v28 }
  0x8c   : > { %2995 = vmatmul.mubr.msk.bf16.vlgmr.msra.gmra.mrb[0].mxu0 %vm620_vm3, %v580_v29 }
  0x8d   : > { %v449_v30 = vpop.permute.xlu0 %448  ;;  %v451_v32 = vpop.permute.xlu1 %450 }
  0x8e   : > { %v530_v31 = vsel %vm521_vm1, %v3252_v3, %v449_v30  ;;  %v533_v33 = vsel %vm521_vm1, %v3255_v4, %v451_v32  ;;  %v874_v32 = vlaneseq }
  0x91   : > { %v490_v34 = vpop.permute.xlu0 %489  ;;  %v492_v36 = vpop.permute.xlu1 %491 }
  0x92   : > { %v582_v35 = vsel %vm576_vm2, %v530_v31, %v490_v34  ;;  %v584_v37 = vsel %vm576_vm2, %v533_v33, %v492_v36  ;;  %v3442_v33 = vshrl.u32 %v874_v32, 7 }
  0x93   : > { %2998 = vmatprep.mubr.msk.bf16.mxu0 %vm620_vm3, %v582_v35 }
  0x94   : > { %2999 = vmatmul.mubr.msk.bf16.gmra.mrb[4].mxu0 %vm620_vm3, %v584_v37  ;;  %vm876_vm4 = vcmp.lt.s32.totalorder %v3442_v33, 1  ;;  %vm1131_vm5 = vcmp.gt.s32.totalorder %v3442_v33, 0  ;;  %vm1093_vm6 = vcmp.lt.s32.totalorder %v3442_v33, 7 }
  0x95   : > { %v453_v38 = vpop.permute.xlu0 %452  ;;  %v455_v40 = vpop.permute.xlu1 %454 }
  0x96   : > { %v536_v39 = vsel %vm521_vm1, %v3262_v5, %v453_v38  ;;  %v539_v41 = vsel %vm521_vm1, %v3269_v6, %v455_v40 }
  0x99   : > { %v494_v42 = vpop.permute.xlu0 %493  ;;  %v496_v44 = vpop.permute.xlu1 %495 }
  0x9a   : > { %v586_v43 = vsel %vm576_vm2, %v536_v39, %v494_v42  ;;  %v588_v45 = vsel %vm576_vm2, %v539_v41, %v496_v44 }
  0x9b   : > { %3002 = vmatprep.mubr.msk.bf16.mxu0 %vm620_vm3, %v586_v43 }
  0x9c   : > { %3003 = vmatmul.mubr.msk.bf16.gmra.mrb[8].mxu0 %vm620_vm3, %v588_v45 }
  0x9d   : > { %v457_v46 = vpop.permute.xlu0 %456  ;;  %v459_v48 = vpop.permute.xlu1 %458 }
  0x9e   : > { %v542_v47 = vsel %vm521_vm1, %v3276_v7, %v457_v46  ;;  %v545_v49 = vsel %vm521_vm1, %v3283_v8, %v459_v48 }
  0xa1   : > { %v498_v50 = vpop.permute.xlu0 %497  ;;  %v500_v52 = vpop.permute.xlu1 %499 }
  0xa2   : > { %v590_v51 = vsel %vm576_vm2, %v542_v47, %v498_v50  ;;  %v592_v53 = vsel %vm576_vm2, %v545_v49, %v500_v52 }
  0xa3   : > { %3006 = vmatprep.mubr.msk.bf16.mxu0 %vm620_vm3, %v590_v51 }
  0xa4   : > { %3007 = vmatmul.mubr.msk.bf16.gmra.mrb[12].mxu0 %vm620_vm3, %v592_v53 }
  0xa5   : > { %v461_v54 = vpop.permute.xlu0 %460  ;;  %v463_v56 = vpop.permute.xlu1 %462 }
  0xa6   : > { %v548_v55 = vsel %vm521_vm1, %v3290_v9, %v461_v54  ;;  %v551_v57 = vsel %vm521_vm1, %v3297_v10, %v463_v56 }
  0xa9   : > { %v502_v58 = vpop.permute.xlu0 %501  ;;  %v504_v60 = vpop.permute.xlu1 %503 }
  0xaa   : > { %v594_v59 = vsel %vm576_vm2, %v548_v55, %v502_v58  ;;  %v596_v61 = vsel %vm576_vm2, %v551_v57, %v504_v60 }
  0xab   : > { %3010 = vmatprep.mubr.msk.bf16.mxu0 %vm620_vm3, %v594_v59 }
  0xac   : > { %3011 = vmatmul.mubr.msk.bf16.gmra.mrb[16].mxu0 %vm620_vm3, %v596_v61 }
  0xad   : > { %v465_v62 = vpop.permute.xlu0 %464  ;;  %v467_v0 = vpop.permute.xlu1 %466 }
  0xae   : > { %v554_v63 = vsel %vm521_vm1, %v3304_v11, %v465_v62  ;;  %v557_v1 = vsel %vm521_vm1, %v3311_v12, %v467_v0 }
  0xb1   : > { %v506_v2 = vpop.permute.xlu0 %505  ;;  %v508_v4 = vpop.permute.xlu1 %507 }
  0xb2   : > { %v598_v3 = vsel %vm576_vm2, %v554_v63, %v506_v2  ;;  %v600_v5 = vsel %vm576_vm2, %v557_v1, %v508_v4 }
  0xb3   : > { %3014 = vmatprep.mubr.msk.bf16.mxu0 %vm620_vm3, %v598_v3 }
  0xb4   : > { %3015 = vmatmul.mubr.msk.bf16.gmra.mrb[20].mxu0 %vm620_vm3, %v600_v5 }
  0xb5   : > { %v469_v6 = vpop.permute.xlu0 %468  ;;  %v471_v8 = vpop.permute.xlu1 %470 }
  0xb6   : > { %v560_v7 = vsel %vm521_vm1, %v3318_v13, %v469_v6  ;;  %v563_v9 = vsel %vm521_vm1, %v3325_v14, %v471_v8 }
  0xb9   : > { %v510_v10 = vpop.permute.xlu0 %509  ;;  %v512_v12 = vpop.permute.xlu1 %511 }
  0xba   : > { %v602_v11 = vsel %vm576_vm2, %v560_v7, %v510_v10  ;;  %v604_v19 = vsel %vm576_vm2, %v563_v9, %v512_v12 }
  0xbb   : > { %3018 = vmatprep.mubr.msk.bf16.mxu0 %vm620_vm3, %v602_v11 }
  0xbc   : > { %3019 = vmatmul.mubr.msk.bf16.gmra.mrb[24].mxu0 %vm620_vm3, %v604_v19 }
  0xbd   : > { %v473_v20 = vpop.permute.xlu0 %472  ;;  %v475_v22 = vpop.permute.xlu1 %474 }
  0xbe   : > { %v566_v21 = vsel %vm521_vm1, %v3332_v15, %v473_v20  ;;  %v569_v13 = vsel %vm521_vm1, %v3339_v16, %v475_v22 }
  0xc1   : > { %v514_v23 = vpop.permute.xlu0 %513  ;;  %v516_v24 = vpop.permute.xlu1 %515 }
  0xc2   : > { %v606_v14 = vsel %vm576_vm2, %v566_v21, %v514_v23  ;;  %v608_v25 = vsel %vm576_vm2, %v569_v13, %v516_v24 }
  0xc3   : > { %3022 = vmatprep.mubr.msk.bf16.mxu0 %vm620_vm3, %v606_v14 }
  0xc4   : > { %3023 = vmatmul.mubr.msk.bf16.gmra.mrb[28].mxu0 %vm620_vm3, %v608_v25 }
  0xc5   : > { %v477_v26 = vpop.permute.xlu0 %476  ;;  %v479_v28 = vpop.permute.xlu1 %478 }
  0xc6   : > { %v572_v27 = vsel %vm521_vm1, %v3346_v17, %v477_v26  ;;  %v575_v15 = vsel %vm521_vm1, %v3353_v18, %v479_v28 }
  0xc9   : > { %v518_v29 = vpop.permute.xlu0 %517  ;;  %v520_v30 = vpop.permute.xlu1 %519 }
  0xca   : > { %v610_v16 = vsel %vm576_vm2, %v572_v27, %v518_v29  ;;  %v612_v31 = vsel %vm576_vm2, %v575_v15, %v520_v30 }
  0xcb   : > { %3026 = vmatprep.mubr.msk.bf16.mxu0 %vm620_vm3, %v610_v16 }
  0xcc   : > { %3027 = vmatmul.mubr.msk.bf16.gmra.mrb[32].mxu0 %vm620_vm3, %v612_v31 }
 0x15f   : > { %v2996_v34 = vpop.f32.mrb[0].mxu0 }
 0x160   : > { %1219 = vrot.lane.b32.xlu1 %v2996_v34, %s3175_s13  ;;  %953 = vrot.lane.b32.xlu0 %v2996_v34, %s3176_s14  ;;  %v3446_v17 = vpop.f32.mrb[1].mxu0  ;;  %v840_v35 = vrot.slane %v2996_v34, 7 }
 0x161   : > { %v2997_v18 = vpop.f32.mrb[2].mxu0  ;;  %v838_v38 = vrot.slane %v3446_v17, 7 }
 0x162   : > { %v841_v36 = vrot.slane %v2997_v18, 7  ;;  %v698_v37 = vpop.f32.mrb[3].mxu0 }
 0x163   : > { %v839_v39 = vrot.slane %v698_v37, 7 }
 0x164   : > { %1215 = vrot.lane.b32.xlu0 %v3446_v17, %s3175_s13  ;;  %949 = vrot.lane.b32.xlu1 %v3446_v17, %s3176_s14  ;;  %v3456_v40 = vsel %vm876_vm4, %v840_v35, %v841_v36 }
 0x165   : > { %v3460_v41 = vsel %vm876_vm4, %v839_v39, %v840_v35  ;;  %v3466_v42 = vsel %vm876_vm4, %v838_v38, %v839_v39 }
 0x167   : > { %v3000_v43 = vpop.f32.mrb[4].mxu0 }
 0x168   : > { %v844_v44 = vrot.slane %v3000_v43, 7  ;;  %955 = vrot.lane.b32.xlu0 %v2997_v18, %s3176_s14  ;;  %1217 = vrot.lane.b32.xlu1 %v698_v37, %s3175_s13  ;;  %v711_v45 = vpop.f32.mrb[5].mxu0 }
 0x169   : > { %v842_v46 = vrot.slane %v711_v45, 7  ;;  %v3001_v47 = vpop.f32.mrb[6].mxu0 }
 0x16a   : > { %v845_v48 = vrot.slane %v3001_v47, 7  ;;  %v714_v49 = vpop.f32.mrb[7].mxu0 }
 0x16b   : > { %v843_v50 = vrot.slane %v714_v49, 7  ;;  %v3472_v51 = vsel %vm876_vm4, %v841_v36, %v842_v46 }
 0x16c   : > { %1221 = vrot.lane.b32.xlu0 %v2997_v18, %s3175_s13  ;;  %1227 = vrot.lane.b32.xlu1 %v3000_v43, %s3175_s13  ;;  %v3478_v52 = vsel %vm876_vm4, %v844_v44, %v845_v48 }
 0x16d   : > { %v3482_v53 = vsel %vm876_vm4, %v843_v50, %v844_v44  ;;  %v3486_v54 = vsel %vm876_vm4, %v842_v46, %v843_v50 }
 0x16f   : > { %v3004_v55 = vpop.f32.mrb[8].mxu0 }
 0x170   : > { %v848_v56 = vrot.slane %v3004_v55, 7  ;;  %951 = vrot.lane.b32.xlu0 %v698_v37, %s3176_s14  ;;  %957 = vrot.lane.b32.xlu1 %v711_v45, %s3176_s14  ;;  %v727_v57 = vpop.f32.mrb[9].mxu0 }
 0x171   : > { %v846_v58 = vrot.slane %v727_v57, 7  ;;  %v3005_v59 = vpop.f32.mrb[10].mxu0 }
 0x172   : > { %v849_v60 = vrot.slane %v3005_v59, 7  ;;  %v730_v61 = vpop.f32.mrb[11].mxu0 }
 0x173   : > { %v847_v62 = vrot.slane %v730_v61, 7  ;;  %v3492_v63 = vsel %vm876_vm4, %v845_v48, %v846_v58 }
 0x174   : > { %961 = vrot.lane.b32.xlu0 %v3000_v43, %s3176_s14  ;;  %1223 = vrot.lane.b32.xlu1 %v711_v45, %s3175_s13  ;;  %v3498_v0 = vsel %vm876_vm4, %v848_v56, %v849_v60 }
 0x175   : > { %v3502_v1 = vsel %vm876_vm4, %v847_v62, %v848_v56  ;;  %v3506_v2 = vsel %vm876_vm4, %v846_v58, %v847_v62 }
 0x177   : > { %v3008_v3 = vpop.f32.mrb[12].mxu0 }
 0x178   : > { %1229 = vrot.lane.b32.xlu0 %v3001_v47, %s3175_s13  ;;  %963 = vrot.lane.b32.xlu1 %v3001_v47, %s3176_s14  ;;  %v852_v4 = vrot.slane %v3008_v3, 7  ;;  %v743_v5 = vpop.f32.mrb[13].mxu0 }
 0x179   : > { %v850_v6 = vrot.slane %v743_v5, 7  ;;  %v3009_v7 = vpop.f32.mrb[14].mxu0 }
 0x17a   : > { %v853_v8 = vrot.slane %v3009_v7, 7  ;;  %v3510_v9 = vpop.f32.mrb[15].mxu0 }
 0x17b   : > { %v851_v10 = vrot.slane %v3510_v9, 7  ;;  %v3515_v11 = vsel %vm876_vm4, %v849_v60, %v850_v6 }
 0x17c   : > { %1225 = vrot.lane.b32.xlu0 %v714_v49, %s3175_s13  ;;  %959 = vrot.lane.b32.xlu1 %v714_v49, %s3176_s14  ;;  %v3521_v12 = vsel %vm876_vm4, %v852_v4, %v853_v8 }
 0x17d   : > { %v3525_v19 = vsel %vm876_vm4, %v851_v10, %v852_v4  ;;  %v3529_v20 = vsel %vm876_vm4, %v850_v6, %v851_v10 }
 0x17f   : > { %v3531_v21 = vpop.f32.mrb[16].mxu0 }
 0x180   : > { %1235 = vrot.lane.b32.xlu1 %v3004_v55, %s3175_s13  ;;  %969 = vrot.lane.b32.xlu0 %v3004_v55, %s3176_s14  ;;  %v856_v22 = vrot.slane %v3531_v21, 7  ;;  %v3536_v13 = vpop.f32.mrb[17].mxu0 }
 0x181   : > { %v854_v23 = vrot.slane %v3536_v13, 7  ;;  %v3539_v14 = vpop.f32.mrb[18].mxu0 }
 0x182   : > { %v857_v24 = vrot.slane %v3539_v14, 7  ;;  %v3542_v25 = vpop.f32.mrb[19].mxu0 }
 0x183   : > { %v855_v26 = vrot.slane %v3542_v25, 7  ;;  %v3547_v27 = vsel %vm876_vm4, %v853_v8, %v854_v23 }
 0x184   : > { %1231 = vrot.lane.b32.xlu1 %v727_v57, %s3175_s13  ;;  %965 = vrot.lane.b32.xlu0 %v727_v57, %s3176_s14  ;;  %v3553_v28 = vsel %vm876_vm4, %v856_v22, %v857_v24 }
 0x185   : > { %v3557_v15 = vsel %vm876_vm4, %v855_v26, %v856_v22  ;;  %v3561_v29 = vsel %vm876_vm4, %v854_v23, %v855_v26 }
 0x187   : > { %v3563_v16 = vpop.f32.mrb[20].mxu0 }
 0x188   : > { %1237 = vrot.lane.b32.xlu0 %v3005_v59, %s3175_s13  ;;  %971 = vrot.lane.b32.xlu1 %v3005_v59, %s3176_s14  ;;  %v860_v30 = vrot.slane %v3563_v16, 7  ;;  %v3568_v31 = vpop.f32.mrb[21].mxu0 }
 0x189   : > { %v858_v32 = vrot.slane %v3568_v31, 7  ;;  %v3571_v34 = vpop.f32.mrb[22].mxu0 }
 0x18a   : > { %v861_v18 = vrot.slane %v3571_v34, 7  ;;  %v3574_v35 = vpop.f32.mrb[23].mxu0 }
 0x18b   : > { %v859_v36 = vrot.slane %v3574_v35, 7  ;;  %v3579_v37 = vsel %vm876_vm4, %v857_v24, %v858_v32 }
 0x18c   : > { %1233 = vrot.lane.b32.xlu0 %v730_v61, %s3175_s13  ;;  %967 = vrot.lane.b32.xlu1 %v730_v61, %s3176_s14  ;;  %v3585_v39 = vsel %vm876_vm4, %v860_v30, %v861_v18 }
 0x18d   : > { %v3589_v43 = vsel %vm876_vm4, %v859_v36, %v860_v30  ;;  %v3593_v44 = vsel %vm876_vm4, %v858_v32, %v859_v36 }
 0x18f   : > { %v3020_v45 = vpop.f32.mrb[24].mxu0 }
 0x190   : > { %1243 = vrot.lane.b32.xlu1 %v3008_v3, %s3175_s13  ;;  %977 = vrot.lane.b32.xlu0 %v3008_v3, %s3176_s14  ;;  %v864_v46 = vrot.slane %v3020_v45, 7  ;;  %v791_v47 = vpop.f32.mrb[25].mxu0 }
 0x191   : > { %v862_v48 = vrot.slane %v791_v47, 7  ;;  %v3021_v49 = vpop.f32.mrb[26].mxu0 }
 0x192   : > { %v865_v50 = vrot.slane %v3021_v49, 7  ;;  %v794_v55 = vpop.f32.mrb[27].mxu0 }
 0x193   : > { %v863_v56 = vrot.slane %v794_v55, 7  ;;  %v3599_v57 = vsel %vm876_vm4, %v861_v18, %v862_v48 }
 0x194   : > { %1239 = vrot.lane.b32.xlu1 %v743_v5, %s3175_s13  ;;  %973 = vrot.lane.b32.xlu0 %v743_v5, %s3176_s14  ;;  %v3605_v58 = vsel %vm876_vm4, %v864_v46, %v865_v50 }
 0x195   : > { %v3609_v59 = vsel %vm876_vm4, %v863_v56, %v864_v46  ;;  %v3613_v60 = vsel %vm876_vm4, %v862_v48, %v863_v56 }
 0x197   : > { %v3024_v61 = vpop.f32.mrb[28].mxu0 }
 0x198   : > { %1245 = vrot.lane.b32.xlu0 %v3009_v7, %s3175_s13  ;;  %979 = vrot.lane.b32.xlu1 %v3009_v7, %s3176_s14  ;;  %v868_v62 = vrot.slane %v3024_v61, 7  ;;  %v807_v3 = vpop.f32.mrb[29].mxu0 }
 0x199   : > { %v866_v4 = vrot.slane %v807_v3, 7  ;;  %v3025_v5 = vpop.f32.mrb[30].mxu0 }
 0x19a   : > { %v869_v6 = vrot.slane %v3025_v5, 7  ;;  %v810_v8 = vpop.f32.mrb[31].mxu0 }
 0x19b   : > { %v867_v10 = vrot.slane %v810_v8, 7  ;;  %v3619_v22 = vsel %vm876_vm4, %v865_v50, %v866_v4 }
 0x19c   : > { %1241 = vrot.lane.b32.xlu0 %v3510_v9, %s3175_s13  ;;  %975 = vrot.lane.b32.xlu1 %v3510_v9, %s3176_s14  ;;  %v3627_v7 = vsel %vm876_vm4, %v868_v62, %v869_v6 }
 0x19d   : > { %v3631_v23 = vsel %vm876_vm4, %v867_v10, %v868_v62  ;;  %v3635_v24 = vsel %vm876_vm4, %v866_v4, %v867_v10 }
 0x19f   : > { %v3637_v26 = vpop.f32.mrb[32].mxu0 }
 0x1a0   : > { %v872_v30 = vrot.slane %v3637_v26, 7  ;;  %1251 = vrot.lane.b32.xlu1 %v3531_v21, %s3175_s13  ;;  %985 = vrot.lane.b32.xlu0 %v3531_v21, %s3176_s14  ;;  %v3644_v9 = vpop.f32.mrb[33].mxu0 }
 0x1a1   : > { %v870_v32 = vrot.slane %v3644_v9, 7  ;;  %v3647_v18 = vpop.f32.mrb[34].mxu0 }
 0x1a2   : > { %v873_v36 = vrot.slane %v3647_v18, 7  ;;  %v3650_v46 = vpop.f32.mrb[35].mxu0 }
 0x1a3   : > { %v871_v48 = vrot.slane %v3650_v46, 7  ;;  %v3655_v50 = vsel %vm876_vm4, %v869_v6, %v870_v32 }
 0x1a4   : > { %1247 = vrot.lane.b32.xlu1 %v3536_v13, %s3175_s13  ;;  %981 = vrot.lane.b32.xlu0 %v3536_v13, %s3176_s14  ;;  %v912_v21 = vsel %vm876_vm4, %v873_v36, %v838_v38  ;;  %v3667_v56 = vsel %vm876_vm4, %v872_v30, %v873_v36 }
 0x1a5   : > { %v3671_v62 = vsel %vm876_vm4, %v871_v48, %v872_v30  ;;  %v3675_v4 = vsel %vm876_vm4, %v870_v32, %v871_v48 }
 0x1a8   : > { %1253 = vrot.lane.b32.xlu0 %v3539_v14, %s3175_s13  ;;  %987 = vrot.lane.b32.xlu1 %v3539_v14, %s3176_s14 }
 0x1ac   : > { %1249 = vrot.lane.b32.xlu0 %v3542_v25, %s3175_s13  ;;  %983 = vrot.lane.b32.xlu1 %v3542_v25, %s3176_s14 }
 0x1b0   : > { %1259 = vrot.lane.b32.xlu1 %v3563_v16, %s3175_s13  ;;  %993 = vrot.lane.b32.xlu0 %v3563_v16, %s3176_s14 }
 0x1b4   : > { %1255 = vrot.lane.b32.xlu1 %v3568_v31, %s3175_s13  ;;  %989 = vrot.lane.b32.xlu0 %v3568_v31, %s3176_s14 }
 0x1b8   : > { %1261 = vrot.lane.b32.xlu0 %v3571_v34, %s3175_s13  ;;  %995 = vrot.lane.b32.xlu1 %v3571_v34, %s3176_s14 }
 0x1bc   : > { %1257 = vrot.lane.b32.xlu0 %v3574_v35, %s3175_s13  ;;  %991 = vrot.lane.b32.xlu1 %v3574_v35, %s3176_s14  ;;  %v1139_v35 = vsel %vm1131_vm5, %v3460_v41, 0.0  ;;  %v3738_v41 = vld [vmem:[%s4801_s3] ss:$0 sm:$0xff] }
 0x1c0   : > { %1267 = vrot.lane.b32.xlu1 %v3020_v45, %s3175_s13  ;;  %1001 = vrot.lane.b32.xlu0 %v3020_v45, %s3176_s14 }
 0x1c4   : > { %1263 = vrot.lane.b32.xlu1 %v791_v47, %s3175_s13  ;;  %997 = vrot.lane.b32.xlu0 %v791_v47, %s3176_s14 }
 0x1c8   : > { %1269 = vrot.lane.b32.xlu0 %v3021_v49, %s3175_s13  ;;  %1003 = vrot.lane.b32.xlu1 %v3021_v49, %s3176_s14 }
 0x1cc   : > { %1265 = vrot.lane.b32.xlu0 %v794_v55, %s3175_s13  ;;  %999 = vrot.lane.b32.xlu1 %v794_v55, %s3176_s14  ;;  %v3729_v55 = vadd.s32 8, %v3442_v33 }
 0x1ce   : > { %vm1174_vm7 = vcmp.lt.s32.totalorder %v3729_v55, 15 }
 0x1d0   : > { %1275 = vrot.lane.b32.xlu1 %v3024_v61, %s3175_s13  ;;  %1009 = vrot.lane.b32.xlu0 %v3024_v61, %s3176_s14 }
 0x1d2   : > { %v1220_v17 = vpop.permute.xlu1 %1219  ;;  %v954_v38 = vpop.permute.xlu0 %953 }
 0x1d3   : > { %v1059_v34 = vrot.slane %v954_v38, 1  ;;  %v1325_v61 = vadd.f32 %v1220_v17, %v1139_v35 }
 0x1d4   : > { %1271 = vrot.lane.b32.xlu1 %v807_v3, %s3175_s13  ;;  %1005 = vrot.lane.b32.xlu0 %v807_v3, %s3176_s14 }
 0x1d6   : > { %v1216_v13 = vpop.permute.xlu0 %1215  ;;  %v3713_v14 = vpop.permute.xlu1 %949 }
 0x1d7   : > { %v1057_v10 = vrot.slane %v3713_v14, 1 }
 0x1d8   : > { %1277 = vrot.lane.b32.xlu0 %v3025_v5, %s3175_s13  ;;  %1011 = vrot.lane.b32.xlu1 %v3025_v5, %s3176_s14 }
 0x1da   : > { %v956_v25 = vpop.permute.xlu0 %955  ;;  %v1218_v16 = vpop.permute.xlu1 %1217 }
 0x1db   : > { %v1060_v31 = vrot.slane %v956_v25, 1  ;;  %v1324_v48 = vadd.f32 %v1218_v16, %v3466_v42 }
 0x1dc   : > { %1273 = vrot.lane.b32.xlu0 %v810_v8, %s3175_s13  ;;  %1007 = vrot.lane.b32.xlu1 %v810_v8, %s3176_s14  ;;  %v1137_v8 = vsel %vm1131_vm5, %v912_v21, 0.0 }
 0x1dd   : > { %v1126_v45 = vsel %vm1093_vm6, %v1059_v34, %v1060_v31  ;;  %v1323_v36 = vadd.f32 %v1216_v13, %v1137_v8 }
 0x1de   : > { %v1222_v47 = vpop.permute.xlu0 %1221  ;;  %v3726_v49 = vpop.permute.xlu1 %1227  ;;  %v1361_v3 = vadd.f32 %v1325_v61, %v1126_v45 }
 0x1df   : > { %v1326_v17 = vadd.f32 %v1222_v47, %v3456_v40 }
 0x1e0   : > { %1017 = vrot.lane.b32.xlu1 %v3637_v26, %s3176_s14  ;;  %1013 = vrot.lane.b32.xlu0 %v3644_v9, %s3176_s14  ;;  %v1404_v38 = vmul.f32 %v3738_v41, %v1361_v3 }
 0x1e2   : > { %v952_v5 = vpop.permute.xlu0 %951  ;;  %v958_v6 = vpop.permute.xlu1 %957 }
 0x1e3   : > { %v1058_v30 = vrot.slane %v952_v5, 1  ;;  %v1061_v32 = vrot.slane %v958_v6, 1 }
 0x1e4   : > { %1283 = vrot.lane.b32.xlu0 %v3637_v26, %s3175_s13  ;;  %1019 = vrot.lane.b32.xlu1 %v3647_v18, %s3176_s14 }
 0x1e5   : > { %v1127_v21 = vsel %vm1093_vm6, %v1058_v30, %v1059_v34  ;;  %v1128_v13 = vsel %vm1093_vm6, %v1057_v10, %v1058_v30  ;;  %v1125_v42 = vsel %vm1093_vm6, %v1060_v31, %v1061_v32  ;;  %v3766_v34 = vld [vmem:[%s4802_s4] ss:$0 sm:$0xff] }
 0x1e6   : > { %v1180_v40 = vsel %vm1174_vm7, %v1127_v21, 0.0  ;;  %v1359_v26 = vadd.f32 %v1323_v36, %v1128_v13  ;;  %v1182_v25 = vsel %vm1174_vm7, %v1125_v42, 0.0  ;;  %v962_v16 = vpop.permute.xlu0 %961  ;;  %v1224_v35 = vpop.permute.xlu1 %1223  ;;  %v1447_v5 = vadd.f32 %v3766_v34, %v1404_v38 }
 0x1e7   : > { %v1360_v45 = vadd.f32 %v1324_v48, %v1180_v40  ;;  %v1362_v47 = vadd.f32 %v1326_v17, %v1182_v25  ;;  %v1141_v38 = vsel %vm1131_vm5, %v3472_v51, 0.0  ;;  %v1063_v25 = vrot.slane %v962_v16, 1 }
 0x1e8   : > { %v1402_v61 = vmul.f32 %v3738_v41, %v1359_v26  ;;  %1285 = vrot.lane.b32.xlu1 %v3647_v18, %s3175_s13  ;;  %1015 = vrot.lane.b32.xlu0 %v3650_v46, %s3176_s14  ;;  %v1483_v21 = vmax.f32 %v1447_v5, 0.0  ;;  %v3116_v5 = vld [vmem:[%s4800_s2] sm:$0x3f]  }
 0x1e9   : > { %v1403_v31 = vmul.f32 %v3738_v41, %v1360_v45  ;;  %v1405_v3 = vmul.f32 %v3738_v41, %v1362_v47  ;;  %3065 = vmatprep.subr.msk.bf16.mxu1 %vm657_vm0, %v3116_v5 }
 0x1ea   : > { %v1230_v6 = vpop.permute.xlu0 %1229  ;;  %v964_v8 = vpop.permute.xlu1 %963  ;;  %v1445_v30 = vadd.f32 %v3766_v34, %v1402_v61 }
 0x1eb   : > { %v1448_v36 = vadd.f32 %v3766_v34, %v1405_v3  ;;  %v1446_v48 = vadd.f32 %v3766_v34, %v1403_v31  ;;  %v1064_v17 = vrot.slane %v964_v8, 1 }
 0x1ec   : > { %1281 = vrot.lane.b32.xlu1 %v3650_v46, %s3175_s13  ;;  %1279 = vrot.lane.b32.xlu0 %v3644_v9, %s3175_s13  ;;  %v1481_v18 = vmax.f32 %v1445_v30, 0.0  ;;  %v1143_v9 = vsel %vm1131_vm5, %v3482_v53, 0.0  ;;  %v1327_v46 = vadd.f32 %v1224_v35, %v1141_v38 }
 0x1ed   : > { %v1484_v13 = vmax.f32 %v1448_v36, 0.0  ;;  %v1482_v42 = vmax.f32 %v1446_v48, 0.0  ;;  %v1122_v31 = vsel %vm1093_vm6, %v1063_v25, %v1064_v17  ;;  %v1329_v53 = vadd.f32 %v3726_v49, %v1143_v9 }
 0x1ee   : > { %v1226_v40 = vpop.permute.xlu0 %1225  ;;  %v960_v26 = vpop.permute.xlu1 %959 }
 0x1ef   : > { %v1062_v45 = vrot.slane %v960_v26, 1  ;;  %v3786_v47 = vpack.c.bf16 %v1484_v13, %v1483_v21  ;;  %v3788_v61 = vpack.c.bf16 %v1482_v42, %v1481_v18  ;;  %v1328_v3 = vadd.f32 %v1226_v40, %v3486_v54 }
 0x1f0   : > { %v1365_v48 = vadd.f32 %v1329_v53, %v1122_v31 }
 0x1f1   : > { %v1123_v51 = vsel %vm1093_vm6, %v1062_v45, %v1063_v25  ;;  %v1124_v16 = vsel %vm1093_vm6, %v1061_v32, %v1062_v45  ;;  %1569 = vrot.lane.b32.xlu0 %v3786_v47, %s3173_s11  ;;  %v1754_v32 = vsel %vm657_vm0, %v3116_v5, 0  ;;  %v1330_v45 = vadd.f32 %v1230_v6, %v3478_v52 }
 0x1f2   : > { %v1184_v35 = vsel %vm1174_vm7, %v1123_v51, 0.0  ;;  %v1363_v8 = vadd.f32 %v1327_v46, %v1124_v16  ;;  %v1236_v54 = vpop.permute.xlu1 %1235  ;;  %v970_v30 = vpop.permute.xlu0 %969  ;;  %3031 = vmatpush3.bf16.msra.mxu1 %v1754_v32  ;;  %v1408_v26 = vmul.f32 %v3738_v41, %v1365_v48 }
 0x1f3   : > { %v1364_v36 = vadd.f32 %v1328_v3, %v1184_v35  ;;  %v1067_v52 = vrot.slane %v970_v30, 1 }
 0x1f4   : > { %v1406_v18 = vmul.f32 %v3738_v41, %v1363_v8  ;;  %v1451_v35 = vadd.f32 %v3766_v34, %v1408_v26 }
 0x1f5   : > { %v1407_v21 = vmul.f32 %v3738_v41, %v1364_v36  ;;  %v1145_v36 = vsel %vm1131_vm5, %v3492_v63, 0.0 }
 0x1f6   : > { %v1232_v13 = vpop.permute.xlu1 %1231  ;;  %v966_v42 = vpop.permute.xlu0 %965  ;;  %v1449_v49 = vadd.f32 %v3766_v34, %v1406_v18  ;;  %v1147_v18 = vsel %vm1131_vm5, %v3502_v1, 0.0 }
 0x1f7   : > { %v1065_v38 = vrot.slane %v966_v42, 1  ;;  %v1450_v40 = vadd.f32 %v3766_v34, %v1407_v21  ;;  %v1331_v21 = vadd.f32 %v1232_v13, %v1145_v36 }
 0x1f8   : > { %v1485_v25 = vmax.f32 %v1449_v49, 0.0  ;;  %v1487_v49 = vmax.f32 %v1451_v35, 0.0 }
 0x1f9   : > { %v1121_v9 = vsel %vm1093_vm6, %v1064_v17, %v1065_v38  ;;  %v1486_v46 = vmax.f32 %v1450_v40, 0.0 }
 0x1fa   : > { %v1186_v31 = vsel %vm1174_vm7, %v1121_v9, 0.0  ;;  %v1238_v3 = vpop.permute.xlu0 %1237  ;;  %v972_v51 = vpop.permute.xlu1 %971 }
 0x1fb   : > { %v1366_v16 = vadd.f32 %v1330_v45, %v1186_v31  ;;  %v3820_v5 = vpack.c.bf16 %v1486_v46, %v1485_v25  ;;  %v1068_v53 = vrot.slane %v972_v51, 1  ;;  %v1333_v25 = vadd.f32 %v1236_v54, %v1147_v18 }
 0x1fc   : > { %v1334_v36 = vadd.f32 %v1238_v3, %v3498_v0 }
 0x1fd   : > { %v1409_v8 = vmul.f32 %v3738_v41, %v1366_v16  ;;  %1571 = vrot.lane.b32.xlu1 %v3820_v5, %s3173_s11  ;;  %1602 = vrot.lane.b32.xlu0 %v3820_v5, %s3174_s12  ;;  %v1118_v42 = vsel %vm1093_vm6, %v1067_v52, %v1068_v53 }
 0x1fe   : > { %v1234_v6 = vpop.permute.xlu0 %1233  ;;  %v968_v17 = vpop.permute.xlu1 %967  ;;  %v1369_v51 = vadd.f32 %v1333_v25, %v1118_v42  ;;  %v1149_v25 = vsel %vm1131_vm5, %v3515_v11, 0.0 }
 0x1ff   : > { %v1066_v32 = vrot.slane %v968_v17, 1  ;;  %v1452_v48 = vadd.f32 %v3766_v34, %v1409_v8  ;;  %v1332_v30 = vadd.f32 %v1234_v6, %v3506_v2 }
 0x200   : > { %v1412_v6 = vmul.f32 %v3738_v41, %v1369_v51 }
 0x201   : > { %v1119_v40 = vsel %vm1093_vm6, %v1066_v32, %v1067_v52  ;;  %v1120_v63 = vsel %vm1093_vm6, %v1065_v38, %v1066_v32  ;;  %v1488_v26 = vmax.f32 %v1452_v48, 0.0 }
 0x202   : > { %v1188_v45 = vsel %vm1174_vm7, %v1119_v40, 0.0  ;;  %v1367_v9 = vadd.f32 %v1331_v21, %v1120_v63  ;;  %v1244_v1 = vpop.permute.xlu1 %1243  ;;  %v978_v13 = vpop.permute.xlu0 %977  ;;  %v1455_v63 = vadd.f32 %v3766_v34, %v1412_v6 }
 0x203   : > { %v1368_v46 = vadd.f32 %v1332_v30, %v1188_v45  ;;  %v3844_v31 = vpack.c.bf16 %v1488_v26, %v1487_v49  ;;  %v1071_v0 = vrot.slane %v978_v13, 1 }
 0x204   : > { %v1410_v2 = vmul.f32 %v3738_v41, %v1367_v9 }
 0x205   : > { %v1411_v16 = vmul.f32 %v3738_v41, %v1368_v46  ;;  %1604 = vrot.lane.b32.xlu1 %v3844_v31, %s3174_s12  ;;  %1573 = vrot.lane.b32.xlu0 %v3844_v31, %s3173_s11  ;;  %v1151_v46 = vsel %vm1131_vm5, %v3525_v19, 0.0 }
 0x206   : > { %v1240_v54 = vpop.permute.xlu1 %1239  ;;  %v974_v38 = vpop.permute.xlu0 %973  ;;  %v1453_v35 = vadd.f32 %v3766_v34, %v1410_v2 }
 0x207   : > { %v1069_v8 = vrot.slane %v974_v38, 1  ;;  %v1454_v52 = vadd.f32 %v3766_v34, %v1411_v16  ;;  %v1335_v51 = vadd.f32 %v1240_v54, %v1149_v25  ;;  %v1491_v16 = vmax.f32 %v1455_v63, 0.0 }
 0x208   : > { %v1489_v17 = vmax.f32 %v1453_v35, 0.0 }
 0x209   : > { %v1117_v32 = vsel %vm1093_vm6, %v1068_v53, %v1069_v8  ;;  %v1490_v48 = vmax.f32 %v1454_v52, 0.0  ;;  %v1337_v52 = vadd.f32 %v1244_v1, %v1151_v46 }
 0x20a   : > { %v1190_v18 = vsel %vm1174_vm7, %v1117_v32, 0.0  ;;  %v1246_v21 = vpop.permute.xlu0 %1245  ;;  %v980_v42 = vpop.permute.xlu1 %979 }
 0x20b   : > { %v1370_v49 = vadd.f32 %v1334_v36, %v1190_v18  ;;  %v3860_v30 = vpack.c.bf16 %v1490_v48, %v1489_v17  ;;  %v1072_v40 = vrot.slane %v980_v42, 1 }
 0x20d   : > { %v1413_v26 = vmul.f32 %v3738_v41, %v1370_v49  ;;  %1575 = vrot.lane.b32.xlu1 %v3860_v30, %s3173_s11  ;;  %1606 = vrot.lane.b32.xlu0 %v3860_v30, %s3174_s12  ;;  %v1114_v2 = vsel %vm1093_vm6, %v1071_v0, %v1072_v40 }
 0x20e   : > { %v1242_v3 = vpop.permute.xlu0 %1241  ;;  %v976_v53 = vpop.permute.xlu1 %975  ;;  %v1373_v48 = vadd.f32 %v1337_v52, %v1114_v2 }
 0x20f   : > { %v1070_v45 = vrot.slane %v976_v53, 1  ;;  %v1456_v9 = vadd.f32 %v3766_v34, %v1413_v26  ;;  %v1336_v13 = vadd.f32 %v1242_v3, %v3529_v20  ;;  %v1338_v3 = vadd.f32 %v1246_v21, %v3521_v12 }
 0x210   : > { %v1416_v26 = vmul.f32 %v3738_v41, %v1373_v48 }
 0x211   : > { %v1115_v38 = vsel %vm1093_vm6, %v1070_v45, %v1071_v0  ;;  %v1116_v11 = vsel %vm1093_vm6, %v1069_v8, %v1070_v45  ;;  %v1492_v35 = vmax.f32 %v1456_v9, 0.0 }
 0x212   : > { %v1192_v6 = vsel %vm1174_vm7, %v1115_v38, 0.0  ;;  %v1371_v17 = vadd.f32 %v1335_v51, %v1116_v11  ;;  %v1252_v19 = vpop.permute.xlu1 %1251  ;;  %v986_v54 = vpop.permute.xlu0 %985  ;;  %v1153_v11 = vsel %vm1131_vm5, %v3547_v27, 0.0 }
 0x213   : > { %v1372_v36 = vadd.f32 %v1336_v13, %v1192_v6  ;;  %v3884_v32 = vpack.c.bf16 %v1492_v35, %v1491_v16  ;;  %v1459_v13 = vadd.f32 %v3766_v34, %v1416_v26  ;;  %v1075_v12 = vrot.slane %v986_v54, 1 }
 0x214   : > { %v1414_v20 = vmul.f32 %v3738_v41, %v1371_v17  ;;  %v1155_v6 = vsel %vm1131_vm5, %v3557_v15, 0.0 }
 0x215   : > { %v1415_v18 = vmul.f32 %v3738_v41, %v1372_v36  ;;  %1608 = vrot.lane.b32.xlu1 %v3884_v32, %s3174_s12  ;;  %1577 = vrot.lane.b32.xlu0 %v3884_v32, %s3173_s11  ;;  %v1495_v48 = vmax.f32 %v1459_v13, 0.0 }
 0x216   : > { %v1248_v1 = vpop.permute.xlu1 %1247  ;;  %v982_v8 = vpop.permute.xlu0 %981  ;;  %v1457_v42 = vadd.f32 %v3766_v34, %v1414_v20 }
 0x217   : > { %v1073_v49 = vrot.slane %v982_v8, 1  ;;  %v1458_v63 = vadd.f32 %v3766_v34, %v1415_v18  ;;  %v1339_v17 = vadd.f32 %v1248_v1, %v1153_v11  ;;  %v1341_v8 = vadd.f32 %v1252_v19, %v1155_v6 }
 0x218   : > { %v1493_v0 = vmax.f32 %v1457_v42, 0.0 }
 0x219   : > { %v1113_v53 = vsel %vm1093_vm6, %v1072_v40, %v1073_v49  ;;  %v1494_v25 = vmax.f32 %v1458_v63, 0.0 }
 0x21a   : > { %v1194_v45 = vsel %vm1174_vm7, %v1113_v53, 0.0  ;;  %v1254_v9 = vpop.permute.xlu0 %1253  ;;  %v988_v46 = vpop.permute.xlu1 %987 }
 0x21b   : > { %v1374_v51 = vadd.f32 %v1338_v3, %v1194_v45  ;;  %v3900_v2 = vpack.c.bf16 %v1494_v25, %v1493_v0  ;;  %v1076_v16 = vrot.slane %v988_v46, 1 }
 0x21d   : > { %v1417_v38 = vmul.f32 %v3738_v41, %v1374_v51  ;;  %1579 = vrot.lane.b32.xlu1 %v3900_v2, %s3173_s11  ;;  %1610 = vrot.lane.b32.xlu0 %v3900_v2, %s3174_s12  ;;  %v1110_v36 = vsel %vm1093_vm6, %v1075_v12, %v1076_v16 }
 0x21e   : > { %v1250_v21 = vpop.permute.xlu0 %1249  ;;  %v984_v40 = vpop.permute.xlu1 %983  ;;  %v1377_v3 = vadd.f32 %v1341_v8, %v1110_v36 }
 0x21f   : > { %v1074_v35 = vrot.slane %v984_v40, 1  ;;  %v1460_v52 = vadd.f32 %v3766_v34, %v1417_v38  ;;  %v1340_v54 = vadd.f32 %v1250_v21, %v3561_v29  ;;  %v1342_v38 = vadd.f32 %v1254_v9, %v3553_v28 }
 0x220   : > { %v1420_v51 = vmul.f32 %v3738_v41, %v1377_v3 }
 0x221   : > { %v1111_v20 = vsel %vm1093_vm6, %v1074_v35, %v1075_v12  ;;  %v1112_v27 = vsel %vm1093_vm6, %v1073_v49, %v1074_v35  ;;  %v1496_v18 = vmax.f32 %v1460_v52, 0.0 }
 0x222   : > { %v1196_v42 = vsel %vm1174_vm7, %v1111_v20, 0.0  ;;  %v1375_v63 = vadd.f32 %v1339_v17, %v1112_v27  ;;  %v1260_v15 = vpop.permute.xlu1 %1259  ;;  %v994_v1 = vpop.permute.xlu0 %993  ;;  %v1463_v36 = vadd.f32 %v3766_v34, %v1420_v51 }
 0x223   : > { %v1376_v26 = vadd.f32 %v1340_v54, %v1196_v42  ;;  %v3924_v0 = vpack.c.bf16 %v1496_v18, %v1495_v48  ;;  %v1079_v28 = vrot.slane %v994_v1, 1  ;;  %v1157_v54 = vsel %vm1131_vm5, %v3579_v37, 0.0 }
 0x224   : > { %v1418_v29 = vmul.f32 %v3738_v41, %v1375_v63  ;;  %v1159_v18 = vsel %vm1131_vm5, %v3589_v43, 0.0  ;;  %v1499_v63 = vmax.f32 %v1463_v36, 0.0 }
 0x225   : > { %v1419_v53 = vmul.f32 %v3738_v41, %v1376_v26  ;;  %1612 = vrot.lane.b32.xlu1 %v3924_v0, %s3174_s12  ;;  %1581 = vrot.lane.b32.xlu0 %v3924_v0, %s3173_s11 }
 0x226   : > { %v1256_v19 = vpop.permute.xlu1 %1255  ;;  %v990_v49 = vpop.permute.xlu0 %989  ;;  %v1461_v25 = vadd.f32 %v3766_v34, %v1418_v29  ;;  %v1345_v29 = vadd.f32 %v1260_v15, %v1159_v18 }
 0x227   : > { %v1077_v45 = vrot.slane %v990_v49, 1  ;;  %v1462_v46 = vadd.f32 %v3766_v34, %v1419_v53  ;;  %v1343_v8 = vadd.f32 %v1256_v19, %v1157_v54 }
 0x228   : > { %v1497_v13 = vmax.f32 %v1461_v25, 0.0 }
 0x229   : > { %v1109_v12 = vsel %vm1093_vm6, %v1076_v16, %v1077_v45  ;;  %v1498_v21 = vmax.f32 %v1462_v46, 0.0 }
 0x22a   : > { %v1198_v40 = vsel %vm1174_vm7, %v1109_v12, 0.0  ;;  %v1262_v11 = vpop.permute.xlu0 %1261  ;;  %v996_v35 = vpop.permute.xlu1 %995 }
 0x22b   : > { %v1378_v52 = vadd.f32 %v1342_v38, %v1198_v40  ;;  %v3940_v6 = vpack.c.bf16 %v1498_v21, %v1497_v13  ;;  %v1080_v17 = vrot.slane %v996_v35, 1 }
 0x22d   : > { %v1421_v48 = vmul.f32 %v3738_v41, %v1378_v52  ;;  %1583 = vrot.lane.b32.xlu1 %v3940_v6, %s3173_s11  ;;  %1614 = vrot.lane.b32.xlu0 %v3940_v6, %s3174_s12  ;;  %v1106_v42 = vsel %vm1093_vm6, %v1079_v28, %v1080_v17  ;;  %v1346_v52 = vadd.f32 %v1262_v11, %v3585_v39 }
 0x22e   : > { %v1258_v9 = vpop.permute.xlu0 %1257  ;;  %v992_v16 = vpop.permute.xlu1 %991  ;;  %v1381_v51 = vadd.f32 %v1345_v29, %v1106_v42  ;;  %v1161_v42 = vsel %vm1131_vm5, %v3599_v57, 0.0 }
 0x22f   : > { %v1078_v20 = vrot.slane %v992_v16, 1  ;;  %v1464_v27 = vadd.f32 %v3766_v34, %v1421_v48  ;;  %v1344_v1 = vadd.f32 %v1258_v9, %v3593_v44 }
 0x230   : > { %v1424_v40 = vmul.f32 %v3738_v41, %v1381_v51 }
 0x231   : > { %v1107_v26 = vsel %vm1093_vm6, %v1078_v20, %v1079_v28  ;;  %v1108_v37 = vsel %vm1093_vm6, %v1077_v45, %v1078_v20  ;;  %v1500_v3 = vmax.f32 %v1464_v27, 0.0 }
 0x232   : > { %v1200_v53 = vsel %vm1174_vm7, %v1107_v26, 0.0  ;;  %v1379_v49 = vadd.f32 %v1343_v8, %v1108_v37  ;;  %v1268_v43 = vpop.permute.xlu1 %1267  ;;  %v1002_v19 = vpop.permute.xlu0 %1001  ;;  %v1467_v18 = vadd.f32 %v3766_v34, %v1424_v40  ;;  %v1163_v26 = vsel %vm1131_vm5, %v3609_v59, 0.0 }
 0x233   : > { %v1380_v25 = vadd.f32 %v1344_v1, %v1200_v53  ;;  %v3964_v46 = vpack.c.bf16 %v1500_v3, %v1499_v63  ;;  %v1083_v39 = vrot.slane %v1002_v19, 1 }
 0x234   : > { %v1422_v44 = vmul.f32 %v3738_v41, %v1379_v49  ;;  %v1503_v29 = vmax.f32 %v1467_v18, 0.0 }
 0x235   : > { %v1423_v13 = vmul.f32 %v3738_v41, %v1380_v25  ;;  %1616 = vrot.lane.b32.xlu1 %v3964_v46, %s3174_s12  ;;  %1585 = vrot.lane.b32.xlu0 %v3964_v46, %s3173_s11  ;;  %v1349_v25 = vadd.f32 %v1268_v43, %v1163_v26 }
 0x236   : > { %v1264_v15 = vpop.permute.xlu1 %1263  ;;  %v998_v45 = vpop.permute.xlu0 %997  ;;  %v1465_v38 = vadd.f32 %v3766_v34, %v1422_v44 }
 0x237   : > { %v1081_v12 = vrot.slane %v998_v45, 1  ;;  %v1466_v21 = vadd.f32 %v3766_v34, %v1423_v13  ;;  %v1347_v37 = vadd.f32 %v1264_v15, %v1161_v42 }
 0x238   : > { %v1501_v35 = vmax.f32 %v1465_v38, 0.0 }
 0x239   : > { %v1105_v36 = vsel %vm1093_vm6, %v1080_v17, %v1081_v12  ;;  %v1502_v48 = vmax.f32 %v1466_v21, 0.0 }
 0x23a   : > { %v1202_v28 = vsel %vm1174_vm7, %v1105_v36, 0.0  ;;  %v1270_v9 = vpop.permute.xlu0 %1269  ;;  %v1004_v16 = vpop.permute.xlu1 %1003 }
 0x23b   : > { %v1382_v54 = vadd.f32 %v1346_v52, %v1202_v28  ;;  %v3980_v20 = vpack.c.bf16 %v1502_v48, %v1501_v35  ;;  %v1084_v27 = vrot.slane %v1004_v16, 1  ;;  %v1350_v28 = vadd.f32 %v1270_v9, %v3605_v58 }
 0x23c   : > { %v1167_v58 = vsel %vm1131_vm5, %v3631_v23, 0.0 }
 0x23d   : > { %v1425_v8 = vmul.f32 %v3738_v41, %v1382_v54  ;;  %1587 = vrot.lane.b32.xlu1 %v3980_v20, %s3173_s11  ;;  %1618 = vrot.lane.b32.xlu0 %v3980_v20, %s3174_s12  ;;  %v1102_v3 = vsel %vm1093_vm6, %v1083_v39, %v1084_v27 }
 0x23e   : > { %v1266_v11 = vpop.permute.xlu0 %1265  ;;  %v1000_v17 = vpop.permute.xlu1 %999  ;;  %v1385_v38 = vadd.f32 %v1349_v25, %v1102_v3 }
 0x23f   : > { %v1082_v63 = vrot.slane %v1000_v17, 1  ;;  %v1468_v1 = vadd.f32 %v3766_v34, %v1425_v8  ;;  %v1348_v53 = vadd.f32 %v1266_v11, %v3613_v60 }
 0x240   : > { %v1428_v36 = vmul.f32 %v3738_v41, %v1385_v38 }
 0x241   : > { %v1103_v49 = vsel %vm1093_vm6, %v1082_v63, %v1083_v39  ;;  %v1104_v57 = vsel %vm1093_vm6, %v1081_v12, %v1082_v63  ;;  %v1504_v19 = vmax.f32 %v1468_v1, 0.0 }
 0x242   : > { %v1204_v51 = vsel %vm1174_vm7, %v1103_v49, 0.0  ;;  %v1383_v44 = vadd.f32 %v1347_v37, %v1104_v57  ;;  %v1276_v59 = vpop.permute.xlu1 %1275  ;;  %v1010_v13 = vpop.permute.xlu0 %1009  ;;  %v1471_v1 = vadd.f32 %v3766_v34, %v1428_v36 }
 0x243   : > { %v1384_v15 = vadd.f32 %v1348_v53, %v1204_v51  ;;  %v4004_v45 = vpack.c.bf16 %v1504_v19, %v1503_v29  ;;  %v1087_v11 = vrot.slane %v1010_v13, 1  ;;  %v1353_v26 = vadd.f32 %v1276_v59, %v1167_v58 }
 0x244   : > { %v1426_v60 = vmul.f32 %v3738_v41, %v1383_v44  ;;  %v1165_v29 = vsel %vm1131_vm5, %v3619_v22, 0.0  ;;  %v1507_v19 = vmax.f32 %v1471_v1, 0.0 }
 0x245   : > { %v1427_v21 = vmul.f32 %v3738_v41, %v1384_v15  ;;  %1620 = vrot.lane.b32.xlu1 %v4004_v45, %s3174_s12  ;;  %1589 = vrot.lane.b32.xlu0 %v4004_v45, %s3173_s11 }
 0x246   : > { %v1272_v43 = vpop.permute.xlu1 %1271  ;;  %v1006_v12 = vpop.permute.xlu0 %1005  ;;  %v1469_v40 = vadd.f32 %v3766_v34, %v1426_v60 }
 0x247   : > { %v1085_v35 = vrot.slane %v1006_v12, 1  ;;  %v1470_v52 = vadd.f32 %v3766_v34, %v1427_v21  ;;  %v1351_v49 = vadd.f32 %v1272_v43, %v1165_v29 }
 0x248   : > { %v1505_v48 = vmax.f32 %v1469_v40, 0.0 }
 0x249   : > { %v1101_v16 = vsel %vm1093_vm6, %v1084_v27, %v1085_v35  ;;  %v1506_v54 = vmax.f32 %v1470_v52, 0.0 }
 0x24a   : > { %v1206_v18 = vsel %vm1174_vm7, %v1101_v16, 0.0  ;;  %v1278_v8 = vpop.permute.xlu0 %1277  ;;  %v1012_v39 = vpop.permute.xlu1 %1011 }
 0x24b   : > { %v1386_v17 = vadd.f32 %v1350_v28, %v1206_v18  ;;  %v1088_v42 = vrot.slane %v1012_v39, 1  ;;  %v4020_v63 = vpack.c.bf16 %v1506_v54, %v1505_v48  ;;  %v1354_v40 = vadd.f32 %v1278_v8, %v3627_v7 }
 0x24c   : > { %v1171_v7 = vsel %vm1131_vm5, %v3671_v62, 0.0 }
 0x24d   : > { %v1429_v9 = vmul.f32 %v3738_v41, %v1386_v17  ;;  %v1098_v27 = vsel %vm1093_vm6, %v1087_v11, %v1088_v42  ;;  %1591 = vrot.lane.b32.xlu1 %v4020_v63, %s3173_s11  ;;  %1622 = vrot.lane.b32.xlu0 %v4020_v63, %s3174_s12 }
 0x24e   : > { %v1274_v37 = vpop.permute.xlu0 %1273  ;;  %v1008_v3 = vpop.permute.xlu1 %1007  ;;  %v1389_v57 = vadd.f32 %v1353_v26, %v1098_v27 }
 0x24f   : > { %v1086_v53 = vrot.slane %v1008_v3, 1  ;;  %v1472_v23 = vadd.f32 %v3766_v34, %v1429_v9  ;;  %v1352_v25 = vadd.f32 %v1274_v37, %v3635_v24 }
 0x250   : > { %v1432_v12 = vmul.f32 %v3738_v41, %v1389_v57 }
 0x251   : > { %v1099_v51 = vsel %vm1093_vm6, %v1086_v53, %v1087_v11  ;;  %v1100_v44 = vsel %vm1093_vm6, %v1085_v35, %v1086_v53  ;;  %v1508_v59 = vmax.f32 %v1472_v23, 0.0 }
 0x252   : > { %v1208_v13 = vsel %vm1174_vm7, %v1099_v51, 0.0  ;;  %v1387_v15 = vadd.f32 %v1351_v49, %v1100_v44  ;;  %v1018_v22 = vpop.permute.xlu1 %1017  ;;  %v1014_v38 = vpop.permute.xlu0 %1013  ;;  %v1169_v51 = vsel %vm1131_vm5, %v3655_v50, 0.0 }
 0x253   : > { %v1388_v60 = vadd.f32 %v1352_v25, %v1208_v13  ;;  %v1089_v21 = vrot.slane %v1014_v38, 1  ;;  %v4044_v43 = vpack.c.bf16 %v1508_v59, %v1507_v19  ;;  %v1091_v36 = vrot.slane %v1018_v22, 1 }
 0x254   : > { %v1430_v24 = vmul.f32 %v3738_v41, %v1387_v15 }
 0x255   : > { %v1431_v52 = vmul.f32 %v3738_v41, %v1388_v60  ;;  %v1097_v35 = vsel %vm1093_vm6, %v1088_v42, %v1089_v21  ;;  %1624 = vrot.lane.b32.xlu1 %v4044_v43, %s3174_s12  ;;  %1593 = vrot.lane.b32.xlu0 %v4044_v43, %s3173_s11  ;;  %v1475_v42 = vadd.f32 %v3766_v34, %v1432_v12 }
 0x256   : > { %v1210_v48 = vsel %vm1174_vm7, %v1097_v35, 0.0  ;;  %v1284_v28 = vpop.permute.xlu0 %1283  ;;  %v1020_v16 = vpop.permute.xlu1 %1019  ;;  %v1473_v54 = vadd.f32 %v3766_v34, %v1430_v24 }
 0x257   : > { %v1390_v18 = vadd.f32 %v1354_v40, %v1210_v48  ;;  %v1357_v8 = vadd.f32 %v1284_v28, %v1171_v7  ;;  %v1092_v39 = vrot.slane %v1020_v16, 1  ;;  %v1474_v11 = vadd.f32 %v3766_v34, %v1431_v52 }
 0x258   : > { %v1509_v17 = vmax.f32 %v1473_v54, 0.0 }
 0x259   : > { %v1433_v1 = vmul.f32 %v3738_v41, %v1390_v18  ;;  %v1094_v58 = vsel %vm1093_vm6, %v1091_v36, %v1092_v39  ;;  %v1129_v62 = vsel %vm1093_vm6, %v1092_v39, %v1057_v10  ;;  %v1510_v9 = vmax.f32 %v1474_v11, 0.0 }
 0x25a   : > { %v1393_v27 = vadd.f32 %v1357_v8, %v1094_v58  ;;  %v1286_v26 = vpop.permute.xlu1 %1285  ;;  %v1016_v37 = vpop.permute.xlu0 %1015  ;;  %v1214_v57 = vsel %vm1174_vm7, %v1129_v62, 0.0  ;;  %v1511_v10 = vmax.f32 %v1475_v42, 0.0  ;;  %v1551_v8 = vmul.bf16 0.0, %v3788_v61 }
 0x25b   : > { %v1358_v3 = vadd.f32 %v1286_v26, %v3667_v56  ;;  %v1090_v29 = vrot.slane %v1016_v37, 1  ;;  %v4072_v53 = vpack.c.bf16 %v1510_v9, %v1509_v17  ;;  %v1476_v23 = vadd.f32 %v3766_v34, %v1433_v1 }
 0x25c   : > { %v1436_v49 = vmul.f32 %v3738_v41, %v1393_v27 }
 0x25d   : > { %v1394_v14 = vadd.f32 %v1358_v3, %v1214_v57  ;;  %1595 = vrot.lane.b32.xlu1 %v4072_v53, %s3173_s11  ;;  %1626 = vrot.lane.b32.xlu0 %v4072_v53, %s3174_s12  ;;  %v1095_v56 = vsel %vm1093_vm6, %v1090_v29, %v1091_v36  ;;  %v1512_v19 = vmax.f32 %v1476_v23, 0.0  ;;  %v1096_v12 = vsel %vm1093_vm6, %v1089_v21, %v1090_v29 }
 0x25e   : > { %v1282_v25 = vpop.permute.xlu1 %1281  ;;  %v1280_v44 = vpop.permute.xlu0 %1279  ;;  %v1479_v59 = vadd.f32 %v3766_v34, %v1436_v49  ;;  %v1212_v60 = vsel %vm1174_vm7, %v1095_v56, 0.0 }
 0x25f   : > { %v1437_v13 = vmul.f32 %v3738_v41, %v1394_v14  ;;  %v1356_v15 = vadd.f32 %v1282_v25, %v3675_v4  ;;  %v1355_v22 = vadd.f32 %v1280_v44, %v1169_v51  ;;  %v4090_v38 = vpack.c.bf16 %v1512_v19, %v1511_v10 }
 0x260   : > { %v1515_v36 = vmax.f32 %v1479_v59, 0.0 }
 0x261   : > { %v1480_v24 = vadd.f32 %v3766_v34, %v1437_v13  ;;  %v1392_v40 = vadd.f32 %v1356_v15, %v1212_v60  ;;  %v1391_v50 = vadd.f32 %v1355_v22, %v1096_v12  ;;  %1628 = vrot.lane.b32.xlu1 %v4090_v38, %s3174_s12  ;;  %1597 = vrot.lane.b32.xlu0 %v4090_v38, %s3173_s11 }
 0x263   : > { %v1516_v4 = vmax.f32 %v1480_v24, 0.0  ;;  %v1435_v52 = vmul.f32 %v3738_v41, %v1392_v40  ;;  %v1434_v35 = vmul.f32 %v3738_v41, %v1391_v50  ;;  %v1570_v18 = vpop.permute.xlu0 %1569 }
 0x264   : > { %v1636_v11 = vsel %vm521_vm1, %v1551_v8, %v1570_v18 }
 0x265   : > { %v1478_v48 = vadd.f32 %v3766_v34, %v1435_v52  ;;  %v1477_v21 = vadd.f32 %v3766_v34, %v1434_v35  ;;  %v1534_v28 = vpack.c.bf16 %v1516_v4, %v1515_v36 }
 0x267   : > { %v1514_v7 = vmax.f32 %v1478_v48, 0.0  ;;  %v1513_v16 = vmax.f32 %v1477_v21, 0.0  ;;  %v1552_v39 = vmul.bf16 0.0, %v1534_v28 }
 0x269   : > { %v1533_v54 = vpack.c.bf16 %v1514_v7, %v1513_v16 }
 0x26b   : > { %1630 = vrot.lane.b32.xlu0 %v1533_v54, %s3174_s12  ;;  %1599 = vrot.lane.b32.xlu1 %v1533_v54, %s3173_s11 }
 0x26f   : > { %v1603_v41 = vpop.permute.xlu0 %1602  ;;  %1632 = vrot.lane.b32.xlu1 %v1552_v39, %s3174_s12  ;;  %v1572_v34 = vpop.permute.xlu1 %1571 }
 0x270   : > { %v1683_v17 = vsel %vm576_vm2, %v1636_v11, %v1603_v41  ;;  %v1639_v42 = vsel %vm521_vm1, %v3786_v47, %v1572_v34 }
 0x271   : > { %3032 = vmatprep.mubr.msk.bf16.mxu1 %vm620_vm3, %v1683_v17 }
 0x277   : > { %v1605_v1 = vpop.permute.xlu1 %1604  ;;  %v1574_v61 = vpop.permute.xlu0 %1573 }
 0x278   : > { %v1685_v58 = vsel %vm576_vm2, %v1639_v42, %v1605_v1  ;;  %v1642_v62 = vsel %vm521_vm1, %v3820_v5, %v1574_v61 }
 0x279   : > { %3033 = vmatmul.mubr.msk.bf16.vlgmr.msra.gmra.mrb[0].mxu1 %vm620_vm3, %v1685_v58 }
 0x27f   : > { %v1607_v9 = vpop.permute.xlu0 %1606  ;;  %v1576_v26 = vpop.permute.xlu1 %1575 }
 0x280   : > { %v1687_v27 = vsel %vm576_vm2, %v1642_v62, %v1607_v9  ;;  %v1645_v37 = vsel %vm521_vm1, %v3844_v31, %v1576_v26 }
 0x281   : > { %3036 = vmatprep.mubr.msk.bf16.mxu1 %vm620_vm3, %v1687_v27 }
 0x287   : > { %v1609_v3 = vpop.permute.xlu1 %1608  ;;  %v1578_v29 = vpop.permute.xlu0 %1577 }
 0x288   : > { %v1689_v47 = vsel %vm576_vm2, %v1645_v37, %v1609_v3  ;;  %v1648_v23 = vsel %vm521_vm1, %v3860_v30, %v1578_v29 }
 0x289   : > { %3037 = vmatmul.mubr.msk.bf16.gmra.mrb[4].mxu1 %vm620_vm3, %v1689_v47 }
 0x28f   : > { %v1611_v49 = vpop.permute.xlu0 %1610  ;;  %v1580_v57 = vpop.permute.xlu1 %1579 }
 0x290   : > { %v1691_v5 = vsel %vm576_vm2, %v1648_v23, %v1611_v49  ;;  %v1651_v14 = vsel %vm521_vm1, %v3884_v32, %v1580_v57 }
 0x291   : > { %3040 = vmatprep.mubr.msk.bf16.mxu1 %vm620_vm3, %v1691_v5 }
 0x297   : > { %v1613_v56 = vpop.permute.xlu1 %1612  ;;  %v1582_v10 = vpop.permute.xlu0 %1581 }
 0x298   : > { %v1693_v31 = vsel %vm576_vm2, %v1651_v14, %v1613_v56  ;;  %v1654_v19 = vsel %vm521_vm1, %v3900_v2, %v1582_v10 }
 0x299   : > { %3041 = vmatmul.mubr.msk.bf16.gmra.mrb[8].mxu1 %vm620_vm3, %v1693_v31 }
 0x29f   : > { %v1615_v25 = vpop.permute.xlu0 %1614  ;;  %v1584_v51 = vpop.permute.xlu1 %1583 }
 0x2a0   : > { %v1695_v30 = vsel %vm576_vm2, %v1654_v19, %v1615_v25  ;;  %v1657_v44 = vsel %vm521_vm1, %v3924_v0, %v1584_v51 }
 0x2a1   : > { %3044 = vmatprep.mubr.msk.bf16.mxu1 %vm620_vm3, %v1695_v30 }
 0x2a7   : > { %v1617_v59 = vpop.permute.xlu1 %1616  ;;  %v1586_v13 = vpop.permute.xlu0 %1585 }
 0x2a8   : > { %v1697_v32 = vsel %vm576_vm2, %v1657_v44, %v1617_v59  ;;  %v1660_v15 = vsel %vm521_vm1, %v3940_v6, %v1586_v13 }
 0x2a9   : > { %3045 = vmatmul.mubr.msk.bf16.gmra.mrb[12].mxu1 %vm620_vm3, %v1697_v32 }
 0x2af   : > { %v1619_v22 = vpop.permute.xlu0 %1618  ;;  %v1588_v60 = vpop.permute.xlu1 %1587 }
 0x2b0   : > { %v1699_v2 = vsel %vm576_vm2, %v1660_v15, %v1619_v22  ;;  %v1663_v12 = vsel %vm521_vm1, %v3964_v46, %v1588_v60 }
 0x2b1   : > { %3048 = vmatprep.mubr.msk.bf16.mxu1 %vm620_vm3, %v1699_v2 }
 0x2b7   : > { %v1621_v24 = vpop.permute.xlu1 %1620  ;;  %v1590_v40 = vpop.permute.xlu0 %1589 }
 0x2b8   : > { %v1701_v0 = vsel %vm576_vm2, %v1663_v12, %v1621_v24  ;;  %v1666_v50 = vsel %vm521_vm1, %v3980_v20, %v1590_v40 }
 0x2b9   : > { %3049 = vmatmul.mubr.msk.bf16.gmra.mrb[16].mxu1 %vm620_vm3, %v1701_v0 }
 0x2bf   : > { %v1623_v4 = vpop.permute.xlu0 %1622  ;;  %v1592_v52 = vpop.permute.xlu1 %1591 }
 0x2c0   : > { %v1703_v6 = vsel %vm576_vm2, %v1666_v50, %v1623_v4  ;;  %v1669_v35 = vsel %vm521_vm1, %v4004_v45, %v1592_v52 }
 0x2c1   : > { %3052 = vmatprep.mubr.msk.bf16.mxu1 %vm620_vm3, %v1703_v6 }
 0x2c7   : > { %v1625_v36 = vpop.permute.xlu1 %1624  ;;  %v1594_v48 = vpop.permute.xlu0 %1593 }
 0x2c8   : > { %v1705_v46 = vsel %vm576_vm2, %v1669_v35, %v1625_v36  ;;  %v1672_v21 = vsel %vm521_vm1, %v4020_v63, %v1594_v48 }
 0x2c9   : > { %3053 = vmatmul.mubr.msk.bf16.gmra.mrb[20].mxu1 %vm620_vm3, %v1705_v46 }
 0x2cf   : > { %v1596_v28 = vpop.permute.xlu1 %1595  ;;  %v1627_v20 = vpop.permute.xlu0 %1626 }
 0x2d0   : > { %v1707_v7 = vsel %vm576_vm2, %v1672_v21, %v1627_v20  ;;  %v1675_v16 = vsel %vm521_vm1, %v4044_v43, %v1596_v28 }
 0x2d1   : > { %3056 = vmatprep.mubr.msk.bf16.mxu1 %vm620_vm3, %v1707_v7 }
 0x2d3   : > { %v1629_v54 = vpop.permute.xlu1 %1628  ;;  %v1598_v18 = vpop.permute.xlu0 %1597 }
 0x2d4   : > { %v1709_v45 = vsel %vm576_vm2, %v1675_v16, %v1629_v54  ;;  %v1678_v8 = vsel %vm521_vm1, %v4072_v53, %v1598_v18 }
 0x2d5   : > { %3057 = vmatmul.mubr.msk.bf16.gmra.mrb[24].mxu1 %vm620_vm3, %v1709_v45 }
 0x2dd   : > { %v1631_v39 = vpop.permute.xlu0 %1630  ;;  %v1600_v63 = vpop.permute.xlu1 %1599 }
 0x2de   : > { %v1711_v11 = vsel %vm576_vm2, %v1678_v8, %v1631_v39  ;;  %v1681_v41 = vsel %vm521_vm1, %v4090_v38, %v1600_v63 }
 0x2df   : > { %3060 = vmatprep.mubr.msk.bf16.mxu1 %vm620_vm3, %v1711_v11 }
 0x2e1   : > { %v1633_v17 = vpop.permute.xlu1 %1632 }
 0x2e2   : > { %v1713_v43 = vsel %vm576_vm2, %v1681_v41, %v1633_v17 }
 0x2e3   : > { %3061 = vmatmul.mubr.msk.bf16.gmra.mrb[28].mxu1 %vm620_vm3, %v1713_v43 }
 0x34c   : > { %v3034_v34 = vpop.f32.mrb[0].mxu1 }
 0x34d   : > { %v4172_v42 = vpop.f32.mrb[1].mxu1  ;;  %2017 = vrot.lane.b32.xlu0 %v3034_v34, %s3176_s14  ;;  %v1919_v1 = vrot.slane %v3034_v34, 7 }
 0x34e   : > { %v3035_v53 = vpop.f32.mrb[2].mxu1  ;;  %v1917_v62 = vrot.slane %v4172_v42, 7 }
 0x34f   : > { %v1920_v58 = vrot.slane %v3035_v53, 7  ;;  %v1793_v61 = vpop.f32.mrb[3].mxu1  ;;  %2019 = vrot.lane.b32.xlu1 %v3035_v53, %s3176_s14 }
 0x350   : > { %v1918_v9 = vrot.slane %v1793_v61, 7 }
 0x351   : > { %2241 = vrot.lane.b32.xlu0 %v3034_v34, %s3175_s13  ;;  %v4180_v38 = vsel %vm876_vm4, %v1919_v1, %v1920_v58 }
 0x352   : > { %v4184_v27 = vsel %vm876_vm4, %v1918_v9, %v1919_v1  ;;  %v4190_v26 = vsel %vm876_vm4, %v1917_v62, %v1918_v9 }
 0x353   : > { %2243 = vrot.lane.b32.xlu1 %v3035_v53, %s3175_s13 }
 0x355   : > { %2013 = vrot.lane.b32.xlu0 %v4172_v42, %s3176_s14 }
 0x357   : > { %2015 = vrot.lane.b32.xlu1 %v1793_v61, %s3176_s14 }
 0x359   : > { %2237 = vrot.lane.b32.xlu0 %v4172_v42, %s3175_s13 }
 0x35b   : > { %2239 = vrot.lane.b32.xlu1 %v1793_v61, %s3175_s13 }
 0x35c   : > { %v3038_v37 = vpop.f32.mrb[4].mxu1 }
 0x35d   : > { %v1806_v3 = vpop.f32.mrb[5].mxu1  ;;  %2025 = vrot.lane.b32.xlu0 %v3038_v37, %s3176_s14  ;;  %v1923_v23 = vrot.slane %v3038_v37, 7 }
 0x35e   : > { %v1921_v47 = vrot.slane %v1806_v3, 7  ;;  %v3039_v29 = vpop.f32.mrb[6].mxu1 }
 0x35f   : > { %v1924_v49 = vrot.slane %v3039_v29, 7  ;;  %v1809_v5 = vpop.f32.mrb[7].mxu1  ;;  %2027 = vrot.lane.b32.xlu1 %v3039_v29, %s3176_s14 }
 0x360   : > { %v1922_v57 = vrot.slane %v1809_v5, 7  ;;  %v4203_v14 = vsel %vm876_vm4, %v1920_v58, %v1921_v47 }
 0x361   : > { %2249 = vrot.lane.b32.xlu0 %v3038_v37, %s3175_s13  ;;  %v4208_v56 = vsel %vm876_vm4, %v1923_v23, %v1924_v49 }
 0x362   : > { %v4212_v31 = vsel %vm876_vm4, %v1922_v57, %v1923_v23  ;;  %v4216_v10 = vsel %vm876_vm4, %v1921_v47, %v1922_v57 }
 0x363   : > { %2251 = vrot.lane.b32.xlu1 %v3039_v29, %s3175_s13 }
 0x365   : > { %2021 = vrot.lane.b32.xlu0 %v1806_v3, %s3176_s14 }
 0x367   : > { %2023 = vrot.lane.b32.xlu1 %v1809_v5, %s3176_s14 }
 0x369   : > { %2245 = vrot.lane.b32.xlu0 %v1806_v3, %s3175_s13 }
 0x36b   : > { %2247 = vrot.lane.b32.xlu1 %v1809_v5, %s3175_s13 }
 0x36c   : > { %v3042_v19 = vpop.f32.mrb[8].mxu1 }
 0x36d   : > { %v1822_v25 = vpop.f32.mrb[9].mxu1  ;;  %2033 = vrot.lane.b32.xlu0 %v3042_v19, %s3176_s14  ;;  %v1927_v44 = vrot.slane %v3042_v19, 7 }
 0x36e   : > { %v1925_v30 = vrot.slane %v1822_v25, 7  ;;  %v3043_v51 = vpop.f32.mrb[10].mxu1 }
 0x36f   : > { %v1928_v59 = vrot.slane %v3043_v51, 7  ;;  %v1825_v32 = vpop.f32.mrb[11].mxu1  ;;  %2035 = vrot.lane.b32.xlu1 %v3043_v51, %s3176_s14 }
 0x370   : > { %v1926_v13 = vrot.slane %v1825_v32, 7  ;;  %v4227_v15 = vsel %vm876_vm4, %v1924_v49, %v1925_v30 }
 0x371   : > { %2257 = vrot.lane.b32.xlu0 %v3042_v19, %s3175_s13  ;;  %v4232_v22 = vsel %vm876_vm4, %v1927_v44, %v1928_v59 }
 0x372   : > { %v4236_v2 = vsel %vm876_vm4, %v1926_v13, %v1927_v44  ;;  %v4240_v60 = vsel %vm876_vm4, %v1925_v30, %v1926_v13 }
 0x373   : > { %2259 = vrot.lane.b32.xlu1 %v3043_v51, %s3175_s13 }
 0x375   : > { %2029 = vrot.lane.b32.xlu0 %v1822_v25, %s3176_s14 }
 0x377   : > { %2031 = vrot.lane.b32.xlu1 %v1825_v32, %s3176_s14 }
 0x379   : > { %2253 = vrot.lane.b32.xlu0 %v1822_v25, %s3175_s13 }
 0x37b   : > { %2255 = vrot.lane.b32.xlu1 %v1825_v32, %s3175_s13 }
 0x37c   : > { %v3046_v12 = vpop.f32.mrb[12].mxu1 }
 0x37d   : > { %v1838_v24 = vpop.f32.mrb[13].mxu1  ;;  %2041 = vrot.lane.b32.xlu0 %v3046_v12, %s3176_s14  ;;  %v1931_v50 = vrot.slane %v3046_v12, 7 }
 0x37e   : > { %v1929_v0 = vrot.slane %v1838_v24, 7  ;;  %v3047_v40 = vpop.f32.mrb[14].mxu1 }
 0x37f   : > { %v1932_v4 = vrot.slane %v3047_v40, 7  ;;  %v1841_v6 = vpop.f32.mrb[15].mxu1  ;;  %2043 = vrot.lane.b32.xlu1 %v3047_v40, %s3176_s14 }
 0x380   : > { %v1930_v52 = vrot.slane %v1841_v6, 7  ;;  %v4251_v35 = vsel %vm876_vm4, %v1928_v59, %v1929_v0 }
 0x381   : > { %2265 = vrot.lane.b32.xlu0 %v3046_v12, %s3175_s13  ;;  %v4256_v36 = vsel %vm876_vm4, %v1931_v50, %v1932_v4 }
 0x382   : > { %v4260_v46 = vsel %vm876_vm4, %v1930_v52, %v1931_v50  ;;  %v4264_v48 = vsel %vm876_vm4, %v1929_v0, %v1930_v52 }
 0x383   : > { %2267 = vrot.lane.b32.xlu1 %v3047_v40, %s3175_s13 }
 0x385   : > { %2037 = vrot.lane.b32.xlu0 %v1838_v24, %s3176_s14 }
 0x387   : > { %2039 = vrot.lane.b32.xlu1 %v1841_v6, %s3176_s14 }
 0x389   : > { %2261 = vrot.lane.b32.xlu0 %v1838_v24, %s3175_s13 }
 0x38b   : > { %2263 = vrot.lane.b32.xlu1 %v1841_v6, %s3175_s13 }
 0x38c   : > { %v3050_v21 = vpop.f32.mrb[16].mxu1 }
 0x38d   : > { %v1854_v28 = vpop.f32.mrb[17].mxu1  ;;  %2049 = vrot.lane.b32.xlu0 %v3050_v21, %s3176_s14  ;;  %v1935_v16 = vrot.slane %v3050_v21, 7 }
 0x38e   : > { %v1933_v20 = vrot.slane %v1854_v28, 7  ;;  %v3051_v7 = vpop.f32.mrb[18].mxu1 }
 0x38f   : > { %v1936_v54 = vrot.slane %v3051_v7, 7  ;;  %v1857_v45 = vpop.f32.mrb[19].mxu1  ;;  %2051 = vrot.lane.b32.xlu1 %v3051_v7, %s3176_s14 }
 0x390   : > { %v1934_v18 = vrot.slane %v1857_v45, 7  ;;  %v4275_v8 = vsel %vm876_vm4, %v1932_v4, %v1933_v20 }
 0x391   : > { %2273 = vrot.lane.b32.xlu0 %v3050_v21, %s3175_s13  ;;  %v4280_v39 = vsel %vm876_vm4, %v1935_v16, %v1936_v54 }
 0x392   : > { %v4284_v63 = vsel %vm876_vm4, %v1934_v18, %v1935_v16  ;;  %v4288_v11 = vsel %vm876_vm4, %v1933_v20, %v1934_v18 }
 0x393   : > { %2275 = vrot.lane.b32.xlu1 %v3051_v7, %s3175_s13 }
 0x395   : > { %2045 = vrot.lane.b32.xlu0 %v1854_v28, %s3176_s14 }
 0x397   : > { %2047 = vrot.lane.b32.xlu1 %v1857_v45, %s3176_s14 }
 0x399   : > { %2269 = vrot.lane.b32.xlu0 %v1854_v28, %s3175_s13 }
 0x39b   : > { %2271 = vrot.lane.b32.xlu1 %v1857_v45, %s3175_s13  ;;  %v2175_v45 = vsel %vm1131_vm5, %v4184_v27, 0.0  ;;  %v4386_v27 = vld [vmem:[%s4804_s6] ss:$0 sm:$0xff] }
 0x39c   : > { %v3054_v41 = vpop.f32.mrb[20].mxu1 }
 0x39d   : > { %v1870_v17 = vpop.f32.mrb[21].mxu1  ;;  %2057 = vrot.lane.b32.xlu0 %v3054_v41, %s3176_s14  ;;  %v1939_v53 = vrot.slane %v3054_v41, 7 }
 0x39e   : > { %v1937_v43 = vrot.slane %v1870_v17, 7  ;;  %v3055_v34 = vpop.f32.mrb[22].mxu1 }
 0x39f   : > { %v1940_v1 = vrot.slane %v3055_v34, 7  ;;  %v1873_v58 = vpop.f32.mrb[23].mxu1  ;;  %2059 = vrot.lane.b32.xlu1 %v3055_v34, %s3176_s14 }
 0x3a0   : > { %v1938_v61 = vrot.slane %v1873_v58, 7  ;;  %v4299_v9 = vsel %vm876_vm4, %v1936_v54, %v1937_v43 }
 0x3a1   : > { %2281 = vrot.lane.b32.xlu0 %v3054_v41, %s3175_s13  ;;  %v4304_v37 = vsel %vm876_vm4, %v1939_v53, %v1940_v1 }
 0x3a2   : > { %v4308_v3 = vsel %vm876_vm4, %v1938_v61, %v1939_v53  ;;  %v4312_v47 = vsel %vm876_vm4, %v1937_v43, %v1938_v61  ;;  %v4380_v43 = vld [vmem:[%s4803_s5] ss:$0 sm:$0xff] }
 0x3a3   : > { %2283 = vrot.lane.b32.xlu1 %v3055_v34, %s3175_s13 }
 0x3a5   : > { %2053 = vrot.lane.b32.xlu0 %v1870_v17, %s3176_s14 }
 0x3a7   : > { %2055 = vrot.lane.b32.xlu1 %v1873_v58, %s3176_s14 }
 0x3a8   : > { %v3058_v29 = vpop.f32.mrb[24].mxu1 }
 0x3a9   : > { %v1886_v23 = vpop.f32.mrb[25].mxu1  ;;  %2277 = vrot.lane.b32.xlu0 %v1870_v17, %s3175_s13  ;;  %v1943_v57 = vrot.slane %v3058_v29, 7 }
 0x3aa   : > { %v1941_v49 = vrot.slane %v1886_v23, 7  ;;  %v3059_v5 = vpop.f32.mrb[26].mxu1 }
 0x3ab   : > { %v1944_v19 = vrot.slane %v3059_v5, 7  ;;  %v1889_v25 = vpop.f32.mrb[27].mxu1  ;;  %2279 = vrot.lane.b32.xlu1 %v1873_v58, %s3175_s13  ;;  %v4392_v58 = vld [vmem:[%s3246_s10 + $0x18] sm:$0xff]  }
 0x3ac   : > { %v1942_v30 = vrot.slane %v1889_v25, 7  ;;  %v4321_v51 = vsel %vm876_vm4, %v1940_v1, %v1941_v49  ;;  %v2399_v61 = vunpack.c.l.bf16 %v4392_v58 }
 0x3ad   : > { %2065 = vrot.lane.b32.xlu0 %v3058_v29, %s3176_s14  ;;  %v4326_v44 = vsel %vm876_vm4, %v1943_v57, %v1944_v19 }
 0x3ae   : > { %v4330_v59 = vsel %vm876_vm4, %v1942_v30, %v1943_v57  ;;  %v4334_v32 = vsel %vm876_vm4, %v1941_v49, %v1942_v30 }
 0x3af   : > { %2067 = vrot.lane.b32.xlu1 %v3059_v5, %s3176_s14 }
 0x3b1   : > { %2289 = vrot.lane.b32.xlu0 %v3058_v29, %s3175_s13 }
 0x3b3   : > { %2291 = vrot.lane.b32.xlu1 %v3059_v5, %s3175_s13 }
 0x3b5   : > { %2061 = vrot.lane.b32.xlu0 %v1886_v23, %s3176_s14 }
 0x3b6   : > { %v3062_v13 = vpop.f32.mrb[28].mxu1 }
 0x3b7   : > { %2063 = vrot.lane.b32.xlu1 %v1889_v25, %s3176_s14  ;;  %v1902_v12 = vpop.f32.mrb[29].mxu1  ;;  %v1947_v40 = vrot.slane %v3062_v13, 7 }
 0x3b8   : > { %v1945_v24 = vrot.slane %v1902_v12, 7  ;;  %v3063_v0 = vpop.f32.mrb[30].mxu1 }
 0x3b9   : > { %v1948_v50 = vrot.slane %v3063_v0, 7  ;;  %2285 = vrot.lane.b32.xlu0 %v1886_v23, %s3175_s13  ;;  %v1905_v4 = vpop.f32.mrb[31].mxu1 }
 0x3ba   : > { %v1946_v6 = vrot.slane %v1905_v4, 7  ;;  %v4344_v52 = vsel %vm876_vm4, %v1944_v19, %v1945_v24 }
 0x3bb   : > { %2287 = vrot.lane.b32.xlu1 %v1889_v25, %s3175_s13  ;;  %v1980_v21 = vsel %vm876_vm4, %v1948_v50, %v1917_v62  ;;  %v4353_v28 = vsel %vm876_vm4, %v1947_v40, %v1948_v50 }
 0x3bc   : > { %v4357_v20 = vsel %vm876_vm4, %v1945_v24, %v1946_v6  ;;  %v4361_v7 = vsel %vm876_vm4, %v1946_v6, %v1947_v40  ;;  %v2173_v25 = vsel %vm1131_vm5, %v1980_v21, 0.0 }
 0x3bd   : > { %2073 = vrot.lane.b32.xlu0 %v3062_v13, %s3176_s14 }
 0x3bf   : > { %v2018_v16 = vpop.permute.xlu0 %2017  ;;  %2075 = vrot.lane.b32.xlu1 %v3063_v0, %s3176_s14 }
 0x3c0   : > { %v2111_v62 = vrot.slane %v2018_v16, 1  ;;  %v3134_v16 = vld [vmem:[%s3246_s10 + $0x10] sm:$0xff]  }
 0x3c1   : > { %2069 = vrot.lane.b32.xlu0 %v1902_v12, %s3176_s14  ;;  %v4366_v42 = vpop.permute.xlu1 %2019 }
 0x3c2   : > { %v2112_v54 = vrot.slane %v4366_v42, 1 }
 0x3c3   : > { %v2242_v18 = vpop.permute.xlu0 %2241  ;;  %2071 = vrot.lane.b32.xlu1 %v1905_v4, %s3176_s14 }
 0x3c4   : > { %v2169_v41 = vsel %vm1093_vm6, %v2111_v62, %v2112_v54  ;;  %v2335_v17 = vadd.f32 %v2242_v18, %v2175_v45  ;;  %v2397_v45 = vunpack.c.l.bf16 %v3134_v16 }
 0x3c5   : > { %2293 = vrot.lane.b32.xlu0 %v1902_v12, %s3175_s13  ;;  %v2244_v34 = vpop.permute.xlu1 %2243 }
 0x3c6   : > { %v2367_v53 = vadd.f32 %v2335_v17, %v2169_v41  ;;  %v2398_v17 = vunpack.c.h.bf16 %v3134_v16 }
 0x3c7   : > { %v4388_v1 = vpop.permute.xlu0 %2013  ;;  %2295 = vrot.lane.b32.xlu1 %v1905_v4, %s3175_s13 }
 0x3c8   : > { %v2438_v29 = vmul.f32 %v4380_v43, %v2367_v53  ;;  %v2109_v5 = vrot.slane %v4388_v1, 1 }
 0x3c9   : > { %2297 = vrot.lane.b32.xlu0 %v3062_v13, %s3175_s13  ;;  %v2016_v23 = vpop.permute.xlu1 %2015 }
 0x3ca   : > { %v2477_v49 = vadd.f32 %v4386_v27, %v2438_v29  ;;  %v2110_v57 = vrot.slane %v2016_v23, 1 }
 0x3cb   : > { %v2238_v19 = vpop.permute.xlu0 %2237  ;;  %2299 = vrot.lane.b32.xlu1 %v3063_v0, %s3175_s13 }
 0x3cc   : > { %v2509_v30 = vadd.f32 %v2477_v49, %v2399_v61  ;;  %v2171_v13 = vsel %vm1093_vm6, %v2109_v5, %v2110_v57  ;;  %v2333_v12 = vadd.f32 %v2238_v19, %v2173_v25  ;;  %v2170_v24 = vsel %vm1093_vm6, %v2110_v57, %v2111_v62 }
 0x3cd   : > { %v2240_v40 = vpop.permute.xlu1 %2239  ;;  %v2206_v0 = vsel %vm1174_vm7, %v2170_v24, 0.0  ;;  %v2179_v49 = vsel %vm1131_vm5, %v4212_v31, 0.0 }
 0x3ce   : > { %v2541_v50 = vmax.f32 %v2509_v30, 0.0  ;;  %v2365_v4 = vadd.f32 %v2333_v12, %v2171_v13  ;;  %v2334_v6 = vadd.f32 %v2240_v40, %v4190_v26 }
 0x3cf   : > { %v2026_v21 = vpop.permute.xlu0 %2025 }
 0x3d0   : > { %v2926_v18 = vpack.c.bf16 %v2541_v50, %v2541_v50  ;;  %v2436_v62 = vmul.f32 %v4380_v43, %v2365_v4  ;;  %v2366_v41 = vadd.f32 %v2334_v6, %v2206_v0  ;;  %v2115_v29 = vrot.slane %v2026_v21, 1  ;;  %v4437_v4 = vld [vmem:[%s3246_s10 + $0x28] sm:$0xff]  }
 0x3d1   : > { %v4419_v53 = vpop.permute.xlu1 %2027  ;;  %v2403_v31 = vunpack.c.l.bf16 %v4437_v4 }
 0x3d2   : > { %2702 = vst.msk [vmem:[%s4413_s9 + $0x8] sm:$0xf] %vm2699_vm8, %v2926_v18  ;;  %v2475_v26 = vadd.f32 %v4386_v27, %v2436_v62  ;;  %v2437_v61 = vmul.f32 %v4380_v43, %v2366_v41  ;;  %v2116_v23 = vrot.slane %v4419_v53, 1  ;;  %v2336_v18 = vadd.f32 %v2244_v34, %v4180_v38 }
 0x3d3   : > { %v2250_v57 = vpop.permute.xlu0 %2249  ;;  %v2177_v38 = vsel %vm1131_vm5, %v4203_v14, 0.0 }
 0x3d4   : > { %v2507_v19 = vadd.f32 %v2475_v26, %v2397_v45  ;;  %v2476_v25 = vadd.f32 %v4386_v27, %v2437_v61  ;;  %v2165_v30 = vsel %vm1093_vm6, %v2115_v29, %v2116_v23  ;;  %v2339_v13 = vadd.f32 %v2250_v57, %v2179_v49 }
 0x3d5   : > { %v4434_v12 = vpop.permute.xlu1 %2251 }
 0x3d6   : > { %v2539_v24 = vmax.f32 %v2507_v19, 0.0  ;;  %v2508_v40 = vadd.f32 %v2476_v25, %v2398_v17  ;;  %v2371_v50 = vadd.f32 %v2339_v13, %v2165_v30  ;;  %v2400_v13 = vunpack.c.h.bf16 %v4392_v58 }
 0x3d7   : > { %v2022_v6 = vpop.permute.xlu0 %2021 }
 0x3d8   : > { %v2924_v0 = vpack.c.bf16 %v2539_v24, %v2539_v24  ;;  %v2540_v21 = vmax.f32 %v2508_v40, 0.0  ;;  %v2442_v16 = vmul.f32 %v4380_v43, %v2371_v50  ;;  %v2113_v45 = vrot.slane %v2022_v6, 1  ;;  %v3136_v50 = vld [vmem:[%s3246_s10 + $0x20] sm:$0xff]  }
 0x3d9   : > { %v2024_v62 = vpop.permute.xlu1 %2023  ;;  %v2401_v6 = vunpack.c.l.bf16 %v3136_v50 }
 0x3da   : > { %2700 = vst.msk [vmem:[%s4413_s9] sm:$0xf] %vm2699_vm8, %v2924_v0  ;;  %v2925_v41 = vpack.c.bf16 %v2540_v21, %v2540_v21  ;;  %v2481_v17 = vadd.f32 %v4386_v27, %v2442_v16  ;;  %v2168_v26 = vsel %vm1093_vm6, %v2112_v54, %v2113_v45  ;;  %v2114_v61 = vrot.slane %v2024_v62, 1 }
 0x3db   : > { %v2208_v49 = vsel %vm1174_vm7, %v2168_v26, 0.0  ;;  %v2246_v34 = vpop.permute.xlu0 %2245  ;;  %v2402_v26 = vunpack.c.h.bf16 %v3136_v50 }
 0x3dc   : > { %2701 = vst.msk [vmem:[%s4413_s9 + $0x4] sm:$0xf] %vm2699_vm8, %v2925_v41  ;;  %v2513_v57 = vadd.f32 %v2481_v17, %v2403_v31  ;;  %v2368_v19 = vadd.f32 %v2336_v18, %v2208_v49  ;;  %v2167_v42 = vsel %vm1093_vm6, %v2113_v45, %v2114_v61  ;;  %v2337_v25 = vadd.f32 %v2246_v34, %v2177_v38 }
 0x3dd   : > { %v2166_v54 = vsel %vm1093_vm6, %v2114_v61, %v2115_v29  ;;  %v2248_v30 = vpop.permute.xlu1 %2247  ;;  %v2183_v49 = vsel %vm1131_vm5, %v4236_v2, 0.0  ;;  %v4486_v2 = vld [vmem:[%s3246_s10 + $0x38] sm:$0xff]  }
 0x3de   : > { %v2545_v24 = vmax.f32 %v2513_v57, 0.0  ;;  %v2439_v40 = vmul.f32 %v4380_v43, %v2368_v19  ;;  %v2369_v14 = vadd.f32 %v2337_v25, %v2167_v42  ;;  %v2338_v31 = vadd.f32 %v2248_v30, %v4216_v10 }
 0x3df   : > { %v2034_v0 = vpop.permute.xlu0 %2033  ;;  %v2210_v29 = vsel %vm1174_vm7, %v2166_v54, 0.0  ;;  %v2407_v50 = vunpack.c.l.bf16 %v4486_v2 }
 0x3e0   : > { %v2930_v21 = vpack.c.bf16 %v2545_v24, %v2545_v24  ;;  %v2478_v16 = vadd.f32 %v4386_v27, %v2439_v40  ;;  %v2440_v45 = vmul.f32 %v4380_v43, %v2369_v14  ;;  %v2370_v18 = vadd.f32 %v2338_v31, %v2210_v29 }
 0x3e1   : > { %v4468_v62 = vpop.permute.xlu1 %2035  ;;  %v2119_v17 = vrot.slane %v2034_v0, 1 }
 0x3e2   : > { %2706 = vst.msk [vmem:[%s4413_s9 + $0x18] sm:$0xf] %vm2699_vm8, %v2930_v21  ;;  %v2510_v58 = vadd.f32 %v2478_v16, %v2400_v13  ;;  %v2479_v41 = vadd.f32 %v4386_v27, %v2440_v45  ;;  %v2120_v10 = vrot.slane %v4468_v62, 1  ;;  %v2441_v61 = vmul.f32 %v4380_v43, %v2370_v18 }
 0x3e3   : > { %v2258_v38 = vpop.permute.xlu0 %2257  ;;  %v2340_v45 = vadd.f32 %v4434_v12, %v4208_v56 }
 0x3e4   : > { %v2542_v34 = vmax.f32 %v2510_v58, 0.0  ;;  %v2511_v57 = vadd.f32 %v2479_v41, %v2401_v6  ;;  %v2161_v19 = vsel %vm1093_vm6, %v2119_v17, %v2120_v10  ;;  %v2343_v42 = vadd.f32 %v2258_v38, %v2183_v49 }
 0x3e5   : > { %v2480_v25 = vadd.f32 %v4386_v27, %v2441_v61  ;;  %v4483_v54 = vpop.permute.xlu1 %2259  ;;  %v2181_v61 = vsel %vm1131_vm5, %v4227_v15, 0.0 }
 0x3e6   : > { %v2927_v30 = vpack.c.bf16 %v2542_v34, %v2542_v34  ;;  %v2543_v13 = vmax.f32 %v2511_v57, 0.0  ;;  %v2375_v24 = vadd.f32 %v2343_v42, %v2161_v19  ;;  %v2404_v57 = vunpack.c.h.bf16 %v4437_v4 }
 0x3e7   : > { %v2512_v40 = vadd.f32 %v2480_v25, %v2402_v26  ;;  %v2030_v14 = vpop.permute.xlu0 %2029  ;;  %v3138_v25 = vld [vmem:[%s3246_s10 + $0x30] sm:$0xff]  }
 0x3e8   : > { %2703 = vst.msk [vmem:[%s4413_s9 + $0xc] sm:$0xf] %vm2699_vm8, %v2927_v30  ;;  %v2928_v6 = vpack.c.bf16 %v2543_v13, %v2543_v13  ;;  %v2446_v31 = vmul.f32 %v4380_v43, %v2375_v24  ;;  %v2117_v0 = vrot.slane %v2030_v14, 1  ;;  %v2405_v30 = vunpack.c.l.bf16 %v3138_v25 }
 0x3e9   : > { %v2544_v21 = vmax.f32 %v2512_v40, 0.0  ;;  %v2032_v16 = vpop.permute.xlu1 %2031 }
 0x3ea   : > { %2704 = vst.msk [vmem:[%s4413_s9 + $0x10] sm:$0xf] %vm2699_vm8, %v2928_v6  ;;  %v2485_v29 = vadd.f32 %v4386_v27, %v2446_v31  ;;  %v2164_v18 = vsel %vm1093_vm6, %v2116_v23, %v2117_v0  ;;  %v2118_v58 = vrot.slane %v2032_v16, 1  ;;  %v2406_v16 = vunpack.c.h.bf16 %v3138_v25 }
 0x3eb   : > { %v2929_v41 = vpack.c.bf16 %v2544_v21, %v2544_v21  ;;  %v2212_v26 = vsel %vm1174_vm7, %v2164_v18, 0.0  ;;  %v2254_v56 = vpop.permute.xlu0 %2253 }
 0x3ec   : > { %v2517_v12 = vadd.f32 %v2485_v29, %v2407_v50  ;;  %v2372_v49 = vadd.f32 %v2340_v45, %v2212_v26  ;;  %v2163_v38 = vsel %vm1093_vm6, %v2117_v0, %v2118_v58  ;;  %v2341_v53 = vadd.f32 %v2254_v56, %v2181_v61 }
 0x3ed   : > { %2705 = vst.msk [vmem:[%s4413_s9 + $0x14] sm:$0xf] %vm2699_vm8, %v2929_v41  ;;  %v2162_v23 = vsel %vm1093_vm6, %v2118_v58, %v2119_v17  ;;  %v2256_v34 = vpop.permute.xlu1 %2255  ;;  %v2187_v29 = vsel %vm1131_vm5, %v4260_v46, 0.0  ;;  %v4538_v46 = vld [vmem:[%s3246_s10 + $0x48] sm:$0xff]  }
 0x3ee   : > { %v2549_v19 = vmax.f32 %v2517_v12, 0.0  ;;  %v2443_v42 = vmul.f32 %v4380_v43, %v2372_v49  ;;  %v2373_v15 = vadd.f32 %v2341_v53, %v2163_v38  ;;  %v2342_v13 = vadd.f32 %v2256_v34, %v4240_v60 }
 0x3ef   : > { %v2042_v24 = vpop.permute.xlu0 %2041  ;;  %v2214_v17 = vsel %vm1174_vm7, %v2162_v23, 0.0 }
 0x3f0   : > { %v2934_v40 = vpack.c.bf16 %v2549_v19, %v2549_v19  ;;  %v2482_v14 = vadd.f32 %v4386_v27, %v2443_v42  ;;  %v2444_v50 = vmul.f32 %v4380_v43, %v2373_v15  ;;  %v2374_v6 = vadd.f32 %v2342_v13, %v2214_v17 }
 0x3f1   : > { %v4520_v31 = vpop.permute.xlu1 %2043  ;;  %v2123_v21 = vrot.slane %v2042_v24, 1  ;;  %v2344_v13 = vadd.f32 %v4483_v54, %v4232_v22 }
 0x3f2   : > { %2710 = vst.msk [vmem:[%s4413_s9 + $0x28] sm:$0xf] %vm2699_vm8, %v2934_v40  ;;  %v2514_v4 = vadd.f32 %v2482_v14, %v2404_v57  ;;  %v2483_v0 = vadd.f32 %v4386_v27, %v2444_v50  ;;  %v2124_v60 = vrot.slane %v4520_v31, 1  ;;  %v2445_v45 = vmul.f32 %v4380_v43, %v2374_v6 }
 0x3f3   : > { %v2266_v18 = vpop.permute.xlu0 %2265  ;;  %v2411_v57 = vunpack.c.l.bf16 %v4538_v46  ;;  %v2185_v6 = vsel %vm1131_vm5, %v4251_v35, 0.0 }
 0x3f4   : > { %v2546_v58 = vmax.f32 %v2514_v4, 0.0  ;;  %v2515_v41 = vadd.f32 %v2483_v0, %v2405_v30  ;;  %v2157_v26 = vsel %vm1093_vm6, %v2123_v21, %v2124_v60  ;;  %v2347_v61 = vadd.f32 %v2266_v18, %v2187_v29 }
 0x3f5   : > { %v2484_v56 = vadd.f32 %v4386_v27, %v2445_v45  ;;  %v4535_v12 = vpop.permute.xlu1 %2267  ;;  %v2408_v45 = vunpack.c.h.bf16 %v4486_v2 }
 0x3f6   : > { %v2931_v49 = vpack.c.bf16 %v2546_v58, %v2546_v58  ;;  %v2547_v38 = vmax.f32 %v2515_v41, 0.0  ;;  %v2379_v53 = vadd.f32 %v2347_v61, %v2157_v26  ;;  %v3140_v58 = vld [vmem:[%s3246_s10 + $0x40] sm:$0xff]  }
 0x3f7   : > { %v2516_v23 = vadd.f32 %v2484_v56, %v2406_v16  ;;  %v2038_v34 = vpop.permute.xlu0 %2037  ;;  %v2409_v41 = vunpack.c.l.bf16 %v3140_v58 }
 0x3f8   : > { %2707 = vst.msk [vmem:[%s4413_s9 + $0x1c] sm:$0xf] %vm2699_vm8, %v2931_v49  ;;  %v2932_v19 = vpack.c.bf16 %v2547_v38, %v2547_v38  ;;  %v2450_v42 = vmul.f32 %v4380_v43, %v2379_v53  ;;  %v2121_v15 = vrot.slane %v2038_v34, 1 }
 0x3f9   : > { %v2548_v25 = vmax.f32 %v2516_v23, 0.0  ;;  %v2040_v30 = vpop.permute.xlu1 %2039 }
 0x3fa   : > { %2708 = vst.msk [vmem:[%s4413_s9 + $0x20] sm:$0xf] %vm2699_vm8, %v2932_v19  ;;  %v2489_v24 = vadd.f32 %v4386_v27, %v2450_v42  ;;  %v2160_v40 = vsel %vm1093_vm6, %v2120_v10, %v2121_v15  ;;  %v2122_v14 = vrot.slane %v2040_v30, 1  ;;  %v2410_v19 = vunpack.c.h.bf16 %v3140_v58 }
 0x3fb   : > { %v2933_v50 = vpack.c.bf16 %v2548_v25, %v2548_v25  ;;  %v2216_v17 = vsel %vm1174_vm7, %v2160_v40, 0.0  ;;  %v2262_v22 = vpop.permute.xlu0 %2261 }
 0x3fc   : > { %v2521_v54 = vadd.f32 %v2489_v24, %v2411_v57  ;;  %v2376_v4 = vadd.f32 %v2344_v13, %v2216_v17  ;;  %v2159_v0 = vsel %vm1093_vm6, %v2121_v15, %v2122_v14  ;;  %v2345_v62 = vadd.f32 %v2262_v22, %v2185_v6 }
 0x3fd   : > { %2709 = vst.msk [vmem:[%s4413_s9 + $0x24] sm:$0xf] %vm2699_vm8, %v2933_v50  ;;  %v2158_v10 = vsel %vm1093_vm6, %v2122_v14, %v2123_v21  ;;  %v2264_v16 = vpop.permute.xlu1 %2263  ;;  %v2191_v15 = vsel %vm1131_vm5, %v4284_v63, 0.0  ;;  %v4590_v63 = vld [vmem:[%s3246_s10 + $0x58] sm:$0xff]  }
 0x3fe   : > { %v2553_v29 = vmax.f32 %v2521_v54, 0.0  ;;  %v2447_v18 = vmul.f32 %v4380_v43, %v2376_v4  ;;  %v2377_v35 = vadd.f32 %v2345_v62, %v2159_v0  ;;  %v2346_v26 = vadd.f32 %v2264_v16, %v4264_v48 }
 0x3ff   : > { %v2050_v61 = vpop.permute.xlu0 %2049  ;;  %v2218_v21 = vsel %vm1174_vm7, %v2158_v10, 0.0  ;;  %v2415_v0 = vunpack.c.l.bf16 %v4590_v63 }
 0x400   : > { %v2938_v56 = vpack.c.bf16 %v2553_v29, %v2553_v29  ;;  %v2486_v49 = vadd.f32 %v4386_v27, %v2447_v18  ;;  %v2448_v38 = vmul.f32 %v4380_v43, %v2377_v35  ;;  %v2378_v53 = vadd.f32 %v2346_v26, %v2218_v21 }
 0x401   : > { %v4572_v23 = vpop.permute.xlu1 %2051  ;;  %v2127_v57 = vrot.slane %v2050_v61, 1  ;;  %v2348_v18 = vadd.f32 %v4535_v12, %v4256_v36 }
 0x402   : > { %2714 = vst.msk [vmem:[%s4413_s9 + $0x38] sm:$0xf] %vm2699_vm8, %v2938_v56  ;;  %v2518_v2 = vadd.f32 %v2486_v49, %v2408_v45  ;;  %v2487_v34 = vadd.f32 %v4386_v27, %v2448_v38  ;;  %v2128_v48 = vrot.slane %v4572_v23, 1  ;;  %v2449_v42 = vmul.f32 %v4380_v43, %v2378_v53 }
 0x403   : > { %v2274_v25 = vpop.permute.xlu0 %2273  ;;  %v2189_v56 = vsel %vm1131_vm5, %v4275_v8, 0.0  ;;  %v2412_v53 = vunpack.c.h.bf16 %v4538_v46 }
 0x404   : > { %v2550_v30 = vmax.f32 %v2518_v2, 0.0  ;;  %v2519_v13 = vadd.f32 %v2487_v34, %v2409_v41  ;;  %v2153_v24 = vsel %vm1093_vm6, %v2127_v57, %v2128_v48  ;;  %v2351_v40 = vadd.f32 %v2274_v25, %v2191_v15 }
 0x405   : > { %v2488_v14 = vadd.f32 %v4386_v27, %v2449_v42  ;;  %v4587_v50 = vpop.permute.xlu1 %2275 }
 0x406   : > { %v2935_v17 = vpack.c.bf16 %v2550_v30, %v2550_v30  ;;  %v2551_v6 = vmax.f32 %v2519_v13, 0.0  ;;  %v2383_v22 = vadd.f32 %v2351_v40, %v2153_v24 }
 0x407   : > { %v2520_v54 = vadd.f32 %v2488_v14, %v2410_v19  ;;  %v2046_v4 = vpop.permute.xlu0 %2045  ;;  %v3142_v19 = vld [vmem:[%s3246_s10 + $0x50] sm:$0xff]  }
 0x408   : > { %2711 = vst.msk [vmem:[%s4413_s9 + $0x2c] sm:$0xf] %vm2699_vm8, %v2935_v17  ;;  %v2936_v62 = vpack.c.bf16 %v2551_v6, %v2551_v6  ;;  %v2454_v10 = vmul.f32 %v4380_v43, %v2383_v22  ;;  %v2125_v16 = vrot.slane %v2046_v4, 1  ;;  %v2413_v42 = vunpack.c.l.bf16 %v3142_v19 }
 0x409   : > { %v2552_v45 = vmax.f32 %v2520_v54, 0.0  ;;  %v2048_v29 = vpop.permute.xlu1 %2047  ;;  %v2414_v22 = vunpack.c.h.bf16 %v3142_v19  ;;  %v2195_v4 = vsel %vm1131_vm5, %v4308_v3, 0.0  ;;  %v4642_v3 = vld [vmem:[%s3246_s10 + $0x68] sm:$0xff]   ;;  %v2193_v19 = vsel %vm1131_vm5, %v4299_v9, 0.0 }
 0x40a   : > { %2712 = vst.msk [vmem:[%s4413_s9 + $0x30] sm:$0xf] %vm2699_vm8, %v2936_v62  ;;  %v2493_v35 = vadd.f32 %v4386_v27, %v2454_v10  ;;  %v2156_v58 = vsel %vm1093_vm6, %v2124_v60, %v2125_v16  ;;  %v2126_v41 = vrot.slane %v2048_v29, 1 }
 0x40b   : > { %v2937_v26 = vpack.c.bf16 %v2552_v45, %v2552_v45  ;;  %v2220_v61 = vsel %vm1174_vm7, %v2156_v58, 0.0  ;;  %v2270_v36 = vpop.permute.xlu0 %2269 }
 0x40c   : > { %v2525_v12 = vadd.f32 %v2493_v35, %v2415_v0  ;;  %v2380_v49 = vadd.f32 %v2348_v18, %v2220_v61  ;;  %v2155_v38 = vsel %vm1093_vm6, %v2125_v16, %v2126_v41  ;;  %v2349_v31 = vadd.f32 %v2270_v36, %v2189_v56 }
 0x40d   : > { %2713 = vst.msk [vmem:[%s4413_s9 + $0x34] sm:$0xf] %vm2699_vm8, %v2937_v26  ;;  %v2154_v60 = vsel %vm1093_vm6, %v2126_v41, %v2127_v57  ;;  %v2272_v21 = vpop.permute.xlu1 %2271  ;;  %v2419_v56 = vunpack.c.l.bf16 %v4642_v3 }
 0x40e   : > { %v2557_v2 = vmax.f32 %v2525_v12, 0.0  ;;  %v2451_v34 = vmul.f32 %v4380_v43, %v2380_v49  ;;  %v2381_v8 = vadd.f32 %v2349_v31, %v2155_v38  ;;  %v2350_v15 = vadd.f32 %v2272_v21, %v4288_v11 }
 0x40f   : > { %v2058_v25 = vpop.permute.xlu0 %2057  ;;  %v2222_v57 = vsel %vm1174_vm7, %v2154_v60, 0.0  ;;  %v2352_v60 = vadd.f32 %v4587_v50, %v4280_v39 }
 0x410   : > { %v2942_v30 = vpack.c.bf16 %v2557_v2, %v2557_v2  ;;  %v2490_v13 = vadd.f32 %v4386_v27, %v2451_v34  ;;  %v2452_v24 = vmul.f32 %v4380_v43, %v2381_v8  ;;  %v2382_v40 = vadd.f32 %v2350_v15, %v2222_v57  ;;  %v3144_v57 = vld [vmem:[%s3246_s10 + $0x60] sm:$0xff]  }
 0x411   : > { %v4624_v14 = vpop.permute.xlu1 %2059  ;;  %v2131_v6 = vrot.slane %v2058_v25, 1 }
 0x412   : > { %2718 = vst.msk [vmem:[%s4413_s9 + $0x48] sm:$0xf] %vm2699_vm8, %v2942_v30  ;;  %v2522_v46 = vadd.f32 %v2490_v13, %v2412_v53  ;;  %v2491_v17 = vadd.f32 %v4386_v27, %v2452_v24  ;;  %v2132_v11 = vrot.slane %v4624_v14, 1  ;;  %v2453_v54 = vmul.f32 %v4380_v43, %v2382_v40 }
 0x413   : > { %v2282_v0 = vpop.permute.xlu0 %2281  ;;  %v2416_v30 = vunpack.c.h.bf16 %v4590_v63  ;;  %v2417_v40 = vunpack.c.l.bf16 %v3144_v57 }
 0x414   : > { %v2554_v62 = vmax.f32 %v2522_v46, 0.0  ;;  %v2523_v10 = vadd.f32 %v2491_v17, %v2413_v42  ;;  %v2149_v16 = vsel %vm1093_vm6, %v2131_v6, %v2132_v11  ;;  %v2355_v45 = vadd.f32 %v2282_v0, %v2195_v4 }
 0x415   : > { %v2492_v29 = vadd.f32 %v4386_v27, %v2453_v54  ;;  %v4639_v18 = vpop.permute.xlu1 %2283 }
 0x416   : > { %v2939_v35 = vpack.c.bf16 %v2554_v62, %v2554_v62  ;;  %v2555_v58 = vmax.f32 %v2523_v10, 0.0  ;;  %v2387_v41 = vadd.f32 %v2355_v45, %v2149_v16  ;;  %v2418_v45 = vunpack.c.h.bf16 %v3144_v57 }
 0x417   : > { %v2524_v26 = vadd.f32 %v2492_v29, %v2414_v22  ;;  %v2054_v61 = vpop.permute.xlu0 %2053  ;;  %v2420_v57 = vunpack.c.h.bf16 %v4642_v3 }
 0x418   : > { %2715 = vst.msk [vmem:[%s4413_s9 + $0x3c] sm:$0xf] %vm2699_vm8, %v2939_v35  ;;  %v2940_v36 = vpack.c.bf16 %v2555_v58, %v2555_v58  ;;  %v2458_v12 = vmul.f32 %v4380_v43, %v2387_v41  ;;  %v2129_v49 = vrot.slane %v2054_v61, 1  ;;  %v2199_v35 = vsel %vm1131_vm5, %v4330_v59, 0.0 }
 0x419   : > { %v2556_v38 = vmax.f32 %v2524_v26, 0.0  ;;  %v2056_v31 = vpop.permute.xlu1 %2055 }
 0x41a   : > { %2716 = vst.msk [vmem:[%s4413_s9 + $0x40] sm:$0xf] %vm2699_vm8, %v2940_v36  ;;  %v2497_v21 = vadd.f32 %v4386_v27, %v2458_v12  ;;  %v2152_v53 = vsel %vm1093_vm6, %v2128_v48, %v2129_v49  ;;  %v2130_v2 = vrot.slane %v2056_v31, 1 }
 0x41b   : > { %v2941_v34 = vpack.c.bf16 %v2556_v38, %v2556_v38  ;;  %v2224_v8 = vsel %vm1174_vm7, %v2152_v53, 0.0  ;;  %v2278_v39 = vpop.permute.xlu0 %2277  ;;  %v4692_v53 = vld [vmem:[%s3246_s10 + $0x78] sm:$0xff]  }
 0x41c   : > { %v2529_v50 = vadd.f32 %v2497_v21, %v2419_v56  ;;  %v2384_v42 = vadd.f32 %v2352_v60, %v2224_v8  ;;  %v2151_v15 = vsel %vm1093_vm6, %v2129_v49, %v2130_v2  ;;  %v2353_v23 = vadd.f32 %v2278_v39, %v2193_v19 }
 0x41d   : > { %2717 = vst.msk [vmem:[%s4413_s9 + $0x44] sm:$0xf] %vm2699_vm8, %v2941_v34  ;;  %v2150_v48 = vsel %vm1093_vm6, %v2130_v2, %v2131_v6  ;;  %v2280_v25 = vpop.permute.xlu1 %2279  ;;  %v2423_v59 = vunpack.c.l.bf16 %v4692_v53 }
 0x41e   : > { %v2561_v13 = vmax.f32 %v2529_v50, 0.0  ;;  %v2455_v24 = vmul.f32 %v4380_v43, %v2384_v42  ;;  %v2385_v9 = vadd.f32 %v2353_v23, %v2151_v15  ;;  %v2354_v46 = vadd.f32 %v2280_v25, %v4312_v47 }
 0x41f   : > { %v2066_v17 = vpop.permute.xlu0 %2065  ;;  %v2226_v6 = vsel %vm1174_vm7, %v2150_v48, 0.0  ;;  %v2356_v50 = vadd.f32 %v4639_v18, %v4304_v37 }
 0x420   : > { %v2946_v22 = vpack.c.bf16 %v2561_v13, %v2561_v13  ;;  %v2494_v54 = vadd.f32 %v4386_v27, %v2455_v24  ;;  %v2456_v4 = vmul.f32 %v4380_v43, %v2385_v9  ;;  %v2386_v0 = vadd.f32 %v2354_v46, %v2226_v6 }
 0x421   : > { %v4676_v62 = vpop.permute.xlu1 %2067  ;;  %v2135_v16 = vrot.slane %v2066_v17, 1  ;;  %v3146_v17 = vld [vmem:[%s3246_s10 + $0x70] sm:$0xff]  }
 0x422   : > { %2722 = vst.msk [vmem:[%s4413_s9 + $0x58] sm:$0xf] %vm2699_vm8, %v2946_v22  ;;  %v2526_v63 = vadd.f32 %v2494_v54, %v2416_v30  ;;  %v2495_v10 = vadd.f32 %v4386_v27, %v2456_v4  ;;  %v2136_v47 = vrot.slane %v4676_v62, 1  ;;  %v2457_v29 = vmul.f32 %v4380_v43, %v2386_v0 }
 0x423   : > { %v2290_v58 = vpop.permute.xlu0 %2289  ;;  %v2197_v30 = vsel %vm1131_vm5, %v4321_v51, 0.0  ;;  %v2421_v22 = vunpack.c.l.bf16 %v3146_v17 }
 0x424   : > { %v2558_v41 = vmax.f32 %v2526_v63, 0.0  ;;  %v2527_v26 = vadd.f32 %v2495_v10, %v2417_v40  ;;  %v2145_v61 = vsel %vm1093_vm6, %v2135_v16, %v2136_v47  ;;  %v2359_v56 = vadd.f32 %v2290_v58, %v2199_v35 }
 0x425   : > { %v2496_v36 = vadd.f32 %v4386_v27, %v2457_v29  ;;  %v2292_v12 = vpop.permute.xlu1 %2291  ;;  %v2422_v35 = vunpack.c.h.bf16 %v3146_v17 }
 0x426   : > { %v2943_v49 = vpack.c.bf16 %v2558_v41, %v2558_v41  ;;  %v2559_v38 = vmax.f32 %v2527_v26, 0.0  ;;  %v2391_v31 = vadd.f32 %v2359_v56, %v2145_v61  ;;  %v2360_v56 = vadd.f32 %v2292_v12, %v4326_v44 }
 0x427   : > { %v2528_v60 = vadd.f32 %v2496_v36, %v2418_v45  ;;  %v2062_v21 = vpop.permute.xlu0 %2061 }
 0x428   : > { %2719 = vst.msk [vmem:[%s4413_s9 + $0x4c] sm:$0xf] %vm2699_vm8, %v2943_v49  ;;  %v2944_v2 = vpack.c.bf16 %v2559_v38, %v2559_v38  ;;  %v2462_v34 = vmul.f32 %v4380_v43, %v2391_v31  ;;  %v2133_v8 = vrot.slane %v2062_v21, 1  ;;  %v2201_v38 = vsel %vm1131_vm5, %v4344_v52, 0.0 }
 0x429   : > { %v2560_v19 = vmax.f32 %v2528_v60, 0.0  ;;  %v2064_v39 = vpop.permute.xlu1 %2063 }
 0x42a   : > { %2720 = vst.msk [vmem:[%s4413_s9 + $0x50] sm:$0xf] %vm2699_vm8, %v2944_v2  ;;  %v2501_v42 = vadd.f32 %v4386_v27, %v2462_v34  ;;  %v2148_v15 = vsel %vm1093_vm6, %v2132_v11, %v2133_v8  ;;  %v2134_v23 = vrot.slane %v2064_v39, 1 }
 0x42b   : > { %v2945_v48 = vpack.c.bf16 %v2560_v19, %v2560_v19  ;;  %v2228_v25 = vsel %vm1174_vm7, %v2148_v15, 0.0  ;;  %v2286_v37 = vpop.permute.xlu0 %2285 }
 0x42c   : > { %v2533_v18 = vadd.f32 %v2501_v42, %v2423_v59  ;;  %v2388_v13 = vadd.f32 %v2356_v50, %v2228_v25  ;;  %v2147_v24 = vsel %vm1093_vm6, %v2133_v8, %v2134_v23  ;;  %v2357_v14 = vadd.f32 %v2286_v37, %v2197_v30 }
 0x42d   : > { %2721 = vst.msk [vmem:[%s4413_s9 + $0x54] sm:$0xf] %vm2699_vm8, %v2945_v48  ;;  %v2146_v11 = vsel %vm1093_vm6, %v2134_v23, %v2135_v16  ;;  %v2288_v9 = vpop.permute.xlu1 %2287  ;;  %v3147_v23 = vld [vmem:[%s3246_s10 + $0x80] sm:$0xff]  }
 0x42e   : > { %v2565_v40 = vmax.f32 %v2533_v18, 0.0  ;;  %v2459_v46 = vmul.f32 %v4380_v43, %v2388_v13  ;;  %v2389_v51 = vadd.f32 %v2357_v14, %v2147_v24  ;;  %v2358_v54 = vadd.f32 %v2288_v9, %v4334_v32 }
 0x42f   : > { %v2074_v4 = vpop.permute.xlu0 %2073  ;;  %v2230_v10 = vsel %vm1174_vm7, %v2146_v11, 0.0  ;;  %v2425_v48 = vunpack.c.l.bf16 %v3147_v23  ;;  %v2203_v24 = vsel %vm1131_vm5, %v4361_v7, 0.0 }
 0x430   : > { %v2950_v6 = vpack.c.bf16 %v2565_v40, %v2565_v40  ;;  %v2498_v0 = vadd.f32 %v4386_v27, %v2459_v46  ;;  %v2460_v63 = vmul.f32 %v4380_v43, %v2389_v51  ;;  %v2390_v16 = vadd.f32 %v2358_v54, %v2230_v10 }
 0x431   : > { %v2076_v45 = vpop.permute.xlu1 %2075  ;;  %v2139_v34 = vrot.slane %v2074_v4, 1  ;;  %v2426_v40 = vunpack.c.h.bf16 %v3147_v23 }
 0x432   : > { %2726 = vst.msk [vmem:[%s4413_s9 + $0x68] sm:$0xf] %vm2699_vm8, %v2950_v6  ;;  %v2530_v3 = vadd.f32 %v2498_v0, %v2420_v57  ;;  %v2499_v29 = vadd.f32 %v4386_v27, %v2460_v63  ;;  %v2461_v58 = vmul.f32 %v4380_v43, %v2390_v16  ;;  %v2140_v44 = vrot.slane %v2076_v45, 1 }
 0x433   : > { %v2070_v32 = vpop.permute.xlu0 %2069 }
 0x434   : > { %v2562_v41 = vmax.f32 %v2530_v3, 0.0  ;;  %v2531_v26 = vadd.f32 %v2499_v29, %v2421_v22  ;;  %v2137_v61 = vrot.slane %v2070_v32, 1  ;;  %v2500_v36 = vadd.f32 %v4386_v27, %v2461_v58 }
 0x435   : > { %v2072_v49 = vpop.permute.xlu1 %2071  ;;  %v2172_v14 = vsel %vm1093_vm6, %v2140_v44, %v2109_v5  ;;  %v2141_v46 = vsel %vm1093_vm6, %v2139_v34, %v2140_v44  ;;  %v3148_v5 = vld [vmem:[%s3246_s10 + $0x88] sm:$0xff]  }
 0x436   : > { %v2947_v31 = vpack.c.bf16 %v2562_v41, %v2562_v41  ;;  %v2563_v60 = vmax.f32 %v2531_v26, 0.0  ;;  %v2144_v21 = vsel %vm1093_vm6, %v2136_v47, %v2137_v61  ;;  %v2138_v59 = vrot.slane %v2072_v49, 1 }
 0x437   : > { %v2532_v2 = vadd.f32 %v2500_v36, %v2422_v35  ;;  %v2232_v12 = vsel %vm1174_vm7, %v2144_v21, 0.0  ;;  %v2294_v8 = vpop.permute.xlu0 %2293  ;;  %v2424_v47 = vunpack.c.h.bf16 %v4692_v53  ;;  %v2427_v54 = vunpack.c.l.bf16 %v3148_v5 }
 0x438   : > { %2723 = vst.msk [vmem:[%s4413_s9 + $0x5c] sm:$0xf] %vm2699_vm8, %v2947_v31  ;;  %v2948_v52 = vpack.c.bf16 %v2563_v60, %v2563_v60  ;;  %v2392_v19 = vadd.f32 %v2360_v56, %v2232_v12  ;;  %v2143_v62 = vsel %vm1093_vm6, %v2137_v61, %v2138_v59  ;;  %v2361_v39 = vadd.f32 %v2294_v8, %v2201_v38 }
 0x439   : > { %v2564_v50 = vmax.f32 %v2532_v2, 0.0  ;;  %v2142_v42 = vsel %vm1093_vm6, %v2138_v59, %v2139_v34  ;;  %v2296_v15 = vpop.permute.xlu1 %2295  ;;  %v2236_v4 = vsel %vm1174_vm7, %v2172_v14, 0.0  ;;  %v2428_v58 = vunpack.c.h.bf16 %v3148_v5 }
 0x43a   : > { %2724 = vst.msk [vmem:[%s4413_s9 + $0x60] sm:$0xf] %vm2699_vm8, %v2948_v52  ;;  %v2463_v25 = vmul.f32 %v4380_v43, %v2392_v19  ;;  %v2393_v30 = vadd.f32 %v2361_v39, %v2143_v62  ;;  %v2362_v37 = vadd.f32 %v2296_v15, %v4357_v20  ;;  %v2234_v13 = vsel %vm1174_vm7, %v2142_v42, 0.0 }
 0x43b   : > { %v2949_v18 = vpack.c.bf16 %v2564_v50, %v2564_v50  ;;  %v2298_v53 = vpop.permute.xlu0 %2297 }
 0x43c   : > { %v2502_v11 = vadd.f32 %v4386_v27, %v2463_v25  ;;  %v2464_v9 = vmul.f32 %v4380_v43, %v2393_v30  ;;  %v2394_v20 = vadd.f32 %v2362_v37, %v2234_v13  ;;  %v2363_v57 = vadd.f32 %v2298_v53, %v2203_v24 }
 0x43d   : > { %2725 = vst.msk [vmem:[%s4413_s9 + $0x64] sm:$0xf] %vm2699_vm8, %v2949_v18  ;;  %v2300_v51 = vpop.permute.xlu1 %2299 }
 0x43e   : > { %v2534_v17 = vadd.f32 %v2502_v11, %v2424_v47  ;;  %v2503_v7 = vadd.f32 %v4386_v27, %v2464_v9  ;;  %v2465_v1 = vmul.f32 %v4380_v43, %v2394_v20  ;;  %v2395_v22 = vadd.f32 %v2363_v57, %v2141_v46 }
 0x43f   : > { %v2364_v6 = vadd.f32 %v2300_v51, %v4353_v28 }
 0x440   : > { %v2566_v0 = vmax.f32 %v2534_v17, 0.0  ;;  %v2535_v63 = vadd.f32 %v2503_v7, %v2425_v48  ;;  %v2504_v33 = vadd.f32 %v4386_v27, %v2465_v1  ;;  %v2466_v10 = vmul.f32 %v4380_v43, %v2395_v22 }
 0x441   : > { %v2396_v16 = vadd.f32 %v2364_v6, %v2236_v4 }
 0x442   : > { %v2951_v45 = vpack.c.bf16 %v2566_v0, %v2566_v0  ;;  %v2567_v3 = vmax.f32 %v2535_v63, 0.0  ;;  %v2536_v29 = vadd.f32 %v2504_v33, %v2426_v40  ;;  %v2505_v35 = vadd.f32 %v4386_v27, %v2466_v10 }
 0x443   : > { %v2467_v55 = vmul.f32 %v4380_v43, %v2396_v16 }
 0x444   : > { %2727 = vst.msk [vmem:[%s4413_s9 + $0x6c] sm:$0xf] %vm2699_vm8, %v2951_v45  ;;  %v2952_v28 = vpack.c.bf16 %v2567_v3, %v2567_v3  ;;  %v2568_v32 = vmax.f32 %v2536_v29, 0.0  ;;  %v2537_v41 = vadd.f32 %v2505_v35, %v2427_v54 }
 0x445   : > { %v2506_v26 = vadd.f32 %v4386_v27, %v2467_v55 }
 0x446   : > { %2728 = vst.msk [vmem:[%s4413_s9 + $0x70] sm:$0xf] %vm2699_vm8, %v2952_v28  ;;  %v2953_v61 = vpack.c.bf16 %v2568_v32, %v2568_v32  ;;  %v2569_v56 = vmax.f32 %v2537_v41, 0.0 }
 0x447   : > { %v2538_v36 = vadd.f32 %v2506_v26, %v2428_v58 }
 0x448   : > { %2729 = vst.msk [vmem:[%s4413_s9 + $0x74] sm:$0xf] %vm2699_vm8, %v2953_v61  ;;  %v2954_v49 = vpack.c.bf16 %v2569_v56, %v2569_v56 }
 0x449   : > { %v2570_v38 = vmax.f32 %v2538_v36, 0.0 }
 0x44a   : > { %2730 = vst.msk [vmem:[%s4413_s9 + $0x78] sm:$0xf] %vm2699_vm8, %v2954_v49 }
 0x44b   : > { %v2955_v31 = vpack.c.bf16 %v2570_v38, %v2570_v38 }
 0x44d   : > { %2731 = vst.msk [vmem:[%s4413_s9 + $0x7c] sm:$0xf] %vm2699_vm8, %v2955_v31 }
 0x44e PF: > { %s17_s26 = sadd.s32 1, %s3171_s26   ;;  %s4806_s24 = smov %s3167_s25 }
 0x44f   : > { %p14_p5 = scmp.ge.s32.totalorder %s17_s26, 4   ;;  %s4807_s25 = smov %s4809_s27 }
 0x451   :  { %16 = sbr.rel (!%p14_p5) target bundleno = 2 (0x2), region = 79 }

</bundles_post_ra>
